<compile_context>
chip_gen: v6e
topology: v6e:2x2x1
jax: 0.10.0
libtpu: 0.0.40
codegen_flags: <defaults>
</compile_context>

<pallas_src>
import functools

import jax
import jax.numpy as jnp
from jax import lax
from jax.experimental import pallas as pl
from jax.experimental.pallas import tpu as pltpu

N_FEATS = 64          # default n_feats of ResBlock
REDUCTION = 16        # SEModule reduction
NEG_SLOPE = 0.2       # LeakyReLU negative slope (get_act default)
RES_SCALE = 1.0       # default res_scale


def _resblock_kernel(x_ref, w1_ref, b1_ref, w2_ref, b2_ref,
                     wse1_ref, bse1_ref, wse2_ref, bse2_ref,
                     o_ref, pad_ref, *, H, W, C):
    """One batch element per grid step.

    pad_ref: persistent f32 VMEM scratch of shape (H+2, W+2, C). Only its
    interior is ever written by the convs; the 1-pixel halo is (re)zeroed each
    step, which is cheap and stays correct if the 'parallel' grid axis is
    split across TensorCores (no reliance on program_id==0 running everywhere).
    """
    Hp, Wp = H + 2, W + 2

    # ---- zero only the 1-pixel halo of the padded scratch ------------------
    pad_ref[0:1, :, :] = jnp.zeros((1, Wp, C), jnp.float32)
    pad_ref[Hp - 1:Hp, :, :] = jnp.zeros((1, Wp, C), jnp.float32)
    pad_ref[:, 0:1, :] = jnp.zeros((Hp, 1, C), jnp.float32)
    pad_ref[:, Wp - 1:Wp, :] = jnp.zeros((Hp, 1, C), jnp.float32)

    x = x_ref[0]                               # (H, W, C) f32, kept for residual

    def conv3x3(w_ref):
        # im2col: concat the 9 shifted taps along channels -> single deep-K
        # bf16 matmul (K = 9*C) with f32 accumulation on the MXU.
        patches = []
        for kh in range(3):
            for kw in range(3):
                patches.append(
                    pad_ref[kh:kh + H, kw:kw + W, :].astype(jnp.bfloat16))
        p = jnp.concatenate(patches, axis=-1)          # (H, W, 9C) bf16
        return jnp.einsum('hwk,kd->hwd', p, w_ref[...],
                          preferred_element_type=jnp.float32)   # (H, W, C) f32

    # ---- conv1 (3x3, pad 1) + bias + LeakyReLU ------------------------------
    pad_ref[1:H + 1, 1:W + 1, :] = x
    y1 = conv3x3(w1_ref) + b1_ref[...]
    y1 = jnp.where(y1 > 0, y1, NEG_SLOPE * y1)

    # ---- conv2 (3x3, pad 1) + bias  (reuse the same padded scratch) ---------
    pad_ref[1:H + 1, 1:W + 1, :] = y1
    y2 = conv3x3(w2_ref) + b2_ref[...]

    # ---- SEModule: avg pool -> 1x1 conv -> ReLU -> 1x1 conv -> sigmoid ------
    pooled = jnp.mean(y2.reshape(H * W, C), axis=0, keepdims=True)   # (1, C)
    s1 = jnp.maximum(
        jnp.dot(pooled, wse1_ref[...], preferred_element_type=jnp.float32)
        + bse1_ref[...], 0.0)                                        # (1, C//r)
    s2 = jax.nn.sigmoid(
        jnp.dot(s1, wse2_ref[...], preferred_element_type=jnp.float32)
        + bse2_ref[...])                                             # (1, C)

    out = y2 * s2.reshape(1, 1, C) * RES_SCALE + x    # channel attn + residual
    o_ref[0] = out.astype(o_ref.dtype)


def resblock_pallas(x_nchw, w1, b1, w2, b2, wse1, bse1, wse2, bse2):
    x_nhwc = jnp.transpose(x_nchw, (0, 2, 3, 1))
    N, H, W, C = x_nhwc.shape
    Cr = wse1.shape[1]

    # Pre-flatten conv weights to contraction-major (9C, C) and cast to bf16
    # so each conv is a single deep-K MXU matmul.  Row order is (kh, kw, cin),
    # matching the in-kernel patch concatenation order.
    w1_f = w1.reshape(9 * C, C).astype(jnp.bfloat16)
    w2_f = w2.reshape(9 * C, C).astype(jnp.bfloat16)

    kernel = functools.partial(_resblock_kernel, H=H, W=W, C=C)

    out = pl.pallas_call(
        kernel,
        out_shape=jax.ShapeDtypeStruct((N, H, W, C), x_nhwc.dtype),
        grid_spec=pltpu.PrefetchScalarGridSpec(
            num_scalar_prefetch=0,
            grid=(N,),
            in_specs=[
                pl.BlockSpec((1, H, W, C), lambda n: (n, 0, 0, 0)),   # x (unpadded)
                pl.BlockSpec((9 * C, C), lambda n: (0, 0)),           # conv1 W bf16
                pl.BlockSpec((1, C), lambda n: (0, 0)),               # conv1 b
                pl.BlockSpec((9 * C, C), lambda n: (0, 0)),           # conv2 W bf16
                pl.BlockSpec((1, C), lambda n: (0, 0)),               # conv2 b
                pl.BlockSpec((C, Cr), lambda n: (0, 0)),              # SE squeeze W
                pl.BlockSpec((1, Cr), lambda n: (0, 0)),              # SE squeeze b
                pl.BlockSpec((Cr, C), lambda n: (0, 0)),              # SE excite W
                pl.BlockSpec((1, C), lambda n: (0, 0)),               # SE excite b
            ],
            out_specs=pl.BlockSpec((1, H, W, C), lambda n: (n, 0, 0, 0)),
            scratch_shapes=[pltpu.VMEM((H + 2, W + 2, C), jnp.float32)],
        ),
        compiler_params=pltpu.CompilerParams(
            dimension_semantics=("parallel",)),
    )(x_nhwc, w1_f, b1, w2_f, b2, wse1, bse1, wse2, bse2)

    return jnp.transpose(out, (0, 3, 1, 2))   # back to NCHW


def resblock_ref(x_nchw, w1, b1, w2, b2, wse1, bse1, wse2, bse2):
    """Pure-JAX (f32) reference mirroring the PyTorch forward."""
    x = jnp.transpose(x_nchw, (0, 2, 3, 1))

    def conv3(v, w, b):
        return lax.conv_general_dilated(
            v, w, (1, 1), 'SAME',
            dimension_numbers=('NHWC', 'HWIO', 'NHWC')) + b

    y = conv3(x, w1, b1)
    y = jnp.where(y > 0, y, NEG_SLOPE * y)
    y = conv3(y, w2, b2)
    pooled = jnp.mean(y, axis=(1, 2))                       # (N, C)
    s1 = jnp.maximum(pooled @ wse1 + bse1, 0.0)
    s2 = jax.nn.sigmoid(s1 @ wse2 + bse2)
    res = y * s2[:, None, None, :]
    out = res * RES_SCALE + x
    return jnp.transpose(out, (0, 3, 1, 2))


if __name__ == "__main__":
    C = N_FEATS
    Cr = C // REDUCTION
    key = jax.random.PRNGKey(0)
    keys = jax.random.split(key, 9)

    # deterministic synthetic parameters (shapes from ResBlock.__init__)
    w1 = jax.random.normal(keys[0], (3, 3, C, C), jnp.float32) * 0.05
    b1 = jax.random.normal(keys[1], (1, C), jnp.float32) * 0.05
    w2 = jax.random.normal(keys[2], (3, 3, C, C), jnp.float32) * 0.05
    b2 = jax.random.normal(keys[3], (1, C), jnp.float32) * 0.05
    wse1 = jax.random.normal(keys[4], (C, Cr), jnp.float32) * 0.1
    bse1 = jax.random.normal(keys[5], (1, Cr), jnp.float32) * 0.1
    wse2 = jax.random.normal(keys[6], (Cr, C), jnp.float32) * 0.1
    bse2 = jax.random.normal(keys[7], (1, C), jnp.float32) * 0.1

    # input: batch=2, channels=n_feats=64, spatial 16x16 (NCHW like PyTorch)
    x = jax.random.normal(keys[8], (2, C, 16, 16), jnp.float32)

    out = resblock_pallas(x, w1, b1, w2, b2, wse1, bse1, wse2, bse2)
    out = jax.block_until_ready(out)

    ref = resblock_ref(x, w1, b1, w2, b2, wse1, bse1, wse2, bse2)
    assert out.shape == x.shape and out.dtype == x.dtype
    # Conv matmuls run on the MXU in bf16 (f32 accumulation); tolerance reflects
    # bf16 input rounding while still catching any algorithmic error (O(1)).
    assert jnp.allclose(out, ref, atol=3e-2, rtol=3e-2), "mismatch vs reference"

    print("KERNEL_OK")
</pallas_src>

<mosaic_0001>
module attributes {stable_mosaic.version = 11 : i64} {
  func.func @_resblock_kernel(%arg0: i32, %arg1: memref<1x16x16x64xf32, #tpu.memory_space<vmem>>, %arg2: memref<576x64xbf16, #tpu.memory_space<vmem>>, %arg3: memref<1x64xf32, #tpu.memory_space<vmem>>, %arg4: memref<576x64xbf16, #tpu.memory_space<vmem>>, %arg5: memref<1x64xf32, #tpu.memory_space<vmem>>, %arg6: memref<64x4xf32, #tpu.memory_space<vmem>>, %arg7: memref<1x4xf32, #tpu.memory_space<vmem>>, %arg8: memref<4x64xf32, #tpu.memory_space<vmem>>, %arg9: memref<1x64xf32, #tpu.memory_space<vmem>>, %arg10: memref<1x16x16x64xf32, #tpu.memory_space<vmem>>, %arg11: memref<18x18x64xf32, #tpu.memory_space<vmem>>) attributes {dimension_semantics = [#tpu.dimension_semantics<parallel>], iteration_bounds = array<i64: 2>, scalar_prefetch = 0 : i64, scratch_operands = 1 : i64, tpu.core_type = #tpu.core_type<tc>, window_params = [{transform_indices = @transform_0, window_bounds = array<i64: 1, 16, 16, 64>}, {pipeline_mode = #tpu.pipeline_mode<synchronous>, transform_indices = @transform_1, window_bounds = array<i64: 576, 64>}, {pipeline_mode = #tpu.pipeline_mode<synchronous>, transform_indices = @transform_2, window_bounds = array<i64: 1, 64>}, {pipeline_mode = #tpu.pipeline_mode<synchronous>, transform_indices = @transform_3, window_bounds = array<i64: 576, 64>}, {pipeline_mode = #tpu.pipeline_mode<synchronous>, transform_indices = @transform_4, window_bounds = array<i64: 1, 64>}, {pipeline_mode = #tpu.pipeline_mode<synchronous>, transform_indices = @transform_5, window_bounds = array<i64: 64, 4>}, {pipeline_mode = #tpu.pipeline_mode<synchronous>, transform_indices = @transform_6, window_bounds = array<i64: 1, 4>}, {pipeline_mode = #tpu.pipeline_mode<synchronous>, transform_indices = @transform_7, window_bounds = array<i64: 4, 64>}, {pipeline_mode = #tpu.pipeline_mode<synchronous>, transform_indices = @transform_8, window_bounds = array<i64: 1, 64>}, {transform_indices = @transform_9, window_bounds = array<i64: 1, 16, 16, 64>}]} {
    %cst = arith.constant 0.000000e+00 : f32
    %0 = vector.broadcast %cst : f32 to vector<1x18x64xf32>
    %c0 = arith.constant 0 : index
    %c0_0 = arith.constant 0 : index
    %c0_1 = arith.constant 0 : index
    %1 = vector.load %arg11[%c0, %c0_0, %c0_1] : memref<18x18x64xf32, #tpu.memory_space<vmem>>, vector<1x18x64xf32>
    tpu.vector_store %arg11[%c0, %c0_0, %c0_1], %0 {strides = array<i32>} : memref<18x18x64xf32, #tpu.memory_space<vmem>>, vector<1x18x64xf32>,
    %cst_2 = arith.constant 0.000000e+00 : f32
    %2 = vector.broadcast %cst_2 : f32 to vector<1x18x64xf32>
    %c17 = arith.constant 17 : index
    %c0_3 = arith.constant 0 : index
    %c0_4 = arith.constant 0 : index
    %3 = vector.load %arg11[%c17, %c0_3, %c0_4] : memref<18x18x64xf32, #tpu.memory_space<vmem>>, vector<1x18x64xf32>
    tpu.vector_store %arg11[%c17, %c0_3, %c0_4], %2 {strides = array<i32>} : memref<18x18x64xf32, #tpu.memory_space<vmem>>, vector<1x18x64xf32>,
    %cst_5 = arith.constant 0.000000e+00 : f32
    %4 = vector.broadcast %cst_5 : f32 to vector<18x1x64xf32>
    %c0_6 = arith.constant 0 : index
    %c0_7 = arith.constant 0 : index
    %c0_8 = arith.constant 0 : index
    %5 = vector.load %arg11[%c0_6, %c0_7, %c0_8] : memref<18x18x64xf32, #tpu.memory_space<vmem>>, vector<18x1x64xf32>
    tpu.vector_store %arg11[%c0_6, %c0_7, %c0_8], %4 {strides = array<i32>} : memref<18x18x64xf32, #tpu.memory_space<vmem>>, vector<18x1x64xf32>,
    %cst_9 = arith.constant 0.000000e+00 : f32
    %6 = vector.broadcast %cst_9 : f32 to vector<18x1x64xf32>
    %c0_10 = arith.constant 0 : index
    %c17_11 = arith.constant 17 : index
    %c0_12 = arith.constant 0 : index
    %7 = vector.load %arg11[%c0_10, %c17_11, %c0_12] : memref<18x18x64xf32, #tpu.memory_space<vmem>>, vector<18x1x64xf32>
    tpu.vector_store %arg11[%c0_10, %c17_11, %c0_12], %6 {strides = array<i32>} : memref<18x18x64xf32, #tpu.memory_space<vmem>>, vector<18x1x64xf32>,
    %c0_13 = arith.constant 0 : index
    %c0_14 = arith.constant 0 : index
    %c0_15 = arith.constant 0 : index
    %c0_16 = arith.constant 0 : index
    %8 = vector.load %arg1[%c0_13, %c0_14, %c0_15, %c0_16] : memref<1x16x16x64xf32, #tpu.memory_space<vmem>>, vector<1x16x16x64xf32>
    %9 = vector.shape_cast %8 : vector<1x16x16x64xf32> to vector<16x16x64xf32>
    %c1 = arith.constant 1 : index
    %c1_17 = arith.constant 1 : index
    %c0_18 = arith.constant 0 : index
    %10 = vector.load %arg11[%c1, %c1_17, %c0_18] : memref<18x18x64xf32, #tpu.memory_space<vmem>>, vector<16x16x64xf32>
    tpu.vector_store %arg11[%c1, %c1_17, %c0_18], %9 {strides = array<i32>} : memref<18x18x64xf32, #tpu.memory_space<vmem>>, vector<16x16x64xf32>,
    %c0_19 = arith.constant 0 : index
    %c0_20 = arith.constant 0 : index
    %c0_21 = arith.constant 0 : index
    %11 = vector.load %arg11[%c0_19, %c0_20, %c0_21] : memref<18x18x64xf32, #tpu.memory_space<vmem>>, vector<16x16x64xf32>
    %12 = arith.truncf %11 : vector<16x16x64xf32> to vector<16x16x64xbf16>
    %c0_22 = arith.constant 0 : index
    %c1_23 = arith.constant 1 : index
    %c0_24 = arith.constant 0 : index
    %13 = vector.load %arg11[%c0_22, %c1_23, %c0_24] : memref<18x18x64xf32, #tpu.memory_space<vmem>>, vector<16x16x64xf32>
    %14 = arith.truncf %13 : vector<16x16x64xf32> to vector<16x16x64xbf16>
    %c0_25 = arith.constant 0 : index
    %c2 = arith.constant 2 : index
    %c0_26 = arith.constant 0 : index
    %15 = vector.load %arg11[%c0_25, %c2, %c0_26] : memref<18x18x64xf32, #tpu.memory_space<vmem>>, vector<16x16x64xf32>
    %16 = arith.truncf %15 : vector<16x16x64xf32> to vector<16x16x64xbf16>
    %c1_27 = arith.constant 1 : index
    %c0_28 = arith.constant 0 : index
    %c0_29 = arith.constant 0 : index
    %17 = vector.load %arg11[%c1_27, %c0_28, %c0_29] : memref<18x18x64xf32, #tpu.memory_space<vmem>>, vector<16x16x64xf32>
    %18 = arith.truncf %17 : vector<16x16x64xf32> to vector<16x16x64xbf16>
    %c1_30 = arith.constant 1 : index
    %c1_31 = arith.constant 1 : index
    %c0_32 = arith.constant 0 : index
    %19 = vector.load %arg11[%c1_30, %c1_31, %c0_32] : memref<18x18x64xf32, #tpu.memory_space<vmem>>, vector<16x16x64xf32>
    %20 = arith.truncf %19 : vector<16x16x64xf32> to vector<16x16x64xbf16>
    %c1_33 = arith.constant 1 : index
    %c2_34 = arith.constant 2 : index
    %c0_35 = arith.constant 0 : index
    %21 = vector.load %arg11[%c1_33, %c2_34, %c0_35] : memref<18x18x64xf32, #tpu.memory_space<vmem>>, vector<16x16x64xf32>
    %22 = arith.truncf %21 : vector<16x16x64xf32> to vector<16x16x64xbf16>
    %c2_36 = arith.constant 2 : index
    %c0_37 = arith.constant 0 : index
    %c0_38 = arith.constant 0 : index
    %23 = vector.load %arg11[%c2_36, %c0_37, %c0_38] : memref<18x18x64xf32, #tpu.memory_space<vmem>>, vector<16x16x64xf32>
    %24 = arith.truncf %23 : vector<16x16x64xf32> to vector<16x16x64xbf16>
    %c2_39 = arith.constant 2 : index
    %c1_40 = arith.constant 1 : index
    %c0_41 = arith.constant 0 : index
    %25 = vector.load %arg11[%c2_39, %c1_40, %c0_41] : memref<18x18x64xf32, #tpu.memory_space<vmem>>, vector<16x16x64xf32>
    %26 = arith.truncf %25 : vector<16x16x64xf32> to vector<16x16x64xbf16>
    %c2_42 = arith.constant 2 : index
    %c2_43 = arith.constant 2 : index
    %c0_44 = arith.constant 0 : index
    %27 = vector.load %arg11[%c2_42, %c2_43, %c0_44] : memref<18x18x64xf32, #tpu.memory_space<vmem>>, vector<16x16x64xf32>
    %28 = arith.truncf %27 : vector<16x16x64xf32> to vector<16x16x64xbf16>
    %29 = tpu.concatenate %12, %14, %16, %18, %20, %22, %24, %26, %28 in 2 : vector<16x16x64xbf16>, vector<16x16x64xbf16>, vector<16x16x64xbf16>, vector<16x16x64xbf16>, vector<16x16x64xbf16>, vector<16x16x64xbf16>, vector<16x16x64xbf16>, vector<16x16x64xbf16>, vector<16x16x64xbf16> -> vector<16x16x576xbf16>
    %c0_45 = arith.constant 0 : index
    %c0_46 = arith.constant 0 : index
    %30 = vector.load %arg2[%c0_45, %c0_46] : memref<576x64xbf16, #tpu.memory_space<vmem>>, vector<576x64xbf16>
    "tpu.trace_start"() <{level = 10 : i32, message = "hwk,kd->hwd"}> : () -> ()
    %cst_47 = arith.constant dense<0.000000e+00> : vector<16x16x64xf32>
    %31 = tpu.matmul %29, %30, %cst_47 {dimension_numbers = #tpu.dot_dimension_numbers<[2], [0], [0, 1], [1], [0, 0, 0, 1, 1, 1], [], []>} : vector<16x16x576xbf16>, vector<576x64xbf16>, vector<16x16x64xf32> -> vector<16x16x64xf32>
    "tpu.trace_stop"() : () -> ()
    %c0_48 = arith.constant 0 : index
    %c0_49 = arith.constant 0 : index
    %32 = vector.load %arg3[%c0_48, %c0_49] : memref<1x64xf32, #tpu.memory_space<vmem>>, vector<1x64xf32>
    %33 = vector.shape_cast %32 : vector<1x64xf32> to vector<1x1x64xf32>
    %34 = vector.broadcast %33 : vector<1x1x64xf32> to vector<16x16x64xf32>
    %35 = arith.addf %31, %34 : vector<16x16x64xf32>
    %cst_50 = arith.constant 0.000000e+00 : f32
    %36 = vector.broadcast %cst_50 : f32 to vector<16x16x64xf32>
    %37 = arith.cmpf ogt, %35, %36 : vector<16x16x64xf32>
    %cst_51 = arith.constant 2.000000e-01 : f32
    %38 = vector.broadcast %cst_51 : f32 to vector<16x16x64xf32>
    %39 = arith.mulf %38, %35 : vector<16x16x64xf32>
    %40 = arith.select %37, %35, %39 : vector<16x16x64xi1>, vector<16x16x64xf32>
    %c1_52 = arith.constant 1 : index
    %c1_53 = arith.constant 1 : index
    %c0_54 = arith.constant 0 : index
    %41 = vector.load %arg11[%c1_52, %c1_53, %c0_54] : memref<18x18x64xf32, #tpu.memory_space<vmem>>, vector<16x16x64xf32>
    tpu.vector_store %arg11[%c1_52, %c1_53, %c0_54], %40 {strides = array<i32>} : memref<18x18x64xf32, #tpu.memory_space<vmem>>, vector<16x16x64xf32>,
    %c0_55 = arith.constant 0 : index
    %c0_56 = arith.constant 0 : index
    %c0_57 = arith.constant 0 : index
    %42 = vector.load %arg11[%c0_55, %c0_56, %c0_57] : memref<18x18x64xf32, #tpu.memory_space<vmem>>, vector<16x16x64xf32>
    %43 = arith.truncf %42 : vector<16x16x64xf32> to vector<16x16x64xbf16>
    %c0_58 = arith.constant 0 : index
    %c1_59 = arith.constant 1 : index
    %c0_60 = arith.constant 0 : index
    %44 = vector.load %arg11[%c0_58, %c1_59, %c0_60] : memref<18x18x64xf32, #tpu.memory_space<vmem>>, vector<16x16x64xf32>
    %45 = arith.truncf %44 : vector<16x16x64xf32> to vector<16x16x64xbf16>
    %c0_61 = arith.constant 0 : index
    %c2_62 = arith.constant 2 : index
    %c0_63 = arith.constant 0 : index
    %46 = vector.load %arg11[%c0_61, %c2_62, %c0_63] : memref<18x18x64xf32, #tpu.memory_space<vmem>>, vector<16x16x64xf32>
    %47 = arith.truncf %46 : vector<16x16x64xf32> to vector<16x16x64xbf16>
    %c1_64 = arith.constant 1 : index
    %c0_65 = arith.constant 0 : index
    %c0_66 = arith.constant 0 : index
    %48 = vector.load %arg11[%c1_64, %c0_65, %c0_66] : memref<18x18x64xf32, #tpu.memory_space<vmem>>, vector<16x16x64xf32>
    %49 = arith.truncf %48 : vector<16x16x64xf32> to vector<16x16x64xbf16>
    %c1_67 = arith.constant 1 : index
    %c1_68 = arith.constant 1 : index
    %c0_69 = arith.constant 0 : index
    %50 = vector.load %arg11[%c1_67, %c1_68, %c0_69] : memref<18x18x64xf32, #tpu.memory_space<vmem>>, vector<16x16x64xf32>
    %51 = arith.truncf %50 : vector<16x16x64xf32> to vector<16x16x64xbf16>
    %c1_70 = arith.constant 1 : index
    %c2_71 = arith.constant 2 : index
    %c0_72 = arith.constant 0 : index
    %52 = vector.load %arg11[%c1_70, %c2_71, %c0_72] : memref<18x18x64xf32, #tpu.memory_space<vmem>>, vector<16x16x64xf32>
    %53 = arith.truncf %52 : vector<16x16x64xf32> to vector<16x16x64xbf16>
    %c2_73 = arith.constant 2 : index
    %c0_74 = arith.constant 0 : index
    %c0_75 = arith.constant 0 : index
    %54 = vector.load %arg11[%c2_73, %c0_74, %c0_75] : memref<18x18x64xf32, #tpu.memory_space<vmem>>, vector<16x16x64xf32>
    %55 = arith.truncf %54 : vector<16x16x64xf32> to vector<16x16x64xbf16>
    %c2_76 = arith.constant 2 : index
    %c1_77 = arith.constant 1 : index
    %c0_78 = arith.constant 0 : index
    %56 = vector.load %arg11[%c2_76, %c1_77, %c0_78] : memref<18x18x64xf32, #tpu.memory_space<vmem>>, vector<16x16x64xf32>
    %57 = arith.truncf %56 : vector<16x16x64xf32> to vector<16x16x64xbf16>
    %c2_79 = arith.constant 2 : index
    %c2_80 = arith.constant 2 : index
    %c0_81 = arith.constant 0 : index
    %58 = vector.load %arg11[%c2_79, %c2_80, %c0_81] : memref<18x18x64xf32, #tpu.memory_space<vmem>>, vector<16x16x64xf32>
    %59 = arith.truncf %58 : vector<16x16x64xf32> to vector<16x16x64xbf16>
    %60 = tpu.concatenate %43, %45, %47, %49, %51, %53, %55, %57, %59 in 2 : vector<16x16x64xbf16>, vector<16x16x64xbf16>, vector<16x16x64xbf16>, vector<16x16x64xbf16>, vector<16x16x64xbf16>, vector<16x16x64xbf16>, vector<16x16x64xbf16>, vector<16x16x64xbf16>, vector<16x16x64xbf16> -> vector<16x16x576xbf16>
    %c0_82 = arith.constant 0 : index
    %c0_83 = arith.constant 0 : index
    %61 = vector.load %arg4[%c0_82, %c0_83] : memref<576x64xbf16, #tpu.memory_space<vmem>>, vector<576x64xbf16>
    "tpu.trace_start"() <{level = 10 : i32, message = "hwk,kd->hwd"}> : () -> ()
    %cst_84 = arith.constant dense<0.000000e+00> : vector<16x16x64xf32>
    %62 = tpu.matmul %60, %61, %cst_84 {dimension_numbers = #tpu.dot_dimension_numbers<[2], [0], [0, 1], [1], [0, 0, 0, 1, 1, 1], [], []>} : vector<16x16x576xbf16>, vector<576x64xbf16>, vector<16x16x64xf32> -> vector<16x16x64xf32>
    "tpu.trace_stop"() : () -> ()
    %c0_85 = arith.constant 0 : index
    %c0_86 = arith.constant 0 : index
    %63 = vector.load %arg5[%c0_85, %c0_86] : memref<1x64xf32, #tpu.memory_space<vmem>>, vector<1x64xf32>
    %64 = vector.shape_cast %63 : vector<1x64xf32> to vector<1x1x64xf32>
    %65 = vector.broadcast %64 : vector<1x1x64xf32> to vector<16x16x64xf32>
    %66 = arith.addf %62, %65 : vector<16x16x64xf32>
    %67 = vector.shape_cast %66 : vector<16x16x64xf32> to vector<256x64xf32>
    %cst_87 = arith.constant dense<0.000000e+00> : vector<64xf32>
    %68 = vector.multi_reduction <add>, %67, %cst_87 [0] : vector<256x64xf32> to vector<64xf32>
    %69 = vector.shape_cast %68 : vector<64xf32> to vector<1x64xf32>
    %cst_88 = arith.constant 2.560000e+02 : f32
    %70 = vector.broadcast %cst_88 : f32 to vector<1x64xf32>
    %71 = arith.divf %69, %70 : vector<1x64xf32>
    %c0_89 = arith.constant 0 : index
    %c0_90 = arith.constant 0 : index
    %72 = vector.load %arg6[%c0_89, %c0_90] : memref<64x4xf32, #tpu.memory_space<vmem>>, vector<64x4xf32>
    %cst_91 = arith.constant dense<0.000000e+00> : vector<1x4xf32>
    %73 = tpu.matmul %71, %72, %cst_91 {dimension_numbers = #tpu.dot_dimension_numbers<[1], [0], [0], [1], [0, 0, 1, 1], [], []>} : vector<1x64xf32>, vector<64x4xf32>, vector<1x4xf32> -> vector<1x4xf32>
    %c0_92 = arith.constant 0 : index
    %c0_93 = arith.constant 0 : index
    %74 = vector.load %arg7[%c0_92, %c0_93] : memref<1x4xf32, #tpu.memory_space<vmem>>, vector<1x4xf32>
    %75 = arith.addf %73, %74 : vector<1x4xf32>
    %cst_94 = arith.constant 0.000000e+00 : f32
    %76 = vector.broadcast %cst_94 : f32 to vector<1x4xf32>
    %77 = arith.maximumf %75, %76 : vector<1x4xf32>
    %c0_95 = arith.constant 0 : index
    %c0_96 = arith.constant 0 : index
    %78 = vector.load %arg8[%c0_95, %c0_96] : memref<4x64xf32, #tpu.memory_space<vmem>>, vector<4x64xf32>
    %cst_97 = arith.constant dense<0.000000e+00> : vector<1x64xf32>
    %79 = tpu.matmul %77, %78, %cst_97 {dimension_numbers = #tpu.dot_dimension_numbers<[1], [0], [0], [1], [0, 0, 1, 1], [], []>} : vector<1x4xf32>, vector<4x64xf32>, vector<1x64xf32> -> vector<1x64xf32>
    %c0_98 = arith.constant 0 : index
    %c0_99 = arith.constant 0 : index
    %80 = vector.load %arg9[%c0_98, %c0_99] : memref<1x64xf32, #tpu.memory_space<vmem>>, vector<1x64xf32>
    %81 = arith.addf %79, %80 : vector<1x64xf32>
    %82 = arith.negf %81 : vector<1x64xf32>
    %83 = math.exp %82 : vector<1x64xf32>
    %cst_100 = arith.constant 1.000000e+00 : f32
    %84 = vector.broadcast %cst_100 : f32 to vector<1x64xf32>
    %85 = arith.addf %84, %83 : vector<1x64xf32>
    %86 = arith.divf %84, %85 : vector<1x64xf32>
    %87 = vector.shape_cast %86 : vector<1x64xf32> to vector<1x1x64xf32>
    %88 = vector.broadcast %87 : vector<1x1x64xf32> to vector<16x16x64xf32>
    %89 = arith.mulf %66, %88 : vector<16x16x64xf32>
    %cst_101 = arith.constant 1.000000e+00 : f32
    %90 = vector.broadcast %cst_101 : f32 to vector<16x16x64xf32>
    %91 = arith.mulf %89, %90 : vector<16x16x64xf32>
    %92 = arith.addf %91, %9 : vector<16x16x64xf32>
    %c0_102 = arith.constant 0 : index
    %c0_103 = arith.constant 0 : index
    %c0_104 = arith.constant 0 : index
    %c0_105 = arith.constant 0 : index
    %93 = vector.load %arg10[%c0_102, %c0_103, %c0_104, %c0_105] : memref<1x16x16x64xf32, #tpu.memory_space<vmem>>, vector<1x16x16x64xf32>
    %94 = vector.shape_cast %93 : vector<1x16x16x64xf32> to vector<16x16x64xf32>
    %95 = vector.shape_cast %92 : vector<16x16x64xf32> to vector<1x16x16x64xf32>
    tpu.vector_store %arg10[%c0_102, %c0_103, %c0_104, %c0_105], %95 {strides = array<i32>} : memref<1x16x16x64xf32, #tpu.memory_space<vmem>>, vector<1x16x16x64xf32>,
    return
  }
  func.func @transform_0(%arg0: i32) -> (i32, i32, i32, i32) {
    %c0_i32 = arith.constant 0 : i32
    %c0_i32_0 = arith.constant 0 : i32
    %c0_i32_1 = arith.constant 0 : i32
    %c0_i32_2 = arith.constant 0 : i32
    return %arg0, %c0_i32, %c0_i32_0, %c0_i32_1 : i32, i32, i32, i32
  }
  func.func @transform_1(%arg0: i32) -> (i32, i32) {
    %c0_i32 = arith.constant 0 : i32
    %c0_i32_0 = arith.constant 0 : i32
    %c0_i32_1 = arith.constant 0 : i32
    return %c0_i32, %c0_i32_0 : i32, i32
  }
  func.func @transform_2(%arg0: i32) -> (i32, i32) {
    %c0_i32 = arith.constant 0 : i32
    %c0_i32_0 = arith.constant 0 : i32
    %c0_i32_1 = arith.constant 0 : i32
    return %c0_i32, %c0_i32_0 : i32, i32
  }
  func.func @transform_3(%arg0: i32) -> (i32, i32) {
    %c0_i32 = arith.constant 0 : i32
    %c0_i32_0 = arith.constant 0 : i32
    %c0_i32_1 = arith.constant 0 : i32
    return %c0_i32, %c0_i32_0 : i32, i32
  }
  func.func @transform_4(%arg0: i32) -> (i32, i32) {
    %c0_i32 = arith.constant 0 : i32
    %c0_i32_0 = arith.constant 0 : i32
    %c0_i32_1 = arith.constant 0 : i32
    return %c0_i32, %c0_i32_0 : i32, i32
  }
  func.func @transform_5(%arg0: i32) -> (i32, i32) {
    %c0_i32 = arith.constant 0 : i32
    %c0_i32_0 = arith.constant 0 : i32
    %c0_i32_1 = arith.constant 0 : i32
    return %c0_i32, %c0_i32_0 : i32, i32
  }
  func.func @transform_6(%arg0: i32) -> (i32, i32) {
    %c0_i32 = arith.constant 0 : i32
    %c0_i32_0 = arith.constant 0 : i32
    %c0_i32_1 = arith.constant 0 : i32
    return %c0_i32, %c0_i32_0 : i32, i32
  }
  func.func @transform_7(%arg0: i32) -> (i32, i32) {
    %c0_i32 = arith.constant 0 : i32
    %c0_i32_0 = arith.constant 0 : i32
    %c0_i32_1 = arith.constant 0 : i32
    return %c0_i32, %c0_i32_0 : i32, i32
  }
  func.func @transform_8(%arg0: i32) -> (i32, i32) {
    %c0_i32 = arith.constant 0 : i32
    %c0_i32_0 = arith.constant 0 : i32
    %c0_i32_1 = arith.constant 0 : i32
    return %c0_i32, %c0_i32_0 : i32, i32
  }
  func.func @transform_9(%arg0: i32) -> (i32, i32, i32, i32) {
    %c0_i32 = arith.constant 0 : i32
    %c0_i32_0 = arith.constant 0 : i32
    %c0_i32_1 = arith.constant 0 : i32
    %c0_i32_2 = arith.constant 0 : i32
    return %arg0, %c0_i32, %c0_i32_0, %c0_i32_1 : i32, i32, i32, i32
  }
}

</mosaic_0001>

<bundles_post_ra>
// kernel: tpu_custom_call.1
= control target key start
LH: loop header
LB: loop body
LE: loop exit
PB: predicated region body
PF: predicated region fallthrough
CT: control target
= control target key end

     0   :  { %14 = vsyncpa [#allocation4], 0  ;;  %s7650_s0 = inlined_call_operand.vmem [shape: f32[2,16,16,64], index: 0, kind: input, shape index: {}]   ;;  %s7651_s1 = inlined_call_operand.vmem [shape: bf16[576,64], index: 1, kind: input, shape index: {}]   ;;  %s7652_s2 = inlined_call_operand.vmem [shape: f32[1,64], index: 2, kind: input, shape index: {}]   ;;  %s7653_s3 = inlined_call_operand.vmem [shape: bf16[576,64], index: 3, kind: input, shape index: {}]   ;;  %s7654_s4 = inlined_call_operand.vmem [shape: f32[1,64], index: 4, kind: input, shape index: {}]   ;;  %s7655_s5 = inlined_call_operand.vmem [shape: f32[64,4], index: 5, kind: input, shape index: {}]   ;;  %s7656_s6 = inlined_call_operand.vmem [shape: f32[1,4], index: 6, kind: input, shape index: {}]   ;;  %s7657_s7 = inlined_call_operand.vmem [shape: f32[4,64], index: 7, kind: input, shape index: {}]   ;;  %s7658_s8 = inlined_call_operand.vmem [shape: f32[1,64], index: 8, kind: input, shape index: {}]   ;;  %s7659_s9 = inlined_call_operand.hbm [shape: f32[2,16,16,64], index: 9, kind: output, shape index: {}]  }
   0x1   :  { %16 = vsyncpa [#allocation4 + $0x1], 0  ;;  %s5367_s30 = smov 0   ;;  %s5369_s10 = smov 0  }
   0x2   :  { %s5371_s11 = smov 0   ;;  %s5373_s12 = smov 0  }
   0x3 LB: > { %s5388_s13 = sadd.s32 4294967295, %s5309_s12   ;;  %s4400_s14 = sadd.s32 4294967294, %s5309_s12   ;;  %s5309_s12 = sphi %s5373_s12, %s7856_s12   ;;  %s5305_s11 = sphi %s5371_s11, %s7855_s11   ;;  %s5301_s10 = sphi %s5369_s10, %s7854_s10   ;;  %s5297_s30 = sphi %s5367_s30, %s7853_s30  }
   0x4   : > { %s5392_s15 = sadd.s32 1, %s5309_s12   ;;  %s223_s16 = sadd.s32 1, %s5305_s11 }
   0x5   : > { %s220_s17 = ssub.s32 %s5309_s12, %s5392_s15  ;;  %p233_p0 = scmp.ne.s32.totalorder %s5305_s11, %s5301_s10 }
   0x6   : > { %p221_p1 = scmp.eq.s32.totalorder %s220_s17, 0  ;;  %p234_p2 = scmp.eq.s32.totalorder %s5388_s13, 1 }
   0x7   : > { %p239_p3 = scmp.ne.s32.totalorder %s5301_s10, %s5297_s30  ;;  %p240_p4 = scmp.eq.s32.totalorder %s4400_s14, 1 }
   0x8   : > { %s5403_s18 = scalar_select %p221_p1, %s5305_s11, %s223_s16  }
   0x9   : > { %p5405_p5 = por %p234_p2, %p233_p0  ;;  %p5409_p6 = por %p240_p4, %p239_p3 }
   0xa   : > { %p4403_p7 = scmp.ge.s32.totalorder %s5309_s12, 1  ;;  %p290_p8 = scmp.lt.s32.totalorder %s5309_s12, 3 }
   0xc   : > { %p291_p9 = pnand %p4403_p7, %p290_p8 }
   0xe   : > { %294 = sbr.rel (%p291_p9) target bundleno = 1504 (0x5e0), region = 56 }
  0x13   : > { %p326_p10 = scmp.lt.s32.totalorder %s5388_s13, 1  ;;  %vm332_vm0 = vcmask 523264   ;;  %vm341_vm1 = vcmask 516096   ;;  %vm335_vm2 = vcmask 517120   ;;  %v7660_v0 = vmov 0.0   ;;  %v5171_v1 = vld [vmem:[%s7651_s1 + $0x78] sm:$0xff]  }
  0x14   : > { %343 = vst.msk [vmem:[#allocation2 + $0x18] sm:$0x1] %vm341_vm1, %v7660_v0  ;;  %344 = vst.msk [vmem:[#allocation2 + $0x30] sm:$0x1] %vm341_vm1, %v7660_v0  ;;  %v5172_v2 = vld [vmem:[%s7651_s1 + $0x38] sm:$0xff]   ;;  %4524 = vmatprep.subr.bf16.mxu0 %v5171_v1  ;;  %v5173_v3 = vld [vmem:[%s7651_s1 + $0x70] sm:$0xff]  }
  0x15   : > { %333 = vst.msk [vmem:[#allocation2] sm:$0xff] %vm332_vm0, %v7660_v0  ;;  %334 = vst.msk [vmem:[#allocation2 + $0x8] sm:$0xff] %vm332_vm0, %v7660_v0  ;;  %s327_s23 = scalar_select %p326_p10, %s5388_s13, 1  ;;  %4525 = vmatpush3.bf16.msra.mxu0 %v5172_v2  ;;  %v5174_v4 = vld [vmem:[%s7651_s1 + $0x30] sm:$0xff]   ;;  %v5175_v5 = vld [vmem:[%s7651_s1 + $0x68] sm:$0xff]  }
  0x16   : > { %338 = vst.msk [vmem:[#allocation2 + $0x198] sm:$0xff] %vm332_vm0, %v7660_v0  ;;  %339 = vst.msk [vmem:[#allocation2 + $0x1a0] sm:$0xff] %vm332_vm0, %v7660_v0  ;;  %4526 = vmatprep.subr.bf16.mxu0 %v5173_v3  ;;  %s5312_s24 = smov 64   ;;  %s5314_s14 = smov [#allocation3]  }
  0x17   : > { %345 = vst.msk [vmem:[#allocation2 + $0x48] sm:$0x1] %vm341_vm1, %v7660_v0  ;;  %346 = vst.msk [vmem:[#allocation2 + $0x60] sm:$0x1] %vm341_vm1, %v7660_v0  ;;  %s4522_s28 = sshll.u32 %s327_s23, 8  ;;  %s4523_s23 = sshll.u32 %s5388_s13, 12 }
  0x18   : > { %347 = vst.msk [vmem:[#allocation2 + $0x78] sm:$0x1] %vm341_vm1, %v7660_v0  ;;  %348 = vst.msk [vmem:[#allocation2 + $0x90] sm:$0x1] %vm341_vm1, %v7660_v0  ;;  %s5518_s21 = scalar_lea.vmem %s7650_s0, %s4522_s28  ;;  %s7576_s27 = scalar_lea.hbm %s7659_s9, %s4523_s23 }
  0x19   : > { %349 = vst.msk [vmem:[#allocation2 + $0xa8] sm:$0x1] %vm341_vm1, %v7660_v0  ;;  %350 = vst.msk [vmem:[#allocation2 + $0xc0] sm:$0x1] %vm341_vm1, %v7660_v0  ;;  %v5524_v6 = vld [vmem:[%s5518_s21] sm:$0xff]  ;;  %v5527_v7 = vld [vmem:[%s5518_s21 + $0x8] sm:$0xff]  ;;  %4527 = vmatpush3.bf16.msra.mxu0 %v5174_v4 }
  0x1a   : > { %351 = vst.msk [vmem:[#allocation2 + $0xd8] sm:$0x1] %vm341_vm1, %v7660_v0  ;;  %352 = vst.msk [vmem:[#allocation2 + $0xf0] sm:$0x1] %vm341_vm1, %v7660_v0  ;;  %v5530_v8 = vld [vmem:[%s5518_s21 + $0x10] sm:$0xff]  ;;  %v5537_v9 = vld [vmem:[%s5518_s21 + $0x18] sm:$0xff]  ;;  %4528 = vmatprep.subr.bf16.mxu0 %v5175_v5 }
  0x1b   : > { %353 = vst.msk [vmem:[#allocation2 + $0x108] sm:$0x1] %vm341_vm1, %v7660_v0  ;;  %354 = vst.msk [vmem:[#allocation2 + $0x120] sm:$0x1] %vm341_vm1, %v7660_v0  ;;  %v5542_v10 = vld [vmem:[%s5518_s21 + $0x20] sm:$0xff]  ;;  %v5545_v11 = vld [vmem:[%s5518_s21 + $0x28] sm:$0xff] }
  0x1c   : > { %355 = vst.msk [vmem:[#allocation2 + $0x138] sm:$0x1] %vm341_vm1, %v7660_v0  ;;  %356 = vst.msk [vmem:[#allocation2 + $0x150] sm:$0x1] %vm341_vm1, %v7660_v0  ;;  %v5554_v12 = vld [vmem:[%s5518_s21 + $0x30] sm:$0xff]  ;;  %v5557_v13 = vld [vmem:[%s5518_s21 + $0x38] sm:$0xff] }
  0x1d   : > { %357 = vst.msk [vmem:[#allocation2 + $0x168] sm:$0x1] %vm341_vm1, %v7660_v0  ;;  %358 = vst.msk [vmem:[#allocation2 + $0x180] sm:$0x1] %vm341_vm1, %v7660_v0  ;;  %v5562_v14 = vld [vmem:[%s5518_s21 + $0x40] sm:$0xff]  ;;  %v5565_v15 = vld [vmem:[%s5518_s21 + $0x48] sm:$0xff] }
  0x1e   : > { %361 = vst.msk [vmem:[#allocation2 + $0x29] sm:$0x1] %vm341_vm1, %v7660_v0  ;;  %362 = vst.msk [vmem:[#allocation2 + $0x41] sm:$0x1] %vm341_vm1, %v7660_v0  ;;  %v5574_v16 = vld [vmem:[%s5518_s21 + $0x50] sm:$0xff]  ;;  %v5577_v17 = vld [vmem:[%s5518_s21 + $0x58] sm:$0xff] }
  0x1f   : > { %363 = vst.msk [vmem:[#allocation2 + $0x59] sm:$0x1] %vm341_vm1, %v7660_v0  ;;  %364 = vst.msk [vmem:[#allocation2 + $0x71] sm:$0x1] %vm341_vm1, %v7660_v0  ;;  %v5580_v18 = vld [vmem:[%s5518_s21 + $0x60] sm:$0xff]  ;;  %v5587_v19 = vld [vmem:[%s5518_s21 + $0x68] sm:$0xff] }
  0x20   : > { %365 = vst.msk [vmem:[#allocation2 + $0x89] sm:$0x1] %vm341_vm1, %v7660_v0  ;;  %366 = vst.msk [vmem:[#allocation2 + $0xa1] sm:$0x1] %vm341_vm1, %v7660_v0  ;;  %v5592_v20 = vld [vmem:[%s5518_s21 + $0x70] sm:$0xff]  ;;  %v5595_v21 = vld [vmem:[%s5518_s21 + $0x78] sm:$0xff] }
  0x21   : > { %367 = vst.msk [vmem:[#allocation2 + $0xb9] sm:$0x1] %vm341_vm1, %v7660_v0  ;;  %368 = vst.msk [vmem:[#allocation2 + $0xd1] sm:$0x1] %vm341_vm1, %v7660_v0  ;;  %v491_v22 = vld [vmem:[#allocation2 + $0x1] sm:$0xff]  ;;  %v5610_v26 = vld [vmem:[%s5518_s21 + $0x90] sm:$0xff] }
  0x22   : > { %369 = vst.msk [vmem:[#allocation2 + $0xe9] sm:$0x1] %vm341_vm1, %v7660_v0  ;;  %370 = vst.msk [vmem:[#allocation2 + $0x101] sm:$0x1] %vm341_vm1, %v7660_v0  ;;  %v5604_v24 = vld [vmem:[%s5518_s21 + $0x80] sm:$0xff]  ;;  %v5607_v25 = vld [vmem:[%s5518_s21 + $0x88] sm:$0xff] }
  0x23   : > { %371 = vst.msk [vmem:[#allocation2 + $0x119] sm:$0x1] %vm341_vm1, %v7660_v0  ;;  %372 = vst.msk [vmem:[#allocation2 + $0x131] sm:$0x1] %vm341_vm1, %v7660_v0  ;;  %v5617_v27 = vld [vmem:[%s5518_s21 + $0x98] sm:$0xff]  ;;  %v5622_v28 = vld [vmem:[%s5518_s21 + $0xa0] sm:$0xff] }
  0x24   : > { %373 = vst.msk [vmem:[#allocation2 + $0x149] sm:$0x1] %vm341_vm1, %v7660_v0  ;;  %374 = vst.msk [vmem:[#allocation2 + $0x161] sm:$0x1] %vm341_vm1, %v7660_v0  ;;  %v5625_v29 = vld [vmem:[%s5518_s21 + $0xa8] sm:$0xff]  ;;  %v5656_v58 = vld [vmem:[%s5518_s21 + $0xb0] sm:$0xff] }
  0x25   : > { %375 = vst.msk [vmem:[#allocation2 + $0x179] sm:$0x1] %vm341_vm1, %v7660_v0  ;;  %376 = vst.msk [vmem:[#allocation2 + $0x191] sm:$0x1] %vm341_vm1, %v7660_v0  ;;  %v5659_v59 = vld [vmem:[%s5518_s21 + $0xb8] sm:$0xff]  ;;  %v5670_v63 = vld [vmem:[%s5518_s21 + $0xc0] sm:$0xff] }
  0x26   : > { %336 = vst.msk [vmem:[#allocation2 + $0x10] sm:$0x3] %vm335_vm2, %v7660_v0  ;;  %340 = vst.msk [vmem:[#allocation2 + $0x1a8] sm:$0x3] %vm335_vm2, %v7660_v0  ;;  %v5673_v1 = vld [vmem:[%s5518_s21 + $0xc8] sm:$0xff]  ;;  %v5684_v3 = vld [vmem:[%s5518_s21 + $0xd0] sm:$0xff] }
  0x27   : > { %342 = vst.msk [vmem:[#allocation2] sm:$0x1] %vm341_vm1, %v7660_v0  ;;  %359 = vst.msk [vmem:[#allocation2 + $0x198] sm:$0x1] %vm341_vm1, %v7660_v0  ;;  %v5687_v4 = vld [vmem:[%s5518_s21 + $0xd8] sm:$0xff]  ;;  %v5690_v5 = vld [vmem:[%s5518_s21 + $0xe0] sm:$0xff] }
  0x28   : > { %360 = vst.msk [vmem:[#allocation2 + $0x11] sm:$0x1] %vm341_vm1, %v7660_v0  ;;  %377 = vst.msk [vmem:[#allocation2 + $0x1a9] sm:$0x1] %vm341_vm1, %v7660_v0  ;;  %s5253_s16 = sshll.u32 %s5314_s14, 4  ;;  %s5254_s16 = int_to_ptr.vmem [resolvable:$false] %s5253_s16 }
  0x29   : > { %7696 = vst [vmem:[#allocation6_spill] sm:$0xff] %v5524_v6  ;;  %7697 = vst [vmem:[#allocation7_spill] sm:$0xff] %v5527_v7  ;;  %s5255_s17 = scalar_lea.vmem %s5254_s16, 8192 }
  0x2a   : > { %7698 = vst [vmem:[#allocation8_spill] sm:$0xff] %v5530_v8  ;;  %411 = vst.msk [vmem:[#allocation2 + $0x19] sm:$0xff] %vm332_vm0, %v5524_v6  ;;  %v5220_v6 = vld [vmem:[%s7653_s3 + $0x8] sm:$0xff]  }
  0x2b   : > { %412 = vst.msk [vmem:[#allocation2 + $0x21] sm:$0xff] %vm332_vm0, %v5527_v7  ;;  %7699 = vst [vmem:[#allocation9_spill] sm:$0xff] %v5537_v9 }
  0x2c   : > { %413 = vst.msk [vmem:[#allocation2 + $0x31] sm:$0xff] %vm332_vm0, %v5530_v8  ;;  %7700 = vst [vmem:[#allocation10_spill] sm:$0xff] %v5542_v10 }
  0x2d   : > { %7701 = vst [vmem:[#allocation11_spill] sm:$0xff] %v5545_v11  ;;  %414 = vst.msk [vmem:[#allocation2 + $0x39] sm:$0xff] %vm332_vm0, %v5537_v9  ;;  %v492_v23 = vld [vmem:[#allocation2 + $0x9] sm:$0xff] }
  0x2e   : > { %415 = vst.msk [vmem:[#allocation2 + $0x49] sm:$0xff] %vm332_vm0, %v5542_v10  ;;  %416 = vst.msk [vmem:[#allocation2 + $0x51] sm:$0xff] %vm332_vm0, %v5545_v11  ;;  %v523_v38 = vpack.c.bf16 %v492_v23, %v491_v22  ;;  %v5697_v22 = vld [vmem:[%s5518_s21 + $0xe8] sm:$0xff]  ;;  %v5702_v23 = vld [vmem:[%s5518_s21 + $0xf0] sm:$0xff] }
  0x2f   : > { %7702 = vst [vmem:[#allocation12_spill] sm:$0xff] %v5554_v12  ;;  %7703 = vst [vmem:[#allocation13_spill] sm:$0xff] %v5557_v13 }
  0x30   : > { %417 = vst.msk [vmem:[#allocation2 + $0x61] sm:$0xff] %vm332_vm0, %v5554_v12  ;;  %7704 = vst [vmem:[#allocation14_spill] sm:$0xff] %v5562_v14 }
  0x31   : > { %7705 = vst [vmem:[#allocation15_spill] sm:$0xff] %v5565_v15  ;;  %418 = vst.msk [vmem:[#allocation2 + $0x69] sm:$0xff] %vm332_vm0, %v5557_v13  ;;  %v587_v30 = vld [vmem:[#allocation2 + $0x18] sm:$0xff] }
  0x32   : > { %419 = vst.msk [vmem:[#allocation2 + $0x79] sm:$0xff] %vm332_vm0, %v5562_v14  ;;  %420 = vst.msk [vmem:[#allocation2 + $0x81] sm:$0xff] %vm332_vm0, %v5565_v15  ;;  %v588_v31 = vld [vmem:[#allocation2 + $0x20] sm:$0xff] }
  0x33   : > { %7706 = vst [vmem:[#allocation16_spill] sm:$0xff] %v5574_v16  ;;  %7707 = vst [vmem:[#allocation17_spill] sm:$0xff] %v5577_v17  ;;  %v589_v32 = vld [vmem:[#allocation2 + $0x30] sm:$0xff]  ;;  %v5633_v33 = vpack.c.bf16 %v588_v31, %v587_v30  ;;  %v493_v35 = vld [vmem:[#allocation2 + $0x19] sm:$0xff] }
  0x34   : > { %7708 = vst [vmem:[#allocation18_spill] sm:$0xff] %v5580_v18  ;;  %421 = vst.msk [vmem:[#allocation2 + $0x91] sm:$0xff] %vm332_vm0, %v5574_v16  ;;  %v590_v34 = vld [vmem:[#allocation2 + $0x38] sm:$0xff]  ;;  %v494_v36 = vld [vmem:[#allocation2 + $0x21] sm:$0xff] }
  0x35   : > { %422 = vst.msk [vmem:[#allocation2 + $0x99] sm:$0xff] %vm332_vm0, %v5577_v17  ;;  %7709 = vst [vmem:[#allocation19_spill] sm:$0xff] %v5587_v19  ;;  %v5635_v37 = vpack.c.bf16 %v590_v34, %v589_v32  ;;  %940 = vrot.lane.b32.xlu0 %v5633_v33, %s5312_s24  ;;  %v524_v39 = vpack.c.bf16 %v494_v36, %v493_v35  ;;  %v591_v40 = vld [vmem:[#allocation2 + $0x48] sm:$0xff]  ;;  %v592_v41 = vld [vmem:[#allocation2 + $0x50] sm:$0xff] }
  0x36   : > { %423 = vst.msk [vmem:[#allocation2 + $0xa9] sm:$0xff] %vm332_vm0, %v5580_v18  ;;  %7710 = vst [vmem:[#allocation20_spill] sm:$0xff] %v5592_v20  ;;  %v495_v42 = vld [vmem:[#allocation2 + $0x31] sm:$0xff]  ;;  %v496_v43 = vld [vmem:[#allocation2 + $0x39] sm:$0xff]  ;;  %v5642_v44 = vpack.c.bf16 %v592_v41, %v591_v40 }
  0x37   : > { %7711 = vst [vmem:[#allocation21_spill] sm:$0xff] %v5595_v21  ;;  %424 = vst.msk [vmem:[#allocation2 + $0xb1] sm:$0xff] %vm332_vm0, %v5587_v19  ;;  %942 = vrot.lane.b32.xlu1 %v5635_v37, %s5312_s24  ;;  %v5645_v45 = vpack.c.bf16 %v496_v43, %v495_v42  ;;  %v593_v46 = vld [vmem:[#allocation2 + $0x60] sm:$0xff]  ;;  %v497_v48 = vld [vmem:[#allocation2 + $0x49] sm:$0xff] }
  0x38   : > { %425 = vst.msk [vmem:[#allocation2 + $0xc1] sm:$0xff] %vm332_vm0, %v5592_v20  ;;  %426 = vst.msk [vmem:[#allocation2 + $0xc9] sm:$0xff] %vm332_vm0, %v5595_v21  ;;  %v594_v47 = vld [vmem:[#allocation2 + $0x68] sm:$0xff]  ;;  %v498_v49 = vld [vmem:[#allocation2 + $0x51] sm:$0xff] }
  0x39   : > { %7712 = vst [vmem:[#allocation22_spill] sm:$0xff] %v5604_v24  ;;  %7713 = vst [vmem:[#allocation23_spill] sm:$0xff] %v5607_v25  ;;  %892 = vrot.lane.b32.xlu0 %v523_v38, %s5312_s24  ;;  %v5649_v50 = vpack.c.bf16 %v594_v47, %v593_v46  ;;  %v5653_v51 = vpack.c.bf16 %v498_v49, %v497_v48  ;;  %v595_v52 = vld [vmem:[#allocation2 + $0x78] sm:$0xff]  ;;  %v596_v53 = vld [vmem:[#allocation2 + $0x80] sm:$0xff] }
  0x3a   : > { %7714 = vst [vmem:[#allocation24_spill] sm:$0xff] %v5610_v26  ;;  %427 = vst.msk [vmem:[#allocation2 + $0xd9] sm:$0xff] %vm332_vm0, %v5604_v24  ;;  %v499_v54 = vld [vmem:[#allocation2 + $0x61] sm:$0xff]  ;;  %v500_v55 = vld [vmem:[#allocation2 + $0x69] sm:$0xff]  ;;  %v5663_v60 = vpack.c.bf16 %v596_v53, %v595_v52 }
  0x3b   : > { %428 = vst.msk [vmem:[#allocation2 + $0xe1] sm:$0xff] %vm332_vm0, %v5607_v25  ;;  %7715 = vst [vmem:[#allocation25_spill] sm:$0xff] %v5617_v27  ;;  %894 = vrot.lane.b32.xlu1 %v524_v39, %s5312_s24  ;;  %v597_v56 = vld [vmem:[#allocation2 + $0x90] sm:$0xff]  ;;  %v501_v61 = vld [vmem:[#allocation2 + $0x79] sm:$0xff]  ;;  %v5677_v2 = vpack.c.bf16 %v500_v55, %v499_v54 }
  0x3c   : > { %429 = vst.msk [vmem:[#allocation2 + $0xf1] sm:$0xff] %vm332_vm0, %v5610_v26  ;;  %7716 = vst [vmem:[#allocation26_spill] sm:$0xff] %v5622_v28  ;;  %v598_v57 = vld [vmem:[#allocation2 + $0x98] sm:$0xff]  ;;  %v502_v62 = vld [vmem:[#allocation2 + $0x81] sm:$0xff] }
  0x3d   : > { %7717 = vst [vmem:[#allocation27_spill] sm:$0xff] %v5625_v29  ;;  %430 = vst.msk [vmem:[#allocation2 + $0xf9] sm:$0xff] %vm332_vm0, %v5617_v27  ;;  %944 = vrot.lane.b32.xlu0 %v5642_v44, %s5312_s24  ;;  %v5705_v30 = vld [vmem:[%s5518_s21 + $0xf8] sm:$0xff]  ;;  %v5715_v31 = vpack.c.bf16 %v598_v57, %v597_v56  ;;  %v599_v32 = vld [vmem:[#allocation2 + $0xa8] sm:$0xff]  ;;  %v5719_v34 = vpack.c.bf16 %v502_v62, %v501_v61 }
  0x3e   : > { %431 = vst.msk [vmem:[#allocation2 + $0x109] sm:$0xff] %vm332_vm0, %v5622_v28  ;;  %432 = vst.msk [vmem:[#allocation2 + $0x111] sm:$0xff] %vm332_vm0, %v5625_v29  ;;  %v600_v35 = vld [vmem:[#allocation2 + $0xb0] sm:$0xff]  ;;  %v504_v38 = vld [vmem:[#allocation2 + $0x99] sm:$0xff] }
  0x3f   : > { %896 = vrot.lane.b32.xlu1 %v5645_v45, %s5312_s24  ;;  %7718 = vst [vmem:[#allocation28_spill] sm:$0xff] %v5656_v58  ;;  %7719 = vst [vmem:[#allocation29_spill] sm:$0xff] %v5659_v59  ;;  %v503_v36 = vld [vmem:[#allocation2 + $0x91] sm:$0xff]  ;;  %v5176_v39 = vld [vmem:[%s7651_s1 + $0x28] sm:$0xff]   ;;  %v5726_v40 = vpack.c.bf16 %v600_v35, %v599_v32 }
  0x40   : > { %433 = vst.msk [vmem:[#allocation2 + $0x121] sm:$0xff] %vm332_vm0, %v5656_v58  ;;  %434 = vst.msk [vmem:[#allocation2 + $0x129] sm:$0xff] %vm332_vm0, %v5659_v59  ;;  %4529 = vmatpush3.bf16.msra.mxu0 %v5176_v39  ;;  %v5730_v41 = vpack.c.bf16 %v504_v38, %v503_v36  ;;  %v601_v42 = vld [vmem:[#allocation2 + $0xc0] sm:$0xff]  ;;  %v602_v43 = vld [vmem:[#allocation2 + $0xc8] sm:$0xff] }
  0x41   : > { %946 = vrot.lane.b32.xlu0 %v5649_v50, %s5312_s24  ;;  %7720 = vst [vmem:[#allocation30_spill] sm:$0xff] %v5670_v63  ;;  %7721 = vst [vmem:[#allocation31_spill] sm:$0xff] %v5673_v1  ;;  %v505_v46 = vld [vmem:[#allocation2 + $0xa9] sm:$0xff]  ;;  %v506_v47 = vld [vmem:[#allocation2 + $0xb1] sm:$0xff]  ;;  %v5734_v48 = vpack.c.bf16 %v602_v43, %v601_v42 }
  0x42   : > { %435 = vst.msk [vmem:[#allocation2 + $0x139] sm:$0xff] %vm332_vm0, %v5670_v63  ;;  %436 = vst.msk [vmem:[#allocation2 + $0x141] sm:$0xff] %vm332_vm0, %v5673_v1  ;;  %v603_v49 = vld [vmem:[#allocation2 + $0xd8] sm:$0xff]  ;;  %v604_v52 = vld [vmem:[#allocation2 + $0xe0] sm:$0xff]  ;;  %v5738_v54 = vpack.c.bf16 %v506_v47, %v505_v46 }
  0x43   : > { %898 = vrot.lane.b32.xlu1 %v5653_v51, %s5312_s24  ;;  %7722 = vst [vmem:[#allocation32_spill] sm:$0xff] %v5684_v3  ;;  %7723 = vst [vmem:[#allocation33_spill] sm:$0xff] %v5687_v4  ;;  %v507_v53 = vld [vmem:[#allocation2 + $0xc1] sm:$0xff]  ;;  %v508_v55 = vld [vmem:[#allocation2 + $0xc9] sm:$0xff]  ;;  %v627_v32 = vpack.c.bf16 %v604_v52, %v603_v49 }
  0x44   : > { %7724 = vst [vmem:[#allocation34_spill] sm:$0xff] %v5690_v5  ;;  %437 = vst.msk [vmem:[#allocation2 + $0x151] sm:$0xff] %vm332_vm0, %v5684_v3  ;;  %v5177_v56 = vld [vmem:[%s7651_s1 + $0x60] sm:$0xff]   ;;  %v605_v57 = vld [vmem:[#allocation2 + $0xf0] sm:$0xff]  ;;  %v5753_v36 = vpack.c.bf16 %v508_v55, %v507_v53 }
  0x45   : > { %438 = vst.msk [vmem:[#allocation2 + $0x159] sm:$0xff] %vm332_vm0, %v5687_v4  ;;  %7725 = vst [vmem:[#allocation35_spill] sm:$0xff] %v5697_v22  ;;  %948 = vrot.lane.b32.xlu0 %v5663_v60, %s5312_s24  ;;  %v606_v61 = vld [vmem:[#allocation2 + $0xf8] sm:$0xff]  ;;  %v5178_v62 = vld [vmem:[%s7651_s1 + $0x20] sm:$0xff]   ;;  %4530 = vmatprep.subr.bf16.mxu0 %v5177_v56 }
  0x46   : > { %439 = vst.msk [vmem:[#allocation2 + $0x169] sm:$0xff] %vm332_vm0, %v5690_v5  ;;  %7726 = vst [vmem:[#allocation36_spill] sm:$0xff] %v5702_v23  ;;  %v5179_v35 = vld [vmem:[%s7651_s1 + $0x58] sm:$0xff]   ;;  %v510_v39 = vld [vmem:[#allocation2 + $0xe1] sm:$0xff]  ;;  %4531 = vmatpush3.bf16.msra.mxu0 %v5178_v62  ;;  %v628_v49 = vpack.c.bf16 %v606_v61, %v605_v57 }
  0x47   : > { %7727 = vst [vmem:[#allocation37_spill] sm:$0xff] %v5705_v30  ;;  %440 = vst.msk [vmem:[#allocation2 + $0x171] sm:$0xff] %vm332_vm0, %v5697_v22  ;;  %900 = vrot.lane.b32.xlu1 %v5677_v2, %s5312_s24  ;;  %v509_v38 = vld [vmem:[#allocation2 + $0xd9] sm:$0xff]  ;;  %4532 = vmatprep.subr.bf16.mxu0 %v5179_v35  ;;  %v5181_v43 = vld [vmem:[%s7651_s1 + $0x50] sm:$0xff]  }
  0x48   : > { %441 = vst.msk [vmem:[#allocation2 + $0x181] sm:$0xff] %vm332_vm0, %v5702_v23  ;;  %442 = vst.msk [vmem:[#allocation2 + $0x189] sm:$0xff] %vm332_vm0, %v5705_v30  ;;  %v5180_v42 = vld [vmem:[%s7651_s1 + $0x18] sm:$0xff]   ;;  %v607_v46 = vld [vmem:[#allocation2 + $0x108] sm:$0xff]  ;;  %v5764_v53 = vpack.c.bf16 %v510_v39, %v509_v38 }
  0x49   : > { %950 = vrot.lane.b32.xlu0 %v5715_v31, %s5312_s24  ;;  %v608_v47 = vld [vmem:[#allocation2 + $0x110] sm:$0xff]  ;;  %v512_v56 = vld [vmem:[#allocation2 + $0xf9] sm:$0xff]  ;;  %v5183_v62 = vld [vmem:[%s7651_s1 + $0x48] sm:$0xff]  }
  0x4a   : > { %v511_v52 = vld [vmem:[#allocation2 + $0xf1] sm:$0xff]  ;;  %4533 = vmatpush3.bf16.msra.mxu0 %v5180_v42  ;;  %v629_v57 = vpack.c.bf16 %v608_v47, %v607_v46  ;;  %v609_v61 = vld [vmem:[#allocation2 + $0x120] sm:$0xff]  ;;  %v5184_v38 = vld [vmem:[%s7651_s1 + $0x8] sm:$0xff]  }
  0x4b   : > { %902 = vrot.lane.b32.xlu1 %v5719_v34, %s5312_s24  ;;  %v5182_v55 = vld [vmem:[%s7651_s1 + $0x10] sm:$0xff]   ;;  %4534 = vmatprep.subr.bf16.mxu0 %v5181_v43  ;;  %v5775_v35 = vpack.c.bf16 %v512_v56, %v511_v52  ;;  %v5185_v43 = vld [vmem:[%s7651_s1 + $0x40] sm:$0xff]   ;;  %v611_v47 = vld [vmem:[#allocation2 + $0x138] sm:$0xff] }
  0x4c   : > { %v513_v39 = vld [vmem:[#allocation2 + $0x109] sm:$0xff]  ;;  %v514_v42 = vld [vmem:[#allocation2 + $0x111] sm:$0xff]  ;;  %v515_v0 = vld [vmem:[#allocation2 + $0x121] sm:$0xff] }
  0x4d   : > { %952 = vrot.lane.b32.xlu0 %v5726_v40, %s5312_s24  ;;  %v516_v52 = vld [vmem:[#allocation2 + $0x129] sm:$0xff]  ;;  %v5186_v56 = vld [vmem:[%s7651_s1] sm:$0xff]  }
  0x4e   : > { %4535 = vmatpush3.bf16.msra.mxu0 %v5182_v55  ;;  %v5786_v55 = vpack.c.bf16 %v514_v42, %v513_v39  ;;  %v614_v39 = vld [vmem:[#allocation2 + $0x158] sm:$0xff]  ;;  %v5805_v42 = vpack.c.bf16 %v516_v52, %v515_v0  ;;  %v5191_v30 = vld [vmem:[%s7651_s1 + $0xf0] sm:$0xff]   ;;  %v518_v23 = vld [vmem:[#allocation2 + $0x141] sm:$0xff] }
  0x4f   : > { %904 = vrot.lane.b32.xlu1 %v5730_v41, %s5312_s24  ;;  %4536 = vmatprep.subr.bf16.mxu0 %v5183_v62  ;;  %v5794_v62 = vld [vmem:[%s7651_s1 + $0x118] sm:$0xff]   ;;  %v615_v22 = vld [vmem:[#allocation2 + $0x168] sm:$0xff]  ;;  %v616_v52 = vld [vmem:[#allocation2 + $0x170] sm:$0xff] }
  0x50   : > { %v5196_v5 = vld [vmem:[%s7651_s1 + $0xa0] sm:$0xff]   ;;  %v711_v1 = vld [vmem:[#allocation2 + $0x16a] sm:$0xff]  ;;  %v712_v63 = vld [vmem:[#allocation2 + $0x172] sm:$0xff] }
  0x51   : > { %954 = vrot.lane.b32.xlu0 %v5734_v48, %s5312_s24  ;;  %v638_v28 = vld [vmem:[#allocation2 + $0x39] sm:$0xff] }
  0x52   : > { %4537 = vmatpush3.bf16.msra.mxu0 %v5184_v38  ;;  %v736_v26 = vld [vmem:[#allocation2 + $0x60] sm:$0xff] }
  0x53   : > { %906 = vrot.lane.b32.xlu1 %v5738_v54, %s5312_s24  ;;  %4538 = vmatprep.subr.bf16.mxu0 %v5185_v43  ;;  %v517_v43 = vld [vmem:[#allocation2 + $0x139] sm:$0xff] }
  0x55   : > { %956 = vrot.lane.b32.xlu0 %v627_v32, %s5312_s24  ;;  %v610_v32 = vld [vmem:[#allocation2 + $0x128] sm:$0xff] }
  0x56   : > { %v630_v46 = vpack.c.bf16 %v610_v32, %v609_v61  ;;  %v613_v61 = vld [vmem:[#allocation2 + $0x150] sm:$0xff]  ;;  %v5189_v32 = vld [vmem:[%s7651_s1 + $0xb8] sm:$0xff]   ;;  %4539 = vmatpush3.bf16.msra.mxu0 %v5186_v56 }
  0x57   : > { %908 = vrot.lane.b32.xlu1 %v5753_v36, %s5312_s24  ;;  %5023 = vmatprep.subr.bf16.mxu0 %v5794_v62  ;;  %v632_v0 = vpack.c.bf16 %v614_v39, %v613_v61  ;;  %v519_v56 = vld [vmem:[#allocation2 + $0x151] sm:$0xff]  ;;  %v5195_v61 = vld [vmem:[%s7651_s1 + $0xe0] sm:$0xff]   ;;  %v633_v39 = vpack.c.bf16 %v616_v52, %v615_v22 }
  0x58   : > { %v683_v52 = vld [vmem:[#allocation2 + $0x1a] sm:$0xff] }
  0x59   : > { %958 = vrot.lane.b32.xlu0 %v628_v49, %s5312_s24  ;;  %v612_v49 = vld [vmem:[#allocation2 + $0x140] sm:$0xff] }
  0x5a   : > { %v631_v38 = vpack.c.bf16 %v612_v49, %v611_v47  ;;  %v5193_v47 = vld [vmem:[%s7651_s1 + $0xe8] sm:$0xff]   ;;  %v5820_v49 = vpack.c.bf16 %v518_v23, %v517_v43 }
  0x5b   : > { %910 = vrot.lane.b32.xlu1 %v5764_v53, %s5312_s24  ;;  %v521_v23 = vld [vmem:[#allocation2 + $0x169] sm:$0xff] }
  0x5d   : > { %960 = vrot.lane.b32.xlu0 %v629_v57, %s5312_s24  ;;  %v5188_v57 = vld [vmem:[%s7651_s1 + $0xf8] sm:$0xff]  }
  0x5e   : > { %4636 = vmatprep.subr.bf16.mxu1 %v5188_v57  ;;  %v520_v57 = vld [vmem:[#allocation2 + $0x159] sm:$0xff] }
  0x5f   : > { %912 = vrot.lane.b32.xlu1 %v5775_v35, %s5312_s24  ;;  %4637 = vmatpush3.bf16.msra.mxu1 %v5189_v32  ;;  %v617_v32 = vld [vmem:[#allocation2 + $0x180] sm:$0xff]  ;;  %v5831_v43 = vpack.c.bf16 %v520_v57, %v519_v56  ;;  %v5198_v57 = vld [vmem:[%s7651_s1 + $0x98] sm:$0xff]  }
  0x60   : > { %4638 = vmatprep.subr.bf16.mxu1 %v5191_v30  ;;  %v5194_v30 = vld [vmem:[%s7651_s1 + $0xa8] sm:$0xff]  }
  0x61   : > { %962 = vrot.lane.b32.xlu0 %v630_v46, %s5312_s24  ;;  %v5192_v46 = vld [vmem:[%s7651_s1 + $0xb0] sm:$0xff]   ;;  %v684_v56 = vld [vmem:[#allocation2 + $0x22] sm:$0xff] }
  0x63   : > { %914 = vrot.lane.b32.xlu1 %v5786_v55, %s5312_s24  ;;  %4639 = vmatpush3.bf16.msra.mxu1 %v5192_v46  ;;  %v522_v46 = vld [vmem:[#allocation2 + $0x171] sm:$0xff] }
  0x64   : > { %4640 = vmatprep.subr.bf16.mxu1 %v5193_v47  ;;  %v5197_v47 = vld [vmem:[%s7651_s1 + $0xd8] sm:$0xff]  }
  0x65   : > { %964 = vrot.lane.b32.xlu0 %v631_v38, %s5312_s24  ;;  %v618_v38 = vld [vmem:[#allocation2 + $0x188] sm:$0xff] }
  0x66   : > { %v634_v22 = vpack.c.bf16 %v618_v38, %v617_v32  ;;  %v5853_v32 = vpack.c.bf16 %v684_v56, %v683_v52  ;;  %v685_v38 = vld [vmem:[#allocation2 + $0x32] sm:$0xff]  ;;  %v5203_v52 = vld [vmem:[%s7651_s1 + $0xc0] sm:$0xff]  }
  0x67   : > { %916 = vrot.lane.b32.xlu1 %v5805_v42, %s5312_s24  ;;  %4641 = vmatpush3.bf16.msra.mxu1 %v5194_v30  ;;  %v5199_v30 = vld [vmem:[%s7651_s1 + $0xd0] sm:$0xff]  }
  0x68   : > { %4642 = vmatprep.subr.bf16.mxu1 %v5195_v61  ;;  %v686_v61 = vld [vmem:[#allocation2 + $0x3a] sm:$0xff] }
  0x69   : > { %966 = vrot.lane.b32.xlu0 %v632_v0, %s5312_s24  ;;  %v5842_v0 = vpack.c.bf16 %v522_v46, %v521_v23  ;;  %v5865_v23 = vpack.c.bf16 %v686_v61, %v685_v38  ;;  %v687_v46 = vld [vmem:[#allocation2 + $0x4a] sm:$0xff]  ;;  %v691_v38 = vld [vmem:[#allocation2 + $0x7a] sm:$0xff]  ;;  %v692_v61 = vld [vmem:[#allocation2 + $0x82] sm:$0xff] }
  0x6b   : > { %918 = vrot.lane.b32.xlu1 %v5820_v49, %s5312_s24  ;;  %4643 = vmatpush3.bf16.msra.mxu1 %v5196_v5  ;;  %v5200_v5 = vld [vmem:[%s7651_s1 + $0x90] sm:$0xff]  }
  0x6c   : > { %4644 = vmatprep.subr.bf16.mxu1 %v5197_v47  ;;  %v688_v47 = vld [vmem:[#allocation2 + $0x52] sm:$0xff] }
  0x6d   : > { %968 = vrot.lane.b32.xlu0 %v633_v39, %s5312_s24  ;;  %v5201_v39 = vld [vmem:[%s7651_s1 + $0xc8] sm:$0xff]   ;;  %v5877_v56 = vpack.c.bf16 %v688_v47, %v687_v46  ;;  %v5892_v46 = vpack.c.bf16 %v692_v61, %v691_v38  ;;  %v702_v38 = vld [vmem:[#allocation2 + $0xfa] sm:$0xff] }
  0x6f   : > { %920 = vrot.lane.b32.xlu1 %v5831_v43, %s5312_s24  ;;  %4645 = vmatpush3.bf16.msra.mxu1 %v5198_v57  ;;  %v690_v57 = vld [vmem:[#allocation2 + $0x6a] sm:$0xff] }
  0x70   : > { %4646 = vmatprep.subr.bf16.mxu1 %v5199_v30  ;;  %v5204_v30 = vld [vmem:[%s7651_s1 + $0x80] sm:$0xff]  }
  0x71   : > { %970 = vrot.lane.b32.xlu0 %v634_v22, %s5312_s24  ;;  %v5202_v22 = vld [vmem:[%s7651_s1 + $0x88] sm:$0xff]  }
  0x73   : > { %922 = vrot.lane.b32.xlu1 %v5842_v0, %s5312_s24  ;;  %4647 = vmatpush3.bf16.msra.mxu1 %v5200_v5  ;;  %v693_v5 = vld [vmem:[#allocation2 + $0x92] sm:$0xff] }
  0x74   : > { %4648 = vmatprep.subr.bf16.mxu1 %v5201_v39  ;;  %v694_v39 = vld [vmem:[#allocation2 + $0x9a] sm:$0xff] }
  0x75   : > { %1036 = vrot.lane.b32.xlu0 %v5645_v45, %s5312_s24  ;;  %v689_v45 = vld [vmem:[#allocation2 + $0x62] sm:$0xff]  ;;  %v5898_v47 = vpack.c.bf16 %v694_v39, %v693_v5  ;;  %v704_v39 = vld [vmem:[#allocation2 + $0x112] sm:$0xff] }
  0x77   : > { %988 = vrot.lane.b32.xlu1 %v5853_v32, %s5312_s24  ;;  %4649 = vmatpush3.bf16.msra.mxu1 %v5202_v22  ;;  %v696_v22 = vld [vmem:[#allocation2 + $0xb2] sm:$0xff] }
  0x78   : > { %4650 = vmatprep.subr.bf16.mxu1 %v5203_v52 }
  0x79   : > { %1038 = vrot.lane.b32.xlu0 %v5653_v51, %s5312_s24  ;;  %v5886_v51 = vpack.c.bf16 %v690_v57, %v689_v45  ;;  %v698_v45 = vld [vmem:[#allocation2 + $0xca] sm:$0xff] }
  0x7b   : > { %990 = vrot.lane.b32.xlu1 %v5865_v23, %s5312_s24  ;;  %4651 = vmatpush3.bf16.msra.mxu1 %v5204_v30  ;;  %v700_v30 = vld [vmem:[#allocation2 + $0xe2] sm:$0xff] }
  0x7d   : > { %1040 = vrot.lane.b32.xlu0 %v5677_v2, %s5312_s24  ;;  %v695_v2 = vld [vmem:[#allocation2 + $0xaa] sm:$0xff] }
  0x7e   : > { %v5904_v52 = vpack.c.bf16 %v696_v22, %v695_v2  ;;  %v706_v22 = vld [vmem:[#allocation2 + $0x12a] sm:$0xff] }
  0x7f   : > { %992 = vrot.lane.b32.xlu1 %v5877_v56, %s5312_s24 }
  0x81   : > { %1042 = vrot.lane.b32.xlu0 %v5719_v34, %s5312_s24  ;;  %v697_v34 = vld [vmem:[#allocation2 + $0xc2] sm:$0xff] }
  0x82   : > { %v5910_v57 = vpack.c.bf16 %v698_v45, %v697_v34  ;;  %v707_v34 = vld [vmem:[#allocation2 + $0x13a] sm:$0xff]  ;;  %v708_v45 = vld [vmem:[#allocation2 + $0x142] sm:$0xff] }
  0x83   : > { %994 = vrot.lane.b32.xlu1 %v5886_v51, %s5312_s24 }
  0x85   : > { %1044 = vrot.lane.b32.xlu0 %v5730_v41, %s5312_s24  ;;  %v699_v41 = vld [vmem:[#allocation2 + $0xda] sm:$0xff] }
  0x86   : > { %v5916_v61 = vpack.c.bf16 %v700_v30, %v699_v41  ;;  %v539_v41 = vld [vmem:[#allocation2 + $0x2] sm:$0xff]  ;;  %v540_v30 = vld [vmem:[#allocation2 + $0xa] sm:$0xff] }
  0x87   : > { %996 = vrot.lane.b32.xlu1 %v5892_v46, %s5312_s24 }
  0x89   : > { %1046 = vrot.lane.b32.xlu0 %v5738_v54, %s5312_s24  ;;  %v701_v54 = vld [vmem:[#allocation2 + $0xf2] sm:$0xff] }
  0x8a   : > { %v5922_v5 = vpack.c.bf16 %v702_v38, %v701_v54  ;;  %v709_v54 = vld [vmem:[#allocation2 + $0x152] sm:$0xff]  ;;  %v710_v38 = vld [vmem:[#allocation2 + $0x15a] sm:$0xff] }
  0x8b   : > { %998 = vrot.lane.b32.xlu1 %v5898_v47, %s5312_s24 }
  0x8d   : > { %1048 = vrot.lane.b32.xlu0 %v5753_v36, %s5312_s24  ;;  %v703_v36 = vld [vmem:[#allocation2 + $0x10a] sm:$0xff] }
  0x8e   : > { %v5928_v2 = vpack.c.bf16 %v704_v39, %v703_v36  ;;  %v443_v36 = vld [vmem:[#allocation2] sm:$0xff]  ;;  %v444_v39 = vld [vmem:[#allocation2 + $0x8] sm:$0xff] }
  0x8f   : > { %1000 = vrot.lane.b32.xlu1 %v5904_v52, %s5312_s24 }
  0x91   : > { %1050 = vrot.lane.b32.xlu0 %v5764_v53, %s5312_s24  ;;  %v705_v53 = vld [vmem:[#allocation2 + $0x122] sm:$0xff] }
  0x93   : > { %1002 = vrot.lane.b32.xlu1 %v5910_v57, %s5312_s24 }
  0x95   : > { %1052 = vrot.lane.b32.xlu0 %v5775_v35, %s5312_s24  ;;  %v5934_v35 = vpack.c.bf16 %v706_v22, %v705_v53  ;;  %v5946_v53 = vpack.c.bf16 %v710_v38, %v709_v54  ;;  %v808_v22 = vld [vmem:[#allocation2 + $0x181] sm:$0xff] }
  0x97   : > { %1004 = vrot.lane.b32.xlu1 %v5916_v61, %s5312_s24 }
  0x99   : > { %1054 = vrot.lane.b32.xlu0 %v5786_v55, %s5312_s24  ;;  %v5940_v55 = vpack.c.bf16 %v708_v45, %v707_v34  ;;  %v475_v45 = vpack.c.bf16 %v444_v39, %v443_v36  ;;  %v713_v39 = vld [vmem:[#allocation2 + $0x182] sm:$0xff] }
  0x9b   : > { %1006 = vrot.lane.b32.xlu1 %v5922_v5, %s5312_s24 }
  0x9d   : > { %1056 = vrot.lane.b32.xlu0 %v5805_v42, %s5312_s24  ;;  %v571_v42 = vpack.c.bf16 %v540_v30, %v539_v41  ;;  %v811_v30 = vld [vmem:[#allocation2 + $0x1a1] sm:$0xff] }
  0x9f   : > { %1008 = vrot.lane.b32.xlu1 %v5928_v2, %s5312_s24 }
  0xa1   : > { %1058 = vrot.lane.b32.xlu0 %v5820_v49, %s5312_s24  ;;  %v809_v49 = vld [vmem:[#allocation2 + $0x189] sm:$0xff] }
  0xa2   : > { %v5951_v41 = vpack.c.bf16 %v809_v49, %v808_v22  ;;  %v714_v22 = vld [vmem:[#allocation2 + $0x18a] sm:$0xff] }
  0xa3   : > { %1010 = vrot.lane.b32.xlu1 %v5934_v35, %s5312_s24 }
  0xa5   : > { %1060 = vrot.lane.b32.xlu0 %v5831_v43, %s5312_s24  ;;  %v810_v43 = vld [vmem:[#allocation2 + $0x199] sm:$0xff] }
  0xa6   : > { %v827_v49 = vpack.c.bf16 %v811_v30, %v810_v43  ;;  %v5206_v43 = vld [vmem:[%s7651_s1 + $0x100] sm:$0xff]  }
  0xa7   : > { %1012 = vrot.lane.b32.xlu1 %v5940_v55, %s5312_s24  ;;  %v941_v4 = vpop.permute.xlu0 %940 }
  0xa8   : > { %v1134_v34 = vsel %vm332_vm0, %v571_v42, %v941_v4  ;;  %v5190_v4 = vld [vmem:[%s7651_s1 + $0x110] sm:$0xff]   ;;  %v5960_v42 = vpack.c.bf16 %v712_v63, %v711_v1  ;;  %v5205_v63 = vld [vmem:[%s7651_s1 + $0x108] sm:$0xff]   ;;  %v5971_v1 = vpack.c.bf16 %v714_v22, %v713_v39 }
  0xa9   : > { %v943_v3 = vpop.permute.xlu1 %942  ;;  %1699 = vmatprep.mubr.bf16.mxu0 %v1134_v34  ;;  %1062 = vrot.lane.b32.xlu0 %v5842_v0, %s5312_s24 }
  0xaa   : > { %v1138_v38 = vsel %vm332_vm0, %v5853_v32, %v943_v3 }
  0xab   : > { %1014 = vrot.lane.b32.xlu1 %v5946_v53, %s5312_s24  ;;  %v893_v54 = vpop.permute.xlu0 %892 }
  0xac   : > { %v1070_v0 = vsel %vm332_vm0, %v475_v45, %v893_v54 }
  0xad   : > { %v895_v36 = vpop.permute.xlu1 %894  ;;  %1700 = vmatmul.mubr.bf16.vlgmr.msra.gmra.mxu0 %v1070_v0  ;;  %1064 = vrot.lane.b32.xlu0 %v5951_v41, %s5312_s24 }
  0xae   : > { %5024 = vmatpush3.bf16.msra.mxu0 %v5794_v62  ;;  %1707 = vmatprep.mubr.bf16.mxu0 %v1138_v38  ;;  %v1074_v34 = vsel %vm332_vm0, %v5633_v33, %v895_v36 }
  0xaf   : > { %v945_v3 = vpop.permute.xlu0 %944  ;;  %5025 = vmatprep.subr.bf16.mxu0 %v5190_v4  ;;  %1016 = vrot.lane.b32.xlu1 %v5960_v42, %s5312_s24 }
  0xb0   : > { %v1142_v45 = vsel %vm332_vm0, %v5865_v23, %v945_v3 }
  0xb1   : > { %v897_v32 = vpop.permute.xlu1 %896  ;;  %1066 = vrot.lane.b32.xlu0 %v827_v49, %s5312_s24 }
  0xb2   : > { %5026 = vmatpush3.bf16.msra.mxu0 %v5190_v4  ;;  %v1078_v38 = vsel %vm332_vm0, %v5635_v37, %v897_v32 }
  0xb3   : > { %v947_v62 = vpop.permute.xlu0 %946  ;;  %5027 = vmatprep.subr.bf16.mxu0 %v5205_v63  ;;  %1018 = vrot.lane.b32.xlu1 %v5971_v1, %s5312_s24 }
  0xb4   : > { %v1146_v4 = vsel %vm332_vm0, %v5877_v56, %v947_v62 }
  0xb5   : > { %v899_v30 = vpop.permute.xlu1 %898  ;;  %1708 = vmatmul.mubr.bf16.gmra.mxu0 %v1074_v34 }
  0xb6   : > { %1715 = vmatprep.mubr.bf16.mxu0 %v1142_v45  ;;  %5028 = vmatpush3.bf16.msra.mxu0 %v5205_v63  ;;  %v1082_v22 = vsel %vm332_vm0, %v5642_v44, %v899_v30 }
  0xb7   : > { %v949_v54 = vpop.permute.xlu0 %948  ;;  %5029 = vmatprep.subr.bf16.mxu0 %v5206_v43 }
  0xb8   : > { %v1150_v3 = vsel %vm332_vm0, %v5886_v51, %v949_v54 }
  0xb9   : > { %v901_v33 = vpop.permute.xlu1 %900 }
  0xba   : > { %5030 = vmatpush3.bf16.msra.mxu0 %v5206_v43  ;;  %v1086_v56 = vsel %vm332_vm0, %v5649_v50, %v901_v33 }
  0xbb   : > { %v951_v23 = vpop.permute.xlu0 %950 }
  0xbc   : > { %v1154_v62 = vsel %vm332_vm0, %v5892_v46, %v951_v23 }
  0xbd   : > { %v903_v36 = vpop.permute.xlu1 %902  ;;  %1716 = vmatmul.mubr.bf16.gmra.mxu0 %v1078_v38 }
  0xbe   : > { %1723 = vmatprep.mubr.bf16.mxu0 %v1146_v4  ;;  %v1090_v51 = vsel %vm332_vm0, %v5663_v60, %v903_v36 }
  0xbf   : > { %v953_v0 = vpop.permute.xlu0 %952 }
  0xc0   : > { %v1158_v50 = vsel %vm332_vm0, %v5898_v47, %v953_v0  ;;  %v732_v0 = vld [vmem:[#allocation2 + $0x30] sm:$0xff] }
  0xc1   : > { %v905_v39 = vpop.permute.xlu1 %904 }
  0xc2   : > { %v1094_v38 = vsel %vm332_vm0, %v5715_v31, %v905_v39  ;;  %v636_v31 = vld [vmem:[#allocation2 + $0x21] sm:$0xff] }
  0xc3   : > { %v955_v49 = vpop.permute.xlu0 %954 }
  0xc4   : > { %v1162_v60 = vsel %vm332_vm0, %v5904_v52, %v955_v49 }
  0xc5   : > { %v907_v63 = vpop.permute.xlu1 %906  ;;  %1724 = vmatmul.mubr.bf16.gmra.mxu0 %v1082_v22  ;;  %v733_v22 = vld [vmem:[#allocation2 + $0x38] sm:$0xff] }
  0xc6   : > { %1731 = vmatprep.mubr.bf16.mxu0 %v1150_v3  ;;  %v1098_v3 = vsel %vm332_vm0, %v5726_v40, %v907_v63  ;;  %v637_v63 = vld [vmem:[#allocation2 + $0x31] sm:$0xff] }
  0xc7   : > { %v957_v37 = vpop.permute.xlu0 %956 }
  0xc8   : > { %v1166_v49 = vsel %vm332_vm0, %v5910_v57, %v957_v37  ;;  %v737_v37 = vld [vmem:[#allocation2 + $0x68] sm:$0xff] }
  0xc9   : > { %v909_v32 = vpop.permute.xlu1 %908 }
  0xcb   : > { %v959_v34 = vpop.permute.xlu0 %958 }
  0xcd   : > { %v5995_v45 = vpop.permute.xlu1 %910  ;;  %1732 = vmatmul.mubr.bf16.gmra.mxu0 %v1086_v56  ;;  %v635_v56 = vld [vmem:[#allocation2 + $0x19] sm:$0xff] }
  0xce   : > { %1739 = vmatprep.mubr.bf16.mxu0 %v1154_v62 }
  0xcf   : > { %v5997_v44 = vpop.permute.xlu0 %960 }
  0xd1   : > { %v5999_v43 = vpop.permute.xlu1 %912 }
  0xd3   : > { %v6003_v30 = vpop.permute.xlu0 %962 }
  0xd5   : > { %v6007_v54 = vpop.permute.xlu1 %914  ;;  %1740 = vmatmul.mubr.bf16.gmra.mxu0 %v1090_v51  ;;  %v764_v51 = vpack.c.bf16 %v733_v22, %v732_v0  ;;  %v1102_v0 = vsel %vm332_vm0, %v5734_v48, %v909_v32  ;;  %v640_v32 = vld [vmem:[#allocation2 + $0x51] sm:$0xff] }
  0xd6   : > { %1747 = vmatprep.mubr.bf16.mxu0 %v1158_v50  ;;  %v667_v50 = vpack.c.bf16 %v636_v31, %v635_v56  ;;  %v1170_v56 = vsel %vm332_vm0, %v5916_v61, %v959_v34  ;;  %v461_v31 = vld [vmem:[#allocation2 + $0xd8] sm:$0xff]  ;;  %v739_v34 = vld [vmem:[#allocation2 + $0x80] sm:$0xff] }
  0xd7   : > { %v6009_v46 = vpop.permute.xlu0 %964 }
  0xd9   : > { %v6011_v33 = vpop.permute.xlu1 %916 }
  0xdb   : > { %v6015_v23 = vpop.permute.xlu0 %966 }
  0xdd   : > { %v6019_v4 = vpop.permute.xlu1 %918  ;;  %1748 = vmatmul.mubr.bf16.gmra.mxu0 %v1094_v38  ;;  %v734_v38 = vld [vmem:[#allocation2 + $0x48] sm:$0xff] }
  0xde   : > { %1755 = vmatprep.mubr.bf16.mxu0 %v1162_v60  ;;  %v735_v60 = vld [vmem:[#allocation2 + $0x50] sm:$0xff] }
  0xdf   : > { %v6021_v47 = vpop.permute.xlu0 %968  ;;  %v765_v40 = vpack.c.bf16 %v735_v60, %v734_v38  ;;  %v766_v38 = vpack.c.bf16 %v737_v37, %v736_v26  ;;  %v464_v37 = vld [vmem:[#allocation2 + $0xf8] sm:$0xff] }
  0xe1   : > { %v6023_v36 = vpop.permute.xlu1 %920 }
  0xe3   : > { %v6027_v39 = vpop.permute.xlu0 %970 }
  0xe5   : > { %v6031_v62 = vpop.permute.xlu1 %922  ;;  %1756 = vmatmul.mubr.bf16.gmra.mxu0 %v1098_v3  ;;  %v668_v3 = vpack.c.bf16 %v638_v28, %v637_v63  ;;  %v639_v28 = vld [vmem:[#allocation2 + $0x49] sm:$0xff] }
  0xe6   : > { %1763 = vmatprep.mubr.bf16.mxu0 %v1166_v49  ;;  %v462_v49 = vld [vmem:[#allocation2 + $0xe0] sm:$0xff]  ;;  %v669_v26 = vpack.c.bf16 %v640_v32, %v639_v28  ;;  %v463_v63 = vld [vmem:[#allocation2 + $0xf0] sm:$0xff] }
  0xe7   : > { %v1037_v59 = vpop.permute.xlu0 %1036  ;;  %v466_v28 = vld [vmem:[#allocation2 + $0x110] sm:$0xff] }
  0xe8   : > { %v1262_v29 = vsel %vm332_vm0, %v764_v51, %v1037_v59 }
  0xe9   : > { %v989_v58 = vpop.permute.xlu1 %988  ;;  %1860 = vmatprep.mubr.bf16.mxu1 %v1262_v29  ;;  %v6040_v29 = vpack.c.bf16 %v462_v49, %v461_v31 }
  0xea   : > { %v1198_v27 = vsel %vm332_vm0, %v667_v50, %v989_v58  ;;  %v738_v50 = vld [vmem:[#allocation2 + $0x78] sm:$0xff] }
  0xeb   : > { %1861 = vmatmul.mubr.bf16.vlgmr.msra.gmra.mxu1 %v1198_v27  ;;  %v1039_v22 = vpop.permute.xlu0 %1038  ;;  %v1106_v60 = vsel %vm332_vm0, %v6040_v29, %v5995_v45  ;;  %v641_v45 = vld [vmem:[#allocation2 + $0x61] sm:$0xff] }
  0xec   : > { %v1266_v51 = vsel %vm332_vm0, %v765_v40, %v1039_v22  ;;  %v1174_v40 = vsel %vm332_vm0, %v5922_v5, %v5997_v44  ;;  %v767_v22 = vpack.c.bf16 %v739_v34, %v738_v50 }
  0xed   : > { %v991_v59 = vpop.permute.xlu1 %990  ;;  %1764 = vmatmul.mubr.bf16.gmra.mxu0 %v1102_v0  ;;  %1868 = vmatprep.mubr.bf16.mxu1 %v1266_v51  ;;  %v740_v51 = vld [vmem:[#allocation2 + $0x90] sm:$0xff] }
  0xee   : > { %1771 = vmatprep.mubr.bf16.mxu0 %v1170_v56  ;;  %v1202_v27 = vsel %vm332_vm0, %v668_v3, %v991_v59  ;;  %v6050_v56 = vpack.c.bf16 %v464_v37, %v463_v63  ;;  %v642_v59 = vld [vmem:[#allocation2 + $0x69] sm:$0xff]  ;;  %v644_v63 = vld [vmem:[#allocation2 + $0x81] sm:$0xff] }
  0xef   : > { %v1041_v58 = vpop.permute.xlu0 %1040  ;;  %v742_v37 = vld [vmem:[#allocation2 + $0xa8] sm:$0xff] }
  0xf0   : > { %v1270_v48 = vsel %vm332_vm0, %v766_v38, %v1041_v58  ;;  %v741_v38 = vld [vmem:[#allocation2 + $0x98] sm:$0xff]  ;;  %v1110_v44 = vsel %vm332_vm0, %v6050_v56, %v5999_v43  ;;  %v1178_v58 = vsel %vm332_vm0, %v5928_v2, %v6003_v30 }
  0xf1   : > { %v993_v0 = vpop.permute.xlu1 %992  ;;  %v768_v50 = vpack.c.bf16 %v741_v38, %v740_v51  ;;  %v643_v43 = vld [vmem:[#allocation2 + $0x79] sm:$0xff] }
  0xf2   : > { %v1206_v31 = vsel %vm332_vm0, %v669_v26, %v993_v0  ;;  %v743_v0 = vld [vmem:[#allocation2 + $0xb0] sm:$0xff] }
  0xf3   : > { %1869 = vmatmul.mubr.bf16.gmra.mxu1 %v1202_v27  ;;  %v1043_v3 = vpop.permute.xlu0 %1042  ;;  %v670_v27 = vpack.c.bf16 %v642_v59, %v641_v45  ;;  %v769_v59 = vpack.c.bf16 %v743_v0, %v742_v37 }
  0xf4   : > { %1876 = vmatprep.mubr.bf16.mxu1 %v1270_v48  ;;  %v1274_v49 = vsel %vm332_vm0, %v767_v22, %v1043_v3  ;;  %v465_v48 = vld [vmem:[#allocation2 + $0x108] sm:$0xff]  ;;  %v671_v22 = vpack.c.bf16 %v644_v63, %v643_v43  ;;  %v1182_v3 = vsel %vm332_vm0, %v5934_v35, %v6009_v46 }
  0xf5   : > { %1772 = vmatmul.mubr.bf16.gmra.mxu0 %v1106_v60  ;;  %v995_v32 = vpop.permute.xlu1 %994  ;;  %v6060_v60 = vpack.c.bf16 %v466_v28, %v465_v48  ;;  %v744_v48 = vld [vmem:[#allocation2 + $0xc0] sm:$0xff]  ;;  %v745_v28 = vld [vmem:[#allocation2 + $0xc8] sm:$0xff] }
  0xf6   : > { %1779 = vmatprep.mubr.bf16.mxu0 %v1174_v40  ;;  %v1210_v26 = vsel %vm332_vm0, %v670_v27, %v995_v32  ;;  %v770_v43 = vpack.c.bf16 %v745_v28, %v744_v48  ;;  %v1194_v48 = vsel %vm332_vm0, %v5960_v42, %v6027_v39 }
  0xf7   : > { %v1045_v34 = vpop.permute.xlu0 %1044  ;;  %v1114_v30 = vsel %vm332_vm0, %v6060_v60, %v6007_v54  ;;  %v645_v54 = vld [vmem:[#allocation2 + $0x91] sm:$0xff] }
  0xf8   : > { %v1278_v40 = vsel %vm332_vm0, %v768_v50, %v1045_v34  ;;  %v1186_v50 = vsel %vm332_vm0, %v5940_v55, %v6015_v23  ;;  %v469_v34 = vld [vmem:[#allocation2 + $0x138] sm:$0xff] }
  0xf9   : > { %v997_v45 = vpop.permute.xlu1 %996 }
  0xfb   : > { %1877 = vmatmul.mubr.bf16.gmra.mxu1 %v1206_v31  ;;  %v467_v31 = vld [vmem:[#allocation2 + $0x120] sm:$0xff]  ;;  %v1047_v51 = vpop.permute.xlu0 %1046 }
  0xfc   : > { %1884 = vmatprep.mubr.bf16.mxu1 %v1274_v49  ;;  %v468_v49 = vld [vmem:[#allocation2 + $0x128] sm:$0xff]  ;;  %v1282_v27 = vsel %vm332_vm0, %v769_v59, %v1047_v51 }
  0xfd   : > { %1780 = vmatmul.mubr.bf16.gmra.mxu0 %v1110_v44  ;;  %v6070_v38 = vpack.c.bf16 %v468_v49, %v467_v31  ;;  %v1214_v44 = vsel %vm332_vm0, %v671_v22, %v997_v45  ;;  %v648_v22 = vld [vmem:[#allocation2 + $0xb1] sm:$0xff]  ;;  %v1190_v31 = vsel %vm332_vm0, %v5946_v53, %v6021_v47 }
  0xfe   : > { %1787 = vmatprep.mubr.bf16.mxu0 %v1178_v58  ;;  %v646_v58 = vld [vmem:[#allocation2 + $0x99] sm:$0xff]  ;;  %v471_v49 = vld [vmem:[#allocation2 + $0x150] sm:$0xff] }
  0xff   : > { %v1118_v46 = vsel %vm332_vm0, %v6070_v38, %v6011_v33  ;;  %v672_v32 = vpack.c.bf16 %v646_v58, %v645_v54  ;;  %v1049_v63 = vpop.permute.xlu0 %1048  ;;  %v647_v33 = vld [vmem:[#allocation2 + $0xa9] sm:$0xff]  ;;  %v472_v45 = vld [vmem:[#allocation2 + $0x158] sm:$0xff] }
 0x100   : > { %v650_v58 = vld [vmem:[#allocation2 + $0xc9] sm:$0xff] }
 0x103   : > { %1885 = vmatmul.mubr.bf16.gmra.mxu1 %v1210_v26  ;;  %v470_v26 = vld [vmem:[#allocation2 + $0x140] sm:$0xff]  ;;  %v1051_v51 = vpop.permute.xlu0 %1050 }
 0x104   : > { %1892 = vmatprep.mubr.bf16.mxu1 %v1278_v40  ;;  %v999_v40 = vpop.permute.xlu1 %998  ;;  %v6080_v37 = vpack.c.bf16 %v470_v26, %v469_v34  ;;  %v1290_v54 = vsel %vm332_vm0, %v6040_v29, %v1051_v51  ;;  %v828_v26 = vld [vmem:[#allocation2 + $0x32] sm:$0xff] }
 0x105   : > { %1788 = vmatmul.mubr.bf16.gmra.mxu0 %v1114_v30  ;;  %v1218_v0 = vsel %vm332_vm0, %v672_v32, %v999_v40  ;;  %v1286_v30 = vsel %vm332_vm0, %v770_v43, %v1049_v63  ;;  %v473_v32 = vld [vmem:[#allocation2 + $0x168] sm:$0xff]  ;;  %v829_v40 = vld [vmem:[#allocation2 + $0x3a] sm:$0xff]  ;;  %v653_v51 = vld [vmem:[#allocation2 + $0xf1] sm:$0xff] }
 0x106   : > { %1795 = vmatprep.mubr.bf16.mxu0 %v1182_v3  ;;  %v1122_v23 = vsel %vm332_vm0, %v6080_v37, %v6019_v4  ;;  %v673_v3 = vpack.c.bf16 %v648_v22, %v647_v33  ;;  %v649_v4 = vld [vmem:[#allocation2 + $0xc1] sm:$0xff]  ;;  %v651_v63 = vld [vmem:[#allocation2 + $0xd9] sm:$0xff]  ;;  %v860_v39 = vpack.c.bf16 %v829_v40, %v828_v26 }
 0x107   : > { %v674_v28 = vpack.c.bf16 %v650_v58, %v649_v4  ;;  %v1053_v34 = vpop.permute.xlu0 %1052 }
 0x108   : > { %v1001_v59 = vpop.permute.xlu1 %1000 }
 0x10b   : > { %1893 = vmatmul.mubr.bf16.gmra.mxu1 %v1214_v44  ;;  %v6090_v44 = vpack.c.bf16 %v472_v45, %v471_v49  ;;  %v833_v45 = vld [vmem:[#allocation2 + $0x6a] sm:$0xff] }
 0x10c   : > { %1900 = vmatprep.mubr.bf16.mxu1 %v1282_v27  ;;  %v1222_v27 = vsel %vm332_vm0, %v673_v3, %v1001_v59  ;;  %v830_v3 = vld [vmem:[#allocation2 + $0x4a] sm:$0xff] }
 0x10d   : > { %1796 = vmatmul.mubr.bf16.gmra.mxu0 %v1118_v46  ;;  %v1126_v47 = vsel %vm332_vm0, %v6090_v44, %v6023_v36  ;;  %v1003_v46 = vpop.permute.xlu1 %1002  ;;  %v1294_v36 = vsel %vm332_vm0, %v6050_v56, %v1053_v34  ;;  %v832_v56 = vld [vmem:[#allocation2 + $0x62] sm:$0xff] }
 0x10e   : > { %1803 = vmatprep.mubr.bf16.mxu0 %v1186_v50  ;;  %v474_v50 = vld [vmem:[#allocation2 + $0x170] sm:$0xff]  ;;  %v1226_v29 = vsel %vm332_vm0, %v674_v28, %v1003_v46  ;;  %v862_v4 = vpack.c.bf16 %v833_v45, %v832_v56  ;;  %v835_v28 = vld [vmem:[#allocation2 + $0x82] sm:$0xff]  ;;  %v659_v56 = vld [vmem:[#allocation2 + $0x139] sm:$0xff] }
 0x10f   : > { %v6102_v43 = vpack.c.bf16 %v474_v50, %v473_v32  ;;  %v836_v32 = vld [vmem:[#allocation2 + $0x92] sm:$0xff]  ;;  %v837_v50 = vld [vmem:[#allocation2 + $0x9a] sm:$0xff]  ;;  %v655_v34 = vld [vmem:[#allocation2 + $0x109] sm:$0xff] }
 0x110   : > { %v864_v40 = vpack.c.bf16 %v837_v50, %v836_v32  ;;  %v763_v32 = vld [vmem:[#allocation2 + $0x1a0] sm:$0xff] }
 0x111   : > { %v1130_v33 = vsel %vm332_vm0, %v6102_v43, %v6031_v62  ;;  %v1005_v22 = vpop.permute.xlu1 %1004 }
 0x113   : > { %1901 = vmatmul.mubr.bf16.gmra.mxu1 %v1218_v0  ;;  %v652_v0 = vld [vmem:[#allocation2 + $0xe1] sm:$0xff] }
 0x114   : > { %1908 = vmatprep.mubr.bf16.mxu1 %v1286_v30  ;;  %v675_v30 = vpack.c.bf16 %v652_v0, %v651_v63 }
 0x115   : > { %1804 = vmatmul.mubr.bf16.gmra.mxu0 %v1122_v23  ;;  %v1055_v23 = vpop.permute.xlu0 %1054  ;;  %v1007_v58 = vpop.permute.xlu1 %1006 }
 0x116   : > { %1811 = vmatprep.mubr.bf16.mxu0 %v1190_v31  ;;  %v831_v31 = vld [vmem:[#allocation2 + $0x52] sm:$0xff]  ;;  %v1230_v49 = vsel %vm332_vm0, %v675_v30, %v1005_v22  ;;  %v1298_v59 = vsel %vm332_vm0, %v6060_v60, %v1055_v23 }
 0x119   : > { %v1009_v63 = vpop.permute.xlu1 %1008 }
 0x11b   : > { %1909 = vmatmul.mubr.bf16.gmra.mxu1 %v1222_v27  ;;  %v654_v27 = vld [vmem:[#allocation2 + $0xf9] sm:$0xff] }
 0x11c   : > { %1916 = vmatprep.mubr.bf16.mxu1 %v1290_v54  ;;  %v861_v54 = vpack.c.bf16 %v831_v31, %v830_v3  ;;  %v676_v62 = vpack.c.bf16 %v654_v27, %v653_v51  ;;  %v661_v27 = vld [vmem:[#allocation2 + $0x151] sm:$0xff] }
 0x11d   : > { %1812 = vmatmul.mubr.bf16.gmra.mxu0 %v1126_v47  ;;  %v1057_v47 = vpop.permute.xlu0 %1056  ;;  %v1011_v23 = vpop.permute.xlu1 %1010 }
 0x11e   : > { %1819 = vmatprep.mubr.bf16.mxu0 %v1194_v48  ;;  %v834_v48 = vld [vmem:[#allocation2 + $0x7a] sm:$0xff]  ;;  %v1234_v46 = vsel %vm332_vm0, %v676_v62, %v1007_v58  ;;  %v1302_v60 = vsel %vm332_vm0, %v6070_v38, %v1057_v47  ;;  %v658_v38 = vld [vmem:[#allocation2 + $0x129] sm:$0xff] }
 0x11f   : > { %v863_v26 = vpack.c.bf16 %v835_v28, %v834_v48  ;;  %v663_v48 = vld [vmem:[#allocation2 + $0x169] sm:$0xff]  ;;  %v664_v28 = vld [vmem:[#allocation2 + $0x171] sm:$0xff] }
 0x120   : > { %v681_v50 = vpack.c.bf16 %v664_v28, %v663_v48 }
 0x121   : > { %v1059_v0 = vpop.permute.xlu0 %1058 }
 0x122   : > { %v1306_v30 = vsel %vm332_vm0, %v6080_v37, %v1059_v0  ;;  %v660_v37 = vld [vmem:[#allocation2 + $0x141] sm:$0xff] }
 0x123   : > { %1917 = vmatmul.mubr.bf16.gmra.mxu1 %v1226_v29  ;;  %v656_v29 = vld [vmem:[#allocation2 + $0x111] sm:$0xff]  ;;  %v679_v45 = vpack.c.bf16 %v660_v37, %v659_v56 }
 0x124   : > { %1924 = vmatprep.mubr.bf16.mxu1 %v1294_v36  ;;  %v677_v36 = vpack.c.bf16 %v656_v29, %v655_v34  ;;  %v5208_v56 = vld [vmem:[%s7653_s3 + $0x38] sm:$0xff]  }
 0x125   : > { %1820 = vmatmul.mubr.bf16.gmra.mxu0 %v1130_v33  ;;  %v657_v33 = vld [vmem:[#allocation2 + $0x121] sm:$0xff]  ;;  %v1061_v3 = vpop.permute.xlu0 %1060 }
 0x126   : > { %5031 = vmatprep.mubr.msk.bf16.mxu0 %vm332_vm0, %v860_v39  ;;  %v1238_v39 = vsel %vm332_vm0, %v677_v36, %v1009_v63  ;;  %v678_v22 = vpack.c.bf16 %v658_v38, %v657_v33  ;;  %v859_v36 = vld [vmem:[#allocation2 + $0x1a2] sm:$0xff] }
 0x128   : > { %v1242_v31 = vsel %vm332_vm0, %v678_v22, %v1011_v23 }
 0x129   : > { %v1063_v51 = vpop.permute.xlu0 %1062 }
 0x12b   : > { %1925 = vmatmul.mubr.bf16.gmra.mxu1 %v1230_v49  ;;  %v1310_v49 = vsel %vm332_vm0, %v6090_v44, %v1061_v3  ;;  %v662_v44 = vld [vmem:[#allocation2 + $0x159] sm:$0xff]  ;;  %v2326_v3 = vld [vmem:[#allocation2 + $0x1] sm:$0xff] }
 0x12c   : > { %1932 = vmatprep.mubr.bf16.mxu1 %v1298_v59  ;;  %v1013_v59 = vpop.permute.xlu1 %1012  ;;  %v680_v62 = vpack.c.bf16 %v662_v44, %v661_v27 }
 0x12d   : > { %5032 = vmatmul.mubr.msk.bf16.vlgmr.msra.gmra.mxu0 %vm332_vm0, %v861_v54  ;;  %v760_v54 = vld [vmem:[#allocation2 + $0x180] sm:$0xff] }
 0x12e   : > { %5035 = vmatprep.mubr.msk.bf16.mxu0 %vm332_vm0, %v862_v4  ;;  %v761_v4 = vld [vmem:[#allocation2 + $0x188] sm:$0xff] }
 0x12f   : > { %v778_v47 = vpack.c.bf16 %v761_v4, %v760_v54 }
 0x130   : > { %v1015_v58 = vpop.permute.xlu1 %1014 }
 0x133   : > { %1933 = vmatmul.mubr.bf16.gmra.mxu1 %v1234_v46  ;;  %v762_v46 = vld [vmem:[#allocation2 + $0x198] sm:$0xff] }
 0x134   : > { %1940 = vmatprep.mubr.bf16.mxu1 %v1302_v60  ;;  %v1017_v60 = vpop.permute.xlu1 %1016  ;;  %v779_v34 = vpack.c.bf16 %v763_v32, %v762_v46 }
 0x135   : > { %5036 = vmatmul.mubr.msk.bf16.gmra.mxu0 %vm332_vm0, %v863_v26 }
 0x136   : > { %5039 = vmatprep.mubr.msk.bf16.mxu0 %vm332_vm0, %v864_v40  ;;  %v858_v40 = vld [vmem:[#allocation2 + $0x19a] sm:$0xff] }
 0x137   : > { %v875_v63 = vpack.c.bf16 %v859_v36, %v858_v40 }
 0x138   : > { %v1019_v26 = vpop.permute.xlu1 %1018 }
 0x13b   : > { %1941 = vmatmul.mubr.bf16.gmra.mxu1 %v1238_v39 }
 0x13c   : > { %1948 = vmatprep.mubr.bf16.mxu1 %v1306_v30 }
 0x13d   : > { %5040 = vmatmul.mubr.msk.bf16.gmra.mxu0 %vm332_vm0, %v5904_v52  ;;  %v1246_v52 = vsel %vm332_vm0, %v679_v45, %v1013_v59 }
 0x13e   : > { %5043 = vmatprep.mubr.msk.bf16.mxu0 %vm332_vm0, %v5910_v57  ;;  %v1314_v57 = vsel %vm332_vm0, %v6102_v43, %v1063_v51 }
 0x143   : > { %1949 = vmatmul.mubr.bf16.gmra.mxu1 %v1242_v31  ;;  %v2327_v31 = vld [vmem:[#allocation2 + $0x9] sm:$0xff] }
 0x144   : > { %1956 = vmatprep.mubr.bf16.mxu1 %v1310_v49  ;;  %v5207_v49 = vld [vmem:[%s7653_s3 + $0x78] sm:$0xff]   ;;  %v2358_v37 = vpack.c.bf16 %v2327_v31, %v2326_v3 }
 0x145   : > { %5044 = vmatmul.mubr.msk.bf16.gmra.mxu0 %vm332_vm0, %v5916_v61  ;;  %v1065_v61 = vpop.permute.xlu0 %1064  ;;  %4768 = vmatprep.subr.bf16.mxu1 %v5207_v49 }
 0x146   : > { %5047 = vmatprep.mubr.msk.bf16.mxu0 %vm332_vm0, %v5922_v5  ;;  %v1250_v5 = vsel %vm332_vm0, %v680_v62, %v1015_v58  ;;  %v1318_v43 = vsel %vm332_vm0, %v778_v47, %v1065_v61  ;;  %2726 = vrot.lane.b32.xlu1 %v2358_v37, %s5312_s24  ;;  %v5209_v58 = vld [vmem:[%s7653_s3 + $0x70] sm:$0xff]  }
 0x147   : > { %4769 = vmatpush3.bf16.msra.mxu1 %v5208_v56  ;;  %v5210_v47 = vld [vmem:[%s7653_s3 + $0x30] sm:$0xff]  }
 0x148   : > { %4770 = vmatprep.subr.bf16.mxu1 %v5209_v58 }
 0x14b   : > { %1957 = vmatmul.mubr.bf16.gmra.mxu1 %v1246_v52 }
 0x14c   : > { %1964 = vmatprep.mubr.bf16.mxu1 %v1314_v57  ;;  %4771 = vmatpush3.bf16.msra.mxu1 %v5210_v47 }
 0x14d   : > { %5048 = vmatmul.mubr.msk.bf16.gmra.mxu0 %vm332_vm0, %v5928_v2  ;;  %v1067_v2 = vpop.permute.xlu0 %1066 }
 0x14e   : > { %5051 = vmatprep.mubr.msk.bf16.mxu0 %vm332_vm0, %v5934_v35  ;;  %v1254_v35 = vsel %vm332_vm0, %v681_v50, %v1017_v60  ;;  %v1322_v29 = vsel %vm332_vm0, %v779_v34, %v1067_v2  ;;  %v5211_v2 = vld [vmem:[%s7653_s3 + $0x68] sm:$0xff]  }
 0x14f   : > { %4772 = vmatprep.subr.bf16.mxu1 %v5211_v2  ;;  %v5215_v2 = vld [vmem:[%s7653_s3 + $0x58] sm:$0xff]  }
 0x153   : > { %1965 = vmatmul.mubr.bf16.gmra.mxu1 %v1250_v5 }
 0x154   : > { %1972 = vmatprep.mubr.bf16.mxu1 %v1318_v43 }
 0x155   : > { %5052 = vmatmul.mubr.msk.bf16.gmra.mxu0 %vm332_vm0, %v5940_v55  ;;  %v1258_v55 = vsel %vm332_vm0, %v5951_v41, %v1019_v26 }
 0x156   : > { %5055 = vmatprep.mubr.msk.bf16.mxu0 %vm332_vm0, %v5946_v53 }
 0x15b   : > { %1973 = vmatmul.mubr.bf16.gmra.mxu1 %v1254_v35  ;;  %v5212_v35 = vld [vmem:[%s7653_s3 + $0x28] sm:$0xff]  }
 0x15c   : > { %1980 = vmatprep.mubr.bf16.mxu1 %v1322_v29  ;;  %4773 = vmatpush3.bf16.msra.mxu1 %v5212_v35 }
 0x15d   : > { %5056 = vmatmul.mubr.msk.bf16.gmra.mxu0 %vm332_vm0, %v5960_v42 }
 0x15e   : > { %5059 = vmatprep.mubr.msk.bf16.mxu0 %vm332_vm0, %v5971_v1 }
 0x163   : > { %1981 = vmatmul.mubr.bf16.gmra.mxu1 %v1258_v55 }
 0x165   : > { %5060 = vmatmul.mubr.msk.bf16.gmra.mxu0 %vm332_vm0, %v875_v63 }
 0x16d   : > { %v4540_v53 = vpop.f32.mrf.mxu0 }
 0x16f   : > { %v4541_v0 = vpop.f32.mrf.mxu0 }
 0x170   : > { %v4542_v39 = vadd.f32 %v4541_v0, %v4540_v53 }
 0x171   : > { %v4543_v30 = vpop.f32.mrf.mxu0 }
 0x173   : > { %v4544_v33 = vpop.f32.mrf.mxu0 }
 0x174   : > { %v4545_v49 = vadd.f32 %v4544_v33, %v4543_v30 }
 0x175   : > { %v4546_v38 = vpop.f32.mrf.mxu0 }
 0x177   : > { %v4547_v22 = vpop.f32.mrf.mxu0 }
 0x178   : > { %v6156_v42 = vadd.f32 %v4547_v22, %v4546_v38  ;;  %v6218_v38 = vld [vmem:[%s7652_s2] ss:$0 sm:$0xff] }
 0x179   : > { %v6158_v23 = vpop.f32.mrf.mxu0 }
 0x17b   : > { %v6160_v1 = vpop.f32.mrf.mxu0 }
 0x17d   : > { %v4552_v41 = vpop.f32.mrf.mxu0 }
 0x17f   : > { %v4553_v45 = vpop.f32.mrf.mxu0 }
 0x180   : > { %v6169_v59 = vadd.f32 %v4553_v45, %v4552_v41  ;;  %v1702_v41 = vadd.f32 %v4542_v39, %v6218_v38  ;;  %v1705_v39 = vadd.f32 %v4545_v49, %v6218_v38 }
 0x181   : > { %v6171_v51 = vpop.f32.mrf.mxu0 }
 0x183   : > { %v6173_v52 = vpop.f32.mrf.mxu0 }
 0x185   : > { %v4558_v57 = vpop.f32.mrf.mxu0 }
 0x187   : > { %v4559_v27 = vpop.f32.mrf.mxu0 }
 0x188   : > { %v6175_v44 = vadd.f32 %v4559_v27, %v4558_v57  ;;  %v5213_v57 = vld [vmem:[%s7653_s3 + $0x60] sm:$0xff]  }
 0x189   : > { %v6177_v54 = vpop.f32.mrf.mxu0  ;;  %v5214_v27 = vld [vmem:[%s7653_s3 + $0x20] sm:$0xff]   ;;  %4774 = vmatprep.subr.bf16.mxu1 %v5213_v57 }
 0x18a   : > { %4775 = vmatpush3.bf16.msra.mxu1 %v5214_v27 }
 0x18b   : > { %v6179_v4 = vpop.f32.mrf.mxu0  ;;  %4776 = vmatprep.subr.bf16.mxu1 %v5215_v2 }
 0x18d   : > { %v4564_v62 = vpop.f32.mrf.mxu0 }
 0x18f   : > { %v4565_v61 = vpop.f32.mrf.mxu0 }
 0x190   : > { %v6187_v5 = vadd.f32 %v4565_v61, %v4564_v62 }
 0x191   : > { %v6189_v43 = vpop.f32.mrf.mxu0 }
 0x193   : > { %v6191_v48 = vpop.f32.mrf.mxu0 }
 0x195   : > { %v4570_v28 = vpop.f32.mrf.mxu0 }
 0x197   : > { %v4571_v46 = vpop.f32.mrf.mxu0 }
 0x198   : > { %v6193_v32 = vadd.f32 %v4571_v46, %v4570_v28 }
 0x199   : > { %v6195_v50 = vpop.f32.mrf.mxu0 }
 0x19b   : > { %v6197_v60 = vpop.f32.mrf.mxu0 }
 0x19d   : > { %v4576_v34 = vpop.f32.mrf.mxu0 }
 0x19f   : > { %v4577_v29 = vpop.f32.mrf.mxu0 }
 0x1a0   : > { %v6205_v26 = vadd.f32 %v4577_v29, %v4576_v34 }
 0x1a1   : > { %v6207_v40 = vpop.f32.mrf.mxu0 }
 0x1a3   : > { %v6209_v36 = vpop.f32.mrf.mxu0 }
 0x1a5   : > { %v4582_v55 = vpop.f32.mrf.mxu0 }
 0x1a7   : > { %v4583_v63 = vpop.f32.mrf.mxu0 }
 0x1a8   : > { %v6211_v53 = vadd.f32 %v4583_v63, %v4582_v55 }
 0x1a9   : > { %v6213_v0 = vpop.f32.mrf.mxu0 }
 0x1ab   : > { %v4652_v22 = vpop.f32.mrf.mxu1  ;;  %v6220_v3 = vpop.f32.mrf.mxu0 }
 0x1ad   : > { %v4653_v31 = vpop.f32.mrf.mxu1  ;;  %v4588_v37 = vpop.f32.mrf.mxu0 }
 0x1ae   : > { %v4654_v56 = vadd.f32 %v4653_v31, %v4652_v22  ;;  %v5216_v22 = vld [vmem:[%s7653_s3 + $0x18] sm:$0xff]  }
 0x1af   : > { %v4655_v45 = vpop.f32.mrf.mxu1  ;;  %v4589_v62 = vpop.f32.mrf.mxu0  ;;  %4777 = vmatpush3.bf16.msra.mxu1 %v5216_v22 }
 0x1b0   : > { %v6229_v58 = vadd.f32 %v4654_v56, %v1702_v41  ;;  %v6231_v47 = vadd.f32 %v4589_v62, %v4588_v37 }
 0x1b1   : > { %v4656_v61 = vpop.f32.mrf.mxu1  ;;  %v6234_v33 = vpop.f32.mrf.mxu0 }
 0x1b2   : > { %v4657_v30 = vadd.f32 %v4656_v61, %v4655_v45 }
 0x1b3   : > { %v6236_v28 = vpop.f32.mrf.mxu1  ;;  %v6238_v46 = vpop.f32.mrf.mxu0 }
 0x1b4   : > { %v6240_v34 = vadd.f32 %v4657_v30, %v1705_v39 }
 0x1b5   : > { %v6245_v35 = vpop.f32.mrf.mxu1  ;;  %v4594_v29 = vpop.f32.mrf.mxu0 }
 0x1b7   : > { %v6247_v55 = vpop.f32.mrf.mxu1  ;;  %v4595_v63 = vpop.f32.mrf.mxu0 }
 0x1b8   : > { %v6252_v31 = vadd.f32 %v4595_v63, %v4594_v29  ;;  %v5217_v63 = vld [vmem:[%s7653_s3 + $0x50] sm:$0xff]  }
 0x1b9   : > { %v6254_v41 = vpop.f32.mrf.mxu1  ;;  %v6256_v49 = vpop.f32.mrf.mxu0  ;;  %4778 = vmatprep.subr.bf16.mxu1 %v5217_v63 }
 0x1bb   : > { %v6258_v56 = vpop.f32.mrf.mxu1  ;;  %v6260_v37 = vpop.f32.mrf.mxu0 }
 0x1bd   : > { %v6262_v45 = vpop.f32.mrf.mxu1  ;;  %v4600_v57 = vpop.f32.mrf.mxu0 }
 0x1bf   : > { %v6264_v27 = vpop.f32.mrf.mxu1  ;;  %v4601_v62 = vpop.f32.mrf.mxu0 }
 0x1c0   : > { %v6266_v61 = vadd.f32 %v4601_v62, %v4600_v57  ;;  %v5218_v62 = vld [vmem:[%s7653_s3 + $0x10] sm:$0xff]  }
 0x1c1   : > { %v6268_v39 = vpop.f32.mrf.mxu1  ;;  %v6270_v30 = vpop.f32.mrf.mxu0  ;;  %4779 = vmatpush3.bf16.msra.mxu1 %v5218_v62  ;;  %v5219_v62 = vld [vmem:[%s7653_s3 + $0x48] sm:$0xff]  }
 0x1c2   : > { %7728 = vst [vmem:[#allocation38_spill] sm:$0xff] %v6266_v61  ;;  %7729 = vst [vmem:[#allocation39_spill] sm:$0xff] %v6270_v30  ;;  %4780 = vmatprep.subr.bf16.mxu1 %v5219_v62 }
 0x1c3   : > { %v6272_v2 = vpop.f32.mrf.mxu1  ;;  %v6274_v29 = vpop.f32.mrf.mxu0 }
 0x1c4   : > { %7730 = vst [vmem:[#allocation40_spill] sm:$0xff] %v6274_v29 }
 0x1c5   : > { %v6279_v22 = vpop.f32.mrf.mxu1  ;;  %v4606_v25 = vpop.f32.mrf.mxu0  ;;  %4781 = vmatpush3.bf16.msra.mxu1 %v5220_v6  ;;  %v5221_v6 = vld [vmem:[%s7653_s3 + $0x40] sm:$0xff]  }
 0x1c6   : > { %4782 = vmatprep.subr.bf16.mxu1 %v5221_v6  ;;  %v1710_v6 = vadd.f32 %v6156_v42, %v6218_v38 }
 0x1c7   : > { %v6281_v24 = vpop.f32.mrf.mxu1  ;;  %v4607_v57 = vpop.f32.mrf.mxu0 }
 0x1c8   : > { %v6286_v21 = vadd.f32 %v4607_v57, %v4606_v25 }
 0x1c9   : > { %v6288_v20 = vpop.f32.mrf.mxu1  ;;  %v6290_v19 = vpop.f32.mrf.mxu0 }
 0x1ca   : > { %7731 = vst [vmem:[#allocation41_spill] sm:$0xff] %v6286_v21  ;;  %7732 = vst [vmem:[#allocation42_spill] sm:$0xff] %v6290_v19 }
 0x1cb   : > { %v6292_v18 = vpop.f32.mrf.mxu1  ;;  %v6294_v17 = vpop.f32.mrf.mxu0 }
 0x1cc   : > { %7733 = vst [vmem:[#allocation43_spill] sm:$0xff] %v6294_v17 }
 0x1cd   : > { %v6296_v16 = vpop.f32.mrf.mxu1  ;;  %v6298_v63 = vpop.f32.mrf.mxu0 }
 0x1ce   : > { %7734 = vst [vmem:[#allocation44_spill] sm:$0xff] %v6298_v63 }
 0x1cf   : > { %v6300_v15 = vpop.f32.mrf.mxu1  ;;  %v6302_v14 = vpop.f32.mrf.mxu0 }
 0x1d0   : > { %7735 = vst [vmem:[#allocation45_spill] sm:$0xff] %v6302_v14 }
 0x1d1   : > { %v6304_v13 = vpop.f32.mrf.mxu1  ;;  %v4615_v25 = vpop.f32.mrf.mxu0 }
 0x1d3   : > { %v6306_v57 = vpop.f32.mrf.mxu1  ;;  %v4616_v12 = vpop.f32.mrf.mxu0 }
 0x1d4   : > { %v6311_v11 = vadd.f32 %v4616_v12, %v4615_v25 }
 0x1d5   : > { %v6313_v10 = vpop.f32.mrf.mxu1  ;;  %v4618_v9 = vpop.f32.mrf.mxu0 }
 0x1d6   : > { %7736 = vst [vmem:[#allocation46_spill] sm:$0xff] %v6311_v11 }
 0x1d7   : > { %v6315_v8 = vpop.f32.mrf.mxu1  ;;  %v4619_v7 = vpop.f32.mrf.mxu0 }
 0x1d8   : > { %v6320_v14 = vadd.f32 %v4619_v7, %v4618_v9 }
 0x1d9   : > { %v6322_v63 = vpop.f32.mrf.mxu1  ;;  %v4621_v17 = vpop.f32.mrf.mxu0 }
 0x1da   : > { %7737 = vst [vmem:[#allocation47_spill] sm:$0xff] %v6320_v14 }
 0x1db   : > { %v6324_v19 = vpop.f32.mrf.mxu1  ;;  %v4622_v12 = vpop.f32.mrf.mxu0 }
 0x1dc   : > { %v6326_v25 = vadd.f32 %v4622_v12, %v4621_v17 }
 0x1dd   : > { %v6328_v11 = vpop.f32.mrf.mxu1  ;;  %v4624_v62 = vpop.f32.mrf.mxu0 }
 0x1de   : > { %7738 = vst [vmem:[#allocation48_spill] sm:$0xff] %v6326_v25 }
 0x1df   : > { %v6330_v21 = vpop.f32.mrf.mxu1  ;;  %v4625_v29 = vpop.f32.mrf.mxu0 }
 0x1e0   : > { %7739 = vst [vmem:[#allocation49_spill] sm:$0xff] %v6330_v21  ;;  %v6332_v30 = vadd.f32 %v4625_v29, %v4624_v62  ;;  %v5222_v62 = vld [vmem:[%s7653_s3] sm:$0xff]  }
 0x1e1   : > { %v6334_v61 = vpop.f32.mrf.mxu1  ;;  %v4627_v7 = vpop.f32.mrf.mxu0  ;;  %4783 = vmatpush3.bf16.msra.mxu1 %v5222_v62 }
 0x1e2   : > { %7740 = vst [vmem:[#allocation50_spill] sm:$0xff] %v6332_v30  ;;  %7741 = vst [vmem:[#allocation51_spill] sm:$0xff] %v6334_v61  ;;  %v4660_v30 = vadd.f32 %v6245_v35, %v6236_v28  ;;  %v4569_v28 = vadd.f32 %v6191_v48, %v6189_v43  ;;  %v1726_v43 = vadd.f32 %v6175_v44, %v6218_v38 }
 0x1e3   : > { %v6336_v9 = vpop.f32.mrf.mxu1  ;;  %v4628_v14 = vpop.f32.mrf.mxu0 }
 0x1e4   : > { %v6341_v17 = vadd.f32 %v4628_v14, %v4627_v7  ;;  %v4551_v14 = vadd.f32 %v6160_v1, %v6158_v23  ;;  %v4663_v23 = vadd.f32 %v6254_v41, %v6247_v55  ;;  %v1871_v62 = vadd.f32 %v4660_v30, %v1710_v6 }
 0x1e5   : > { %v6343_v12 = vpop.f32.mrf.mxu1  ;;  %v6345_v25 = vpop.f32.mrf.mxu0  ;;  %v6393_v30 = vadd.f32 %v6187_v5, %v6218_v38 }
 0x1e6   : > { %7742 = vst [vmem:[#allocation52_spill] sm:$0xff] %v6341_v17  ;;  %7743 = vst [vmem:[#allocation53_spill] sm:$0xff] %v6345_v25  ;;  %v4557_v17 = vadd.f32 %v6173_v52, %v6171_v51  ;;  %v4563_v25 = vadd.f32 %v6179_v4, %v6177_v54  ;;  %v1713_v42 = vadd.f32 %v4551_v14, %v6218_v38 }
 0x1e7   : > { %v6347_v21 = vpop.f32.mrf.mxu1  ;;  %v6349_v29 = vpop.f32.mrf.mxu0  ;;  %v4575_v51 = vadd.f32 %v6197_v60, %v6195_v50  ;;  %v1718_v54 = vadd.f32 %v6169_v59, %v6218_v38  ;;  %v6396_v50 = vadd.f32 %v4569_v28, %v6218_v38  ;;  %v4672_v59 = vadd.f32 %v6279_v22, %v6272_v2 }
 0x1e8   : > { %7744 = vst [vmem:[#allocation54_spill] sm:$0xff] %v6349_v29  ;;  %v6384_v4 = vadd.f32 %v4557_v17, %v6218_v38  ;;  %v1729_v41 = vadd.f32 %v4563_v25, %v6218_v38  ;;  %v1874_v6 = vadd.f32 %v4663_v23, %v1713_v42  ;;  %v6405_v25 = vadd.f32 %v6193_v32, %v6218_v38 }
 0x1e9   : > { %v6356_v61 = vpop.f32.mrf.mxu1  ;;  %v6360_v7 = vpop.f32.mrf.mxu0  ;;  %v6408_v5 = vadd.f32 %v4575_v51, %v6218_v38  ;;  %v4581_v28 = vadd.f32 %v6209_v36, %v6207_v40  ;;  %v4666_v2 = vadd.f32 %v6262_v45, %v6258_v56  ;;  %v6418_v32 = vadd.f32 %v6205_v26, %v6218_v38 }
 0x1ea   : > { %v4587_v23 = vadd.f32 %v6220_v3, %v6213_v0  ;;  %v4675_v40 = vadd.f32 %v6288_v20, %v6281_v24  ;;  %v1887_v56 = vadd.f32 %v4672_v59, %v1726_v43  ;;  %v6433_v0 = vadd.f32 %v6211_v53, %v6218_v38 }
 0x1eb   : > { %v6366_v29 = vpop.f32.mrf.mxu1  ;;  %v6372_v35 = vpop.f32.mrf.mxu0  ;;  %v6429_v26 = vadd.f32 %v4581_v28, %v6218_v38  ;;  %v4669_v20 = vadd.f32 %v6268_v39, %v6264_v27  ;;  %v1879_v3 = vadd.f32 %v4666_v2, %v1718_v54  ;;  %v4593_v53 = vadd.f32 %v6238_v46, %v6234_v33  ;;  %v5223_v54 = vld [vmem:[%s7653_s3 + $0xf8] sm:$0xff]  }
 0x1ec   : > { %v1890_v39 = vadd.f32 %v4675_v40, %v1729_v41  ;;  %v5224_v28 = vld [vmem:[%s7653_s3 + $0x118] sm:$0xff]   ;;  %v4599_v46 = vadd.f32 %v6260_v37, %v6256_v49  ;;  %4880 = vmatprep.subr.bf16.mxu0 %v5223_v54  ;;  %v4687_v49 = vadd.f32 %v6322_v63, %v6315_v8  ;;  %v4681_v63 = vadd.f32 %v6304_v13, %v6300_v15  ;;  %v7747_v15 = vld [vmem:[#allocation40_spill] sm:$0xff] }
 0x1ed   : > { %v6376_v1 = vpop.f32.mrf.mxu1  ;;  %v5033_v52 = vpop.f32.mrf.mxu0  ;;  %5063 = vmatprep.subr.bf16.mxu1 %v5224_v28  ;;  %v7746_v13 = vld [vmem:[#allocation39_spill] sm:$0xff] }
 0x1ee   : > { %v2032_v48 = vadd.f32 %v5033_v52, %v1871_v62  ;;  %v6491_v8 = vadd.f32 %v4599_v46, %v6218_v38  ;;  %v1906_v28 = vadd.f32 %v4687_v49, %v6408_v5 }
 0x1ef   : > { %v6388_v55 = vpop.f32.mrf.mxu1  ;;  %v2023_v60 = vpop.f32.mrf.mxu0 }
 0x1f0   : > { %vm2152_vm3 = vcmp.gt.f32.partialorder %v2032_v48, 0.0  ;;  %v2184_v17 = vmul.f32 0.2, %v2032_v48  ;;  %v2024_v44 = vadd.f32 %v2023_v60, %v6229_v58 }
 0x1f1   : > { %v6401_v14 = vpop.f32.mrf.mxu1  ;;  %v5034_v22 = vpop.f32.mrf.mxu0 }
 0x1f2   : > { %v2216_v62 = vsel %vm2152_vm3, %v2032_v48, %v2184_v17  ;;  %vm2150_vm4 = vcmp.gt.f32.partialorder %v2024_v44, 0.0  ;;  %v2182_v58 = vmul.f32 0.2, %v2024_v44  ;;  %v2035_v52 = vadd.f32 %v5034_v22, %v1874_v6 }
 0x1f3   : > { %v6414_v60 = vpop.f32.mrf.mxu1  ;;  %2248 = vst.msk [vmem:[#allocation2 + $0x31] sm:$0xff] %vm332_vm0, %v2216_v62  ;;  %v2026_v36 = vpop.f32.mrf.mxu0  ;;  %v4684_v6 = vadd.f32 %v6313_v10, %v6306_v57  ;;  %v5225_v10 = vld [vmem:[%s7653_s3 + $0xb8] sm:$0xff]   ;;  %v4678_v57 = vadd.f32 %v6296_v16, %v6292_v18  ;;  %v6472_v16 = vadd.f32 %v6231_v47, %v6218_v38  ;;  %v6475_v18 = vadd.f32 %v4593_v53, %v6218_v38  ;;  %v5227_v47 = vld [vmem:[%s7653_s3 + $0xb0] sm:$0xff]  }
 0x1f4   : > { %v2214_v45 = vsel %vm2150_vm4, %v2024_v44, %v2182_v58  ;;  %vm2153_vm5 = vcmp.gt.f32.partialorder %v2035_v52, 0.0  ;;  %v2185_v42 = vmul.f32 0.2, %v2035_v52  ;;  %v2027_v51 = vadd.f32 %v2026_v36, %v6240_v34  ;;  %4881 = vmatpush3.bf16.msra.mxu0 %v5225_v10 }
 0x1f5   : > { %v6426_v48 = vpop.f32.mrf.mxu1  ;;  %2246 = vst.msk [vmem:[#allocation2 + $0x19] sm:$0xff] %vm332_vm0, %v2214_v45  ;;  %v5037_v24 = vpop.f32.mrf.mxu0  ;;  %v6441_v44 = vadd.f32 %v4587_v23, %v6218_v38  ;;  %v1882_v58 = vadd.f32 %v4669_v20, %v6384_v4  ;;  %v1903_v4 = vadd.f32 %v4684_v6, %v6405_v25  ;;  %v7745_v6 = vld [vmem:[#allocation38_spill] sm:$0xff] }
 0x1f6   : > { %v2217_v43 = vsel %vm2153_vm5, %v2035_v52, %v2185_v42  ;;  %vm2151_vm6 = vcmp.gt.f32.partialorder %v2027_v51, 0.0  ;;  %v2183_v59 = vmul.f32 0.2, %v2027_v51  ;;  %v2048_v34 = vadd.f32 %v5037_v24, %v1887_v56  ;;  %v5226_v52 = vld [vmem:[%s7653_s3 + $0xf0] sm:$0xff]  }
 0x1f7   : > { %v6438_v17 = vpop.f32.mrf.mxu1  ;;  %2249 = vst.msk [vmem:[#allocation2 + $0x39] sm:$0xff] %vm332_vm0, %v2217_v43  ;;  %v2039_v27 = vpop.f32.mrf.mxu0  ;;  %4882 = vmatprep.subr.bf16.mxu0 %v5226_v52  ;;  %v6488_v24 = vadd.f32 %v6252_v31, %v6218_v38  ;;  %v5228_v43 = vld [vmem:[%s7653_s3 + $0xe8] sm:$0xff]   ;;  %v4690_v52 = vadd.f32 %v6328_v11, %v6324_v19  ;;  %v5230_v11 = vld [vmem:[%s7653_s3 + $0xe0] sm:$0xff]  }
 0x1f8   : > { %v2215_v2 = vsel %vm2151_vm6, %v2027_v51, %v2183_v59  ;;  %vm2156_vm7 = vcmp.gt.f32.partialorder %v2048_v34, 0.0  ;;  %v2188_v22 = vmul.f32 0.2, %v2048_v34  ;;  %v2040_v62 = vadd.f32 %v2039_v27, %v1879_v3  ;;  %4883 = vmatpush3.bf16.msra.mxu0 %v5227_v47 }
 0x1f9   : > { %v6454_v33 = vpop.f32.mrf.mxu1  ;;  %2247 = vst.msk [vmem:[#allocation2 + $0x21] sm:$0xff] %vm332_vm0, %v2215_v2  ;;  %v5038_v41 = vpop.f32.mrf.mxu0  ;;  %v1895_v3 = vadd.f32 %v4678_v57, %v6393_v30  ;;  %v6504_v27 = vadd.f32 %v7745_v6, %v6218_v38  ;;  %v4696_v30 = vadd.f32 %v6343_v12, %v6336_v9  ;;  %4884 = vmatprep.subr.bf16.mxu0 %v5228_v43 }
 0x1fa   : > { %v2220_v23 = vsel %vm2156_vm7, %v2048_v34, %v2188_v22  ;;  %vm2154_vm8 = vcmp.gt.f32.partialorder %v2040_v62, 0.0  ;;  %v2186_v40 = vmul.f32 0.2, %v2040_v62  ;;  %v2051_v36 = vadd.f32 %v5038_v41, %v1890_v39 }
 0x1fb   : > { %v6468_v56 = vpop.f32.mrf.mxu1  ;;  %2252 = vst.msk [vmem:[#allocation2 + $0x61] sm:$0xff] %vm332_vm0, %v2220_v23  ;;  %v2042_v37 = vpop.f32.mrf.mxu0  ;;  %v4605_v39 = vadd.f32 %v7747_v15, %v7746_v13  ;;  %v1898_v12 = vadd.f32 %v4681_v63, %v6396_v50  ;;  %v4699_v50 = vadd.f32 %v6356_v61, %v6347_v21  ;;  %v1919_v47 = vadd.f32 %v4696_v30, %v6433_v0  ;;  %v5231_v21 = vld [vmem:[%s7653_s3 + $0xa0] sm:$0xff]   ;;  %v7748_v61 = vld [vmem:[#allocation49_spill] sm:$0xff]  ;;  %v5232_v30 = vld [vmem:[%s7653_s3 + $0xd8] sm:$0xff]  }
 0x1fc   : > { %v2218_v45 = vsel %vm2154_vm8, %v2040_v62, %v2186_v40  ;;  %vm2157_vm9 = vcmp.gt.f32.partialorder %v2051_v36, 0.0  ;;  %v2189_v42 = vmul.f32 0.2, %v2051_v36  ;;  %v2043_v51 = vadd.f32 %v2042_v37, %v1882_v58  ;;  %v2422_v2 = vld [vmem:[#allocation2 + $0x18] sm:$0xff]  ;;  %v5229_v40 = vld [vmem:[%s7653_s3 + $0xa8] sm:$0xff]  }
 0x1fd   : > { %v6481_v20 = vpop.f32.mrf.mxu1  ;;  %2250 = vst.msk [vmem:[#allocation2 + $0x49] sm:$0xff] %vm332_vm0, %v2218_v45  ;;  %v5041_v25 = vpop.f32.mrf.mxu0  ;;  %v2328_v41 = vld [vmem:[#allocation2 + $0x19] sm:$0xff]  ;;  %v6527_v19 = vadd.f32 %v4605_v39, %v6218_v38  ;;  %4885 = vmatpush3.bf16.msra.mxu0 %v5229_v40  ;;  %v1911_v0 = vadd.f32 %v4690_v52, %v6418_v32  ;;  %v4708_v32 = vadd.f32 %v6426_v48, %v6414_v60 }
 0x1fe   : > { %v2221_v59 = vsel %vm2157_vm9, %v2051_v36, %v2189_v42  ;;  %vm2155_vm10 = vcmp.gt.f32.partialorder %v2043_v51, 0.0  ;;  %v2187_v34 = vmul.f32 0.2, %v2043_v51  ;;  %v2064_v31 = vadd.f32 %v5041_v25, %v1903_v4  ;;  %v2425_v45 = vld [vmem:[#allocation2 + $0x38] sm:$0xff]  ;;  %4886 = vmatprep.subr.bf16.mxu0 %v5230_v11 }
 0x1ff   : > { %v6500_v53 = vpop.f32.mrf.mxu1  ;;  %2253 = vst.msk [vmem:[#allocation2 + $0x69] sm:$0xff] %vm332_vm0, %v2221_v59  ;;  %v2055_v54 = vpop.f32.mrf.mxu0  ;;  %v2331_v42 = vld [vmem:[#allocation2 + $0x39] sm:$0xff]  ;;  %v2424_v59 = vld [vmem:[#allocation2 + $0x30] sm:$0xff]  ;;  %v4702_v48 = vadd.f32 %v6376_v1, %v6366_v29 }
 0x200   : > { %v2219_v22 = vsel %vm2155_vm10, %v2043_v51, %v2187_v34  ;;  %vm2160_vm11 = vcmp.gt.f32.partialorder %v2064_v31, 0.0  ;;  %v2192_v62 = vmul.f32 0.2, %v2064_v31  ;;  %v2056_v10 = vadd.f32 %v2055_v54, %v1895_v3  ;;  %v2423_v57 = vld [vmem:[#allocation2 + $0x20] sm:$0xff]  ;;  %v2330_v34 = vld [vmem:[#allocation2 + $0x31] sm:$0xff] }
 0x201   : > { %v6512_v46 = vpop.f32.mrf.mxu1  ;;  %v2329_v58 = vld [vmem:[#allocation2 + $0x21] sm:$0xff]  ;;  %2251 = vst.msk [vmem:[#allocation2 + $0x51] sm:$0xff] %vm332_vm0, %v2219_v22  ;;  %v5042_v9 = vpop.f32.mrf.mxu0  ;;  %v2454_v5 = vpack.c.bf16 %v2423_v57, %v2422_v2  ;;  %v2455_v15 = vpack.c.bf16 %v2425_v45, %v2424_v59  ;;  %v6544_v39 = vpack.c.bf16 %v2331_v42, %v2330_v34  ;;  %4887 = vmatpush3.bf16.msra.mxu0 %v5231_v21  ;;  %v5233_v45 = vld [vmem:[%s7653_s3 + $0x98] sm:$0xff]   ;;  %v5234_v42 = vld [vmem:[%s7653_s3 + $0xd0] sm:$0xff]  }
 0x202   : > { %v2359_v23 = vpack.c.bf16 %v2329_v58, %v2328_v41  ;;  %v2224_v36 = vsel %vm2160_vm11, %v2064_v31, %v2192_v62  ;;  %vm2158_vm12 = vcmp.gt.f32.partialorder %v2056_v10, 0.0  ;;  %v2190_v49 = vmul.f32 0.2, %v2056_v10  ;;  %v7749_v31 = vld [vmem:[#allocation51_spill] sm:$0xff]  ;;  %v7750_v62 = vld [vmem:[#allocation41_spill] sm:$0xff]  ;;  %4888 = vmatprep.subr.bf16.mxu0 %v5232_v30 }
 0x203   : > { %v2067_v37 = vadd.f32 %v5042_v9, %v1906_v28  ;;  %v6521_v4 = vpop.f32.mrf.mxu1  ;;  %2256 = vst.msk [vmem:[#allocation2 + $0x91] sm:$0xff] %vm332_vm0, %v2224_v36  ;;  %v2058_v51 = vpop.f32.mrf.mxu0  ;;  %2774 = vrot.lane.b32.xlu0 %v2454_v5, %s5312_s24  ;;  %v4693_v6 = vadd.f32 %v7749_v31, %v7748_v61  ;;  %v1922_v41 = vadd.f32 %v4699_v50, %v6441_v44 }
 0x204   : > { %2728 = vrot.lane.b32.xlu1 %v2359_v23, %s5312_s24  ;;  %v2222_v63 = vsel %vm2158_vm12, %v2056_v10, %v2190_v49  ;;  %v2059_v3 = vadd.f32 %v2058_v51, %v1898_v12  ;;  %v6554_v10 = vadd.f32 %v7750_v62, %v6218_v38  ;;  %v2426_v58 = vld [vmem:[#allocation2 + $0x48] sm:$0xff]  ;;  %v1935_v34 = vadd.f32 %v4708_v32, %v6488_v24 }
 0x205   : > { %vm2161_vm13 = vcmp.gt.f32.partialorder %v2067_v37, 0.0  ;;  %v2193_v25 = vmul.f32 0.2, %v2067_v37  ;;  %v6535_v43 = vpop.f32.mrf.mxu1  ;;  %2254 = vst.msk [vmem:[#allocation2 + $0x79] sm:$0xff] %vm332_vm0, %v2222_v63  ;;  %v5045_v13 = vpop.f32.mrf.mxu0  ;;  %v2332_v40 = vld [vmem:[#allocation2 + $0x49] sm:$0xff]  ;;  %v1914_v49 = vadd.f32 %v4693_v6, %v6429_v26  ;;  %v7752_v63 = vld [vmem:[#allocation43_spill] sm:$0xff]  ;;  %4889 = vmatpush3.bf16.msra.mxu0 %v5233_v45  ;;  %v1927_v24 = vadd.f32 %v4702_v48, %v6472_v16 }
 0x206   : > { %vm2159_vm14 = vcmp.gt.f32.partialorder %v2059_v3, 0.0  ;;  %v2191_v28 = vmul.f32 0.2, %v2059_v3  ;;  %v2080_v2 = vadd.f32 %v5045_v13, %v1919_v47  ;;  %v2429_v26 = vld [vmem:[#allocation2 + $0x68] sm:$0xff]  ;;  %v7751_v47 = vld [vmem:[#allocation42_spill] sm:$0xff]  ;;  %v2428_v13 = vld [vmem:[#allocation2 + $0x60] sm:$0xff]  ;;  %4890 = vmatprep.subr.bf16.mxu0 %v5234_v42 }
 0x207   : > { %v2225_v54 = vsel %vm2161_vm13, %v2067_v37, %v2193_v25  ;;  %v6550_v22 = vpop.f32.mrf.mxu1  ;;  %v2071_v57 = vpop.f32.mrf.mxu0  ;;  %2776 = vrot.lane.b32.xlu0 %v2455_v15, %s5312_s24  ;;  %v2335_v51 = vld [vmem:[#allocation2 + $0x69] sm:$0xff]  ;;  %v4611_v25 = vadd.f32 %v7752_v63, %v7751_v47  ;;  %v2457_v30 = vpack.c.bf16 %v2429_v26, %v2428_v13  ;;  %v5238_v45 = vld [vmem:[%s7653_s3 + $0xc0] sm:$0xff]  }
 0x208   : > { %2257 = vst.msk [vmem:[#allocation2 + $0x99] sm:$0xff] %vm332_vm0, %v2225_v54  ;;  %2730 = vrot.lane.b32.xlu1 %v6544_v39, %s5312_s24  ;;  %v2223_v52 = vsel %vm2159_vm14, %v2059_v3, %v2191_v28  ;;  %vm2164_vm15 = vcmp.gt.f32.partialorder %v2080_v2, 0.0  ;;  %v2196_v9 = vmul.f32 0.2, %v2080_v2  ;;  %v2072_v12 = vadd.f32 %v2071_v57, %v1911_v0  ;;  %v2427_v23 = vld [vmem:[#allocation2 + $0x50] sm:$0xff]  ;;  %v2334_v0 = vld [vmem:[#allocation2 + $0x61] sm:$0xff] }
 0x209   : > { %v6563_v5 = vpop.f32.mrf.mxu1  ;;  %v2333_v60 = vld [vmem:[#allocation2 + $0x51] sm:$0xff]  ;;  %2255 = vst.msk [vmem:[#allocation2 + $0x81] sm:$0xff] %vm332_vm0, %v2223_v52  ;;  %v5046_v36 = vpop.f32.mrf.mxu0  ;;  %v2456_v44 = vpack.c.bf16 %v2427_v23, %v2426_v58  ;;  %v4711_v3 = vadd.f32 %v6454_v33, %v6438_v17  ;;  %v4705_v33 = vadd.f32 %v6401_v14, %v6388_v55  ;;  %v6598_v54 = vpack.c.bf16 %v2335_v51, %v2334_v0  ;;  %v5236_v28 = vld [vmem:[%s7653_s3 + $0xc8] sm:$0xff]  }
 0x20a   : > { %v6569_v37 = vpack.c.bf16 %v2333_v60, %v2332_v40  ;;  %v2228_v11 = vsel %vm2164_vm15, %v2080_v2, %v2196_v9  ;;  %vm2162_vm1 = vcmp.gt.f32.partialorder %v2072_v12, 0.0  ;;  %v2194_v29 = vmul.f32 0.2, %v2072_v12  ;;  %v5235_v17 = vld [vmem:[%s7653_s3 + $0x90] sm:$0xff]   ;;  %v7754_v26 = vld [vmem:[#allocation45_spill] sm:$0xff] }
 0x20b   : > { %v2083_v1 = vadd.f32 %v5046_v36, %v1922_v41  ;;  %v6578_v50 = vpop.f32.mrf.mxu1  ;;  %2260 = vst.msk [vmem:[#allocation2 + $0xc1] sm:$0xff] %vm332_vm0, %v2228_v11  ;;  %v2074_v59 = vpop.f32.mrf.mxu0  ;;  %2778 = vrot.lane.b32.xlu0 %v2456_v44, %s5312_s24  ;;  %v6607_v55 = vadd.f32 %v4611_v25, %v6218_v38  ;;  %v4720_v14 = vadd.f32 %v6535_v43, %v6521_v4  ;;  %v5237_v44 = vld [vmem:[%s7653_s3 + $0x88] sm:$0xff]  }
 0x20c   : > { %2732 = vrot.lane.b32.xlu1 %v6569_v37, %s5312_s24  ;;  %v2226_v21 = vsel %vm2162_vm1, %v2072_v12, %v2194_v29  ;;  %v2075_v31 = vadd.f32 %v2074_v59, %v1914_v49  ;;  %v1938_v41 = vadd.f32 %v4711_v3, %v6491_v8  ;;  %v2430_v58 = vld [vmem:[#allocation2 + $0x78] sm:$0xff]  ;;  %4891 = vmatpush3.bf16.msra.mxu0 %v5235_v17 }
 0x20d   : > { %vm2165_vm2 = vcmp.gt.f32.partialorder %v2083_v1, 0.0  ;;  %v2197_v61 = vmul.f32 0.2, %v2083_v1  ;;  %v6589_v6 = vpop.f32.mrf.mxu1  ;;  %2258 = vst.msk [vmem:[#allocation2 + $0xa9] sm:$0xff] %vm332_vm0, %v2226_v21  ;;  %v5049_v15 = vpop.f32.mrf.mxu0  ;;  %v2336_v60 = vld [vmem:[#allocation2 + $0x79] sm:$0xff]  ;;  %v4714_v43 = vadd.f32 %v6481_v20, %v6468_v56  ;;  %v1930_v36 = vadd.f32 %v4705_v33, %v6475_v18  ;;  %4892 = vmatprep.subr.bf16.mxu0 %v5236_v28 }
 0x20e   : > { %vm2163_vm3 = vcmp.gt.f32.partialorder %v2075_v31, 0.0  ;;  %v2195_v62 = vmul.f32 0.2, %v2075_v31  ;;  %v2096_v32 = vadd.f32 %v5049_v15, %v1935_v34  ;;  %v4723_v47 = vadd.f32 %v6563_v5, %v6550_v22  ;;  %v5239_v22 = vld [vmem:[%s7653_s3 + $0x80] sm:$0xff]   ;;  %v7755_v28 = vld [vmem:[#allocation47_spill] sm:$0xff] }
 0x20f   : > { %v2229_v2 = vsel %vm2165_vm2, %v2083_v1, %v2197_v61  ;;  %v6604_v57 = vpop.f32.mrf.mxu1  ;;  %v2087_v16 = vpop.f32.mrf.mxu0  ;;  %2780 = vrot.lane.b32.xlu0 %v2457_v30, %s5312_s24  ;;  %v2433_v29 = vld [vmem:[#allocation2 + $0x98] sm:$0xff]  ;;  %v7753_v1 = vld [vmem:[#allocation44_spill] sm:$0xff]  ;;  %v1951_v25 = vadd.f32 %v4720_v14, %v6554_v10  ;;  %v2432_v61 = vld [vmem:[#allocation2 + $0x90] sm:$0xff]  ;;  %v4717_v5 = vadd.f32 %v6512_v46, %v6500_v53  ;;  %v1943_v10 = vadd.f32 %v4714_v43, %v6504_v27 }
 0x210   : > { %2261 = vst.msk [vmem:[#allocation2 + $0xc9] sm:$0xff] %vm332_vm0, %v2229_v2  ;;  %2734 = vrot.lane.b32.xlu1 %v6598_v54, %s5312_s24  ;;  %v2227_v52 = vsel %vm2163_vm3, %v2075_v31, %v2195_v62  ;;  %vm2168_vm4 = vcmp.gt.f32.partialorder %v2096_v32, 0.0  ;;  %v2200_v9 = vmul.f32 0.2, %v2096_v32  ;;  %v2088_v12 = vadd.f32 %v2087_v16, %v1927_v24  ;;  %v2431_v40 = vld [vmem:[#allocation2 + $0x80] sm:$0xff]  ;;  %v2338_v31 = vld [vmem:[#allocation2 + $0x91] sm:$0xff]  ;;  %4893 = vmatpush3.bf16.msra.mxu0 %v5237_v44 }
 0x211   : > { %v6616_v23 = vpop.f32.mrf.mxu1  ;;  %v2337_v4 = vld [vmem:[#allocation2 + $0x81] sm:$0xff]  ;;  %2259 = vst.msk [vmem:[#allocation2 + $0xb1] sm:$0xff] %vm332_vm0, %v2227_v52  ;;  %v5050_v48 = vpop.f32.mrf.mxu0  ;;  %v2458_v8 = vpack.c.bf16 %v2431_v40, %v2430_v58  ;;  %v2339_v18 = vld [vmem:[#allocation2 + $0x99] sm:$0xff]  ;;  %v4614_v51 = vadd.f32 %v7754_v26, %v7753_v1  ;;  %v2459_v0 = vpack.c.bf16 %v2433_v29, %v2432_v61  ;;  %4894 = vmatprep.subr.bf16.mxu0 %v5238_v45  ;;  %v7756_v43 = vmov 0.0  }
 0x212   : > { %v6622_v49 = vpack.c.bf16 %v2337_v4, %v2336_v60  ;;  %v2232_v42 = vsel %vm2168_vm4, %v2096_v32, %v2200_v9  ;;  %vm2166_vm5 = vcmp.gt.f32.partialorder %v2088_v12, 0.0  ;;  %v2198_v56 = vmul.f32 0.2, %v2088_v12  ;;  %v7757_v1 = vld [vmem:[#allocation48_spill] sm:$0xff] }
 0x213   : > { %v2099_v20 = vadd.f32 %v5050_v48, %v1938_v41  ;;  %v4730_v11 = vpop.f32.mrf.mxu1  ;;  %2264 = vst.msk [vmem:[#allocation2 + $0xf1] sm:$0xff] %vm332_vm0, %v2232_v42  ;;  %v2090_v63 = vpop.f32.mrf.mxu0  ;;  %2782 = vrot.lane.b32.xlu0 %v2458_v8, %s5312_s24  ;;  %v6647_v17 = vpack.c.bf16 %v2339_v18, %v2338_v31  ;;  %v1806_v2 = vadd.f32 %v7755_v28, %v6218_v38  ;;  %v2436_v18 = vld [vmem:[#allocation2 + $0xc0] sm:$0xff] }
 0x214   : > { %2736 = vrot.lane.b32.xlu1 %v6622_v49, %s5312_s24  ;;  %v2230_v3 = vsel %vm2166_vm5, %v2088_v12, %v2198_v56  ;;  %v2091_v34 = vadd.f32 %v2090_v63, %v1930_v36  ;;  %v1954_v27 = vadd.f32 %v4723_v47, %v6607_v55  ;;  %v2434_v62 = vld [vmem:[#allocation2 + $0xa8] sm:$0xff]  ;;  %4895 = vmatpush3.bf16.msra.mxu0 %v5239_v22  ;;  %v2518_v61 = vld [vmem:[#allocation2 + $0x1a] sm:$0xff]  ;;  %v7758_v22 = vld [vmem:[#allocation46_spill] sm:$0xff]  ;;  %vm5313_vm5 = vmmov 0  }
 0x215   : > { %vm2169_vm6 = vcmp.gt.f32.partialorder %v2099_v20, 0.0  ;;  %v2201_v59 = vmul.f32 0.2, %v2099_v20  ;;  %v4731_v21 = vpop.f32.mrf.mxu1  ;;  %2262 = vst.msk [vmem:[#allocation2 + $0xd9] sm:$0xff] %vm332_vm0, %v2230_v3  ;;  %v5053_v13 = vpop.f32.mrf.mxu0  ;;  %v2340_v52 = vld [vmem:[#allocation2 + $0xa9] sm:$0xff]  ;;  %v4726_v12 = vadd.f32 %v6589_v6, %v6578_v50  ;;  %v1946_v60 = vadd.f32 %v4717_v5, %v6527_v19  ;;  %5103 = vmatprep.subr.mxu0 %v7756_v43 }
 0x216   : > { %vm2167_vm7 = vcmp.gt.f32.partialorder %v2091_v34, 0.0  ;;  %v2199_v15 = vmul.f32 0.2, %v2091_v34  ;;  %v2112_v24 = vadd.f32 %v5053_v13, %v1951_v25  ;;  %v4732_v53 = vadd.f32 %v4731_v21, %v4730_v11  ;;  %v2519_v31 = vld [vmem:[#allocation2 + $0x22] sm:$0xff] }
 0x217   : > { %v2233_v33 = vsel %vm2169_vm6, %v2099_v20, %v2201_v59  ;;  %v4733_v30 = vpop.f32.mrf.mxu1  ;;  %v2103_v46 = vpop.f32.mrf.mxu0  ;;  %2784 = vrot.lane.b32.xlu0 %v2459_v0, %s5312_s24  ;;  %v2437_v45 = vld [vmem:[#allocation2 + $0xc8] sm:$0xff]  ;;  %v1798_v42 = vadd.f32 %v4614_v51, %v6218_v38  ;;  %v1809_v26 = vadd.f32 %v7757_v1, %v6218_v38  ;;  %v4729_v51 = vadd.f32 %v6616_v23, %v6604_v57 }
 0x218   : > { %2265 = vst.msk [vmem:[#allocation2 + $0xf9] sm:$0xff] %vm332_vm0, %v2233_v33  ;;  %2738 = vrot.lane.b32.xlu1 %v6647_v17, %s5312_s24  ;;  %v2231_v32 = vsel %vm2167_vm7, %v2091_v34, %v2199_v15  ;;  %vm2172_vm8 = vcmp.gt.f32.partialorder %v2112_v24, 0.0  ;;  %v2204_v14 = vmul.f32 0.2, %v2112_v24  ;;  %v2104_v16 = vadd.f32 %v2103_v46, %v1943_v10  ;;  %v2435_v58 = vld [vmem:[#allocation2 + $0xb0] sm:$0xff]  ;;  %v7759_v13 = vld [vmem:[#allocation53_spill] sm:$0xff] }
 0x219   : > { %v4734_v41 = vpop.f32.mrf.mxu1  ;;  %v2341_v9 = vld [vmem:[#allocation2 + $0xb1] sm:$0xff]  ;;  %2263 = vst.msk [vmem:[#allocation2 + $0xe1] sm:$0xff] %vm332_vm0, %v2231_v32  ;;  %v5054_v40 = vpop.f32.mrf.mxu0  ;;  %v2460_v4 = vpack.c.bf16 %v2435_v58, %v2434_v62  ;;  %v1967_v19 = vadd.f32 %v4732_v53, %v1806_v2  ;;  %v1959_v63 = vadd.f32 %v4726_v12, %v1798_v42  ;;  %v2461_v25 = vpack.c.bf16 %v2437_v45, %v2436_v18  ;;  %v2343_v58 = vld [vmem:[#allocation2 + $0xc9] sm:$0xff] }
 0x21a   : > { %v6660_v55 = vpack.c.bf16 %v2341_v9, %v2340_v52  ;;  %v2236_v48 = vsel %vm2172_vm8, %v2112_v24, %v2204_v14  ;;  %vm2170_vm9 = vcmp.gt.f32.partialorder %v2104_v16, 0.0  ;;  %v2202_v36 = vmul.f32 0.2, %v2104_v16  ;;  %v7760_v10 = vld [vmem:[#allocation54_spill] sm:$0xff] }
 0x21b   : > { %v2115_v8 = vadd.f32 %v5054_v40, %v1954_v27  ;;  %v4736_v44 = vpop.f32.mrf.mxu1  ;;  %2268 = vst.msk [vmem:[#allocation2 + $0x121] sm:$0xff] %vm332_vm0, %v2236_v48  ;;  %v4735_v50 = vadd.f32 %v4734_v41, %v4733_v30  ;;  %v2106_v6 = vpop.f32.mrf.mxu0  ;;  %2786 = vrot.lane.b32.xlu0 %v2460_v4, %s5312_s24  ;;  %v1801_v5 = vadd.f32 %v7758_v22, %v6218_v38  ;;  %v7761_v52 = vld [vmem:[#allocation50_spill] sm:$0xff]  ;;  %vm4144_vm6 = vcmask 1043456  }
 0x21c   : > { %2740 = vrot.lane.b32.xlu1 %v6660_v55, %s5312_s24  ;;  %v2234_v56 = vsel %vm2170_vm9, %v2104_v16, %v2202_v36  ;;  %v2107_v11 = vadd.f32 %v2106_v6, %v1946_v60  ;;  %v4632_v0 = vadd.f32 %v7760_v10, %v7759_v13  ;;  %v2438_v28 = vld [vmem:[#allocation2 + $0xd8] sm:$0xff]  ;;  %v6682_v32 = vpack.c.bf16 %v2519_v31, %v2518_v61 }
 0x21d   : > { %vm2173_vm10 = vcmp.gt.f32.partialorder %v2115_v8, 0.0  ;;  %v2205_v20 = vmul.f32 0.2, %v2115_v8  ;;  %v4737_v29 = vpop.f32.mrf.mxu1  ;;  %2266 = vst.msk [vmem:[#allocation2 + $0x109] sm:$0xff] %vm332_vm0, %v2234_v56  ;;  %v5057_v47 = vpop.f32.mrf.mxu0  ;;  %v1970_v23 = vadd.f32 %v4735_v50, %v1809_v26  ;;  %v1962_v27 = vadd.f32 %v4729_v51, %v1801_v5  ;;  %v7762_v26 = vld [vmem:[#allocation52_spill] sm:$0xff] }
 0x21e   : > { %vm2171_vm11 = vcmp.gt.f32.partialorder %v2107_v11, 0.0  ;;  %v2203_v59 = vmul.f32 0.2, %v2107_v11  ;;  %v2128_v34 = vadd.f32 %v5057_v47, %v1967_v19  ;;  %v4738_v53 = vadd.f32 %v4737_v29, %v4736_v44  ;;  %v2521_v29 = vld [vmem:[#allocation2 + $0x3a] sm:$0xff] }
 0x21f   : > { %v2237_v3 = vsel %vm2173_vm10, %v2115_v8, %v2205_v20  ;;  %v4739_v21 = vpop.f32.mrf.mxu1  ;;  %v2119_v57 = vpop.f32.mrf.mxu0  ;;  %2788 = vrot.lane.b32.xlu0 %v2461_v25, %s5312_s24  ;;  %v1814_v9 = vadd.f32 %v7761_v52, %v6218_v38  ;;  %v4635_v12 = vadd.f32 %v6372_v35, %v6360_v7  ;;  %v2342_v8 = vld [vmem:[#allocation2 + $0xc1] sm:$0xff]  ;;  %v1822_v44 = vadd.f32 %v4632_v0, %v6218_v38  ;;  %v2441_v20 = vld [vmem:[#allocation2 + $0xf8] sm:$0xff]  ;;  %v5247_v38 = vld [vmem:[%s7652_s2] ss:$0 sm:$0xff] }
 0x220   : > { %2269 = vst.msk [vmem:[#allocation2 + $0x129] sm:$0xff] %vm332_vm0, %v2237_v3  ;;  %2870 = vrot.lane.b32.xlu1 %v6544_v39, %s5312_s24  ;;  %v2235_v33 = vsel %vm2171_vm11, %v2107_v11, %v2203_v59  ;;  %vm2176_vm12 = vcmp.gt.f32.partialorder %v2128_v34, 0.0  ;;  %v2208_v15 = vmul.f32 0.2, %v2128_v34  ;;  %v2120_v24 = vadd.f32 %v2119_v57, %v1959_v63  ;;  %v2439_v2 = vld [vmem:[#allocation2 + $0xe0] sm:$0xff]  ;;  %v2520_v11 = vld [vmem:[#allocation2 + $0x32] sm:$0xff] }
 0x221   : > { %v4740_v30 = vpop.f32.mrf.mxu1  ;;  %2267 = vst.msk [vmem:[#allocation2 + $0x111] sm:$0xff] %vm332_vm0, %v2235_v33  ;;  %v5058_v46 = vpop.f32.mrf.mxu0  ;;  %v2462_v62 = vpack.c.bf16 %v2439_v2, %v2438_v28  ;;  %v1975_v35 = vadd.f32 %v4738_v53, %v1814_v9  ;;  %v6694_v42 = vpack.c.bf16 %v2343_v58, %v2342_v8  ;;  %v1817_v51 = vadd.f32 %v5247_v38, %v7762_v26  ;;  %v2440_v59 = vld [vmem:[#allocation2 + $0xf0] sm:$0xff]  ;;  %v2345_v13 = vld [vmem:[#allocation2 + $0xe1] sm:$0xff]  ;;  %v2347_v52 = vld [vmem:[#allocation2 + $0xf9] sm:$0xff] }
 0x222   : > { %v2240_v14 = vsel %vm2176_vm12, %v2128_v34, %v2208_v15  ;;  %vm2174_vm13 = vcmp.gt.f32.partialorder %v2120_v24, 0.0  ;;  %v2206_v16 = vmul.f32 0.2, %v2120_v24  ;;  %v2131_v39 = vadd.f32 %v5058_v46, %v1970_v23  ;;  %v2344_v15 = vld [vmem:[#allocation2 + $0xd9] sm:$0xff]  ;;  %v2522_v46 = vld [vmem:[#allocation2 + $0x4a] sm:$0xff] }
 0x223   : > { %v4742_v41 = vpop.f32.mrf.mxu1  ;;  %2272 = vst.msk [vmem:[#allocation2 + $0x151] sm:$0xff] %vm332_vm0, %v2240_v14  ;;  %v2122_v40 = vpop.f32.mrf.mxu0  ;;  %2790 = vrot.lane.b32.xlu0 %v2462_v62, %s5312_s24  ;;  %v4741_v50 = vadd.f32 %v4740_v30, %v4739_v21  ;;  %v1825_v47 = vadd.f32 %v5247_v38, %v4635_v12  ;;  %v6706_v31 = vpack.c.bf16 %v2441_v20, %v2440_v59  ;;  %v2346_v9 = vld [vmem:[#allocation2 + $0xf1] sm:$0xff]  ;;  %v2350_v20 = vld [vmem:[#allocation2 + $0x121] sm:$0xff]  ;;  %vm4140_vm7 = vcmask 31744  }
 0x224   : > { %2822 = vrot.lane.b32.xlu1 %v6682_v32, %s5312_s24  ;;  %v2238_v60 = vsel %vm2174_vm13, %v2120_v24, %v2206_v16  ;;  %vm2177_vm14 = vcmp.gt.f32.partialorder %v2131_v39, 0.0  ;;  %v2209_v4 = vmul.f32 0.2, %v2131_v39  ;;  %v2123_v48 = vadd.f32 %v2122_v40, %v1962_v27  ;;  %v2523_v27 = vld [vmem:[#allocation2 + $0x52] sm:$0xff]  ;;  %v2442_v16 = vld [vmem:[#allocation2 + $0x108] sm:$0xff] }
 0x225   : > { %v4743_v36 = vpop.f32.mrf.mxu1  ;;  %2270 = vst.msk [vmem:[#allocation2 + $0x139] sm:$0xff] %vm332_vm0, %v2238_v60  ;;  %v5061_v7 = vpop.f32.mrf.mxu0  ;;  %v6708_v22 = vpack.c.bf16 %v2521_v29, %v2520_v11  ;;  %v1978_v5 = vadd.f32 %v4741_v50, %v1817_v51  ;;  %v6715_v28 = vpack.c.bf16 %v2345_v13, %v2344_v15  ;;  %v6723_v58 = vpack.c.bf16 %v2523_v27, %v2522_v46  ;;  %v2524_v40 = vld [vmem:[#allocation2 + $0x62] sm:$0xff]  ;;  %v2525_v60 = vld [vmem:[#allocation2 + $0x6a] sm:$0xff]  ;;  %v2531_v59 = vld [vmem:[#allocation2 + $0xb2] sm:$0xff] }
 0x226   : > { %v4744_v45 = vadd.f32 %v4743_v36, %v4742_v41  ;;  %v2241_v6 = vsel %vm2177_vm14, %v2131_v39, %v2209_v4  ;;  %vm2175_vm15 = vcmp.gt.f32.partialorder %v2123_v48, 0.0  ;;  %v2207_v19 = vmul.f32 0.2, %v2123_v48  ;;  %v2444_v4 = vld [vmem:[#allocation2 + $0x120] sm:$0xff]  ;;  %v2536_v46 = vld [vmem:[#allocation2 + $0xf2] sm:$0xff] }
 0x227   : > { %v4745_v56 = vpop.f32.mrf.mxu1  ;;  %2273 = vst.msk [vmem:[#allocation2 + $0x159] sm:$0xff] %vm332_vm0, %v2241_v6  ;;  %v2135_v1 = vpop.f32.mrf.mxu0  ;;  %2742 = vrot.lane.b32.xlu0 %v6694_v42, %s5312_s24  ;;  %v6729_v12 = vpack.c.bf16 %v2347_v52, %v2346_v9  ;;  %v6737_v36 = vpack.c.bf16 %v2525_v60, %v2524_v40  ;;  %v2527_v50 = vld [vmem:[#allocation2 + $0x82] sm:$0xff]  ;;  %v2534_v15 = vld [vmem:[#allocation2 + $0xda] sm:$0xff] }
 0x228   : > { %v1983_v18 = vadd.f32 %v4744_v45, %v1822_v44  ;;  %2872 = vrot.lane.b32.xlu1 %v6569_v37, %s5312_s24  ;;  %v2239_v63 = vsel %vm2175_vm15, %v2123_v48, %v2207_v19  ;;  %v2136_v25 = vadd.f32 %v2135_v1, %v1975_v35  ;;  %v2443_v53 = vld [vmem:[#allocation2 + $0x110] sm:$0xff]  ;;  %v2526_v35 = vld [vmem:[#allocation2 + $0x7a] sm:$0xff]  ;;  %v2279_v60 = vld [vmem:[#allocation2 + $0x8] sm:$0xff] }
 0x229   : > { %v4746_v3 = vpop.f32.mrf.mxu1  ;;  %2271 = vst.msk [vmem:[#allocation2 + $0x141] sm:$0xff] %vm332_vm0, %v2239_v63  ;;  %v5062_v61 = vpop.f32.mrf.mxu0  ;;  %v2464_v41 = vpack.c.bf16 %v2443_v53, %v2442_v16  ;;  %v2349_v8 = vld [vmem:[#allocation2 + $0x111] sm:$0xff]  ;;  %v2348_v44 = vld [vmem:[#allocation2 + $0x109] sm:$0xff]  ;;  %v6751_v19 = vpack.c.bf16 %v2527_v50, %v2526_v35  ;;  %v2529_v1 = vld [vmem:[#allocation2 + $0x9a] sm:$0xff] }
 0x22a   : > { %v2144_v34 = vadd.f32 %v5061_v7, %v1983_v18  ;;  %v4747_v21 = vadd.f32 %v4746_v3, %v4745_v56  ;;  %vm2178_vm1 = vcmp.gt.f32.partialorder %v2136_v25, 0.0  ;;  %v2210_v37 = vmul.f32 0.2, %v2136_v25  ;;  %v2351_v56 = vld [vmem:[#allocation2 + $0x129] sm:$0xff]  ;;  %v2528_v18 = vld [vmem:[#allocation2 + $0x92] sm:$0xff]  ;;  %v2537_v27 = vld [vmem:[#allocation2 + $0xfa] sm:$0xff] }
 0x22b   : > { %v2138_v57 = vpop.f32.mrf.mxu0  ;;  %2792 = vrot.lane.b32.xlu0 %v6706_v31, %s5312_s24  ;;  %v6743_v45 = vpack.c.bf16 %v2349_v8, %v2348_v44  ;;  %v2370_v11 = vpack.c.bf16 %v2351_v56, %v2350_v20  ;;  %v6762_v26 = vpack.c.bf16 %v2529_v1, %v2528_v18  ;;  %v2530_v3 = vld [vmem:[#allocation2 + $0xaa] sm:$0xff]  ;;  %v2278_v40 = vld [vmem:[#allocation2] sm:$0xff]  ;;  %v2727_v44 = vpop.permute.xlu1 %2726 }
 0x22c   : > { %vm2180_vm2 = vcmp.gt.f32.partialorder %v2144_v34, 0.0  ;;  %v2212_v10 = vmul.f32 0.2, %v2144_v34  ;;  %v1986_v0 = vadd.f32 %v4747_v21, %v1825_v47  ;;  %2824 = vrot.lane.b32.xlu1 %v6708_v22, %s5312_s24  ;;  %v2242_v23 = vsel %vm2178_vm1, %v2136_v25, %v2210_v37  ;;  %v2352_v47 = vld [vmem:[#allocation2 + $0x139] sm:$0xff]  ;;  %v2354_v37 = vld [vmem:[#allocation2 + $0x151] sm:$0xff] }
 0x22d   : > { %v2139_v33 = vadd.f32 %v2138_v57, %v1978_v5  ;;  %2274 = vst.msk [vmem:[#allocation2 + $0x169] sm:$0xff] %vm332_vm0, %v2242_v23  ;;  %v6773_v21 = vpack.c.bf16 %v2531_v59, %v2530_v3  ;;  %v2310_v35 = vpack.c.bf16 %v2279_v60, %v2278_v40  ;;  %v2644_v59 = vld [vmem:[#allocation2 + $0x199] sm:$0xff] }
 0x22e   : > { %v2244_v24 = vsel %vm2180_vm2, %v2144_v34, %v2212_v10  ;;  %v2147_v30 = vadd.f32 %v5062_v61, %v1986_v0  ;;  %v2449_v29 = vld [vmem:[#allocation2 + $0x158] sm:$0xff]  ;;  %v2532_v10 = vld [vmem:[#allocation2 + $0xc2] sm:$0xff]  ;;  %v2533_v0 = vld [vmem:[#allocation2 + $0xca] sm:$0xff] }
 0x22f   : > { %2276 = vst.msk [vmem:[#allocation2 + $0x181] sm:$0xff] %vm332_vm0, %v2244_v24  ;;  %vm2179_vm3 = vcmp.gt.f32.partialorder %v2139_v33, 0.0  ;;  %v2211_v2 = vmul.f32 0.2, %v2139_v33  ;;  %2744 = vrot.lane.b32.xlu0 %v6715_v28, %s5312_s24  ;;  %v2355_v61 = vld [vmem:[#allocation2 + $0x159] sm:$0xff]  ;;  %v6785_v23 = vpack.c.bf16 %v2533_v0, %v2532_v10  ;;  %v2535_v24 = vld [vmem:[#allocation2 + $0xe2] sm:$0xff] }
 0x230   : > { %vm2181_vm4 = vcmp.gt.f32.partialorder %v2147_v30, 0.0  ;;  %v2213_v62 = vmul.f32 0.2, %v2147_v30  ;;  %2874 = vrot.lane.b32.xlu1 %v6598_v54, %s5312_s24  ;;  %v2445_v54 = vld [vmem:[#allocation2 + $0x128] sm:$0xff]  ;;  %v2447_v7 = vld [vmem:[#allocation2 + $0x140] sm:$0xff]  ;;  %v6779_v5 = vpack.c.bf16 %v2355_v61, %v2354_v37  ;;  %v6792_v53 = vpack.c.bf16 %v2535_v24, %v2534_v15  ;;  %v5248_v61 = vld [vmem:[%s7653_s3 + $0x118] sm:$0xff]  }
 0x231   : > { %v2243_v14 = vsel %vm2179_vm3, %v2139_v33, %v2211_v2  ;;  %v6735_v48 = vpack.c.bf16 %v2445_v54, %v2444_v4  ;;  %v2353_v51 = vld [vmem:[#allocation2 + $0x141] sm:$0xff]  ;;  %v2544_v4 = vld [vmem:[#allocation2 + $0x152] sm:$0xff] }
 0x232   : > { %v2245_v39 = vsel %vm2181_vm4, %v2147_v30, %v2213_v62  ;;  %2275 = vst.msk [vmem:[#allocation2 + $0x171] sm:$0xff] %vm332_vm0, %v2243_v14  ;;  %v2371_v63 = vpack.c.bf16 %v2353_v51, %v2352_v47  ;;  %v2538_v62 = vld [vmem:[#allocation2 + $0x10a] sm:$0xff]  ;;  %v2539_v14 = vld [vmem:[#allocation2 + $0x112] sm:$0xff]  ;;  %v2542_v9 = vld [vmem:[#allocation2 + $0x13a] sm:$0xff] }
 0x233   : > { %2277 = vst.msk [vmem:[#allocation2 + $0x189] sm:$0xff] %vm332_vm0, %v2245_v39  ;;  %2794 = vrot.lane.b32.xlu0 %v2464_v41, %s5312_s24  ;;  %v6804_v16 = vpack.c.bf16 %v2539_v14, %v2538_v62  ;;  %v2540_v39 = vld [vmem:[#allocation2 + $0x122] sm:$0xff]  ;;  %v2541_v41 = vld [vmem:[#allocation2 + $0x12a] sm:$0xff]  ;;  %v2545_v8 = vld [vmem:[#allocation2 + $0x15a] sm:$0xff] }
 0x234   : > { %2826 = vrot.lane.b32.xlu1 %v6723_v58, %s5312_s24  ;;  %v2356_v30 = vld [vmem:[#allocation2 + $0x169] sm:$0xff]  ;;  %v6810_v52 = vpack.c.bf16 %v2541_v41, %v2540_v39  ;;  %v6820_v50 = vpack.c.bf16 %v2545_v8, %v2544_v4  ;;  %v2280_v24 = vld [vmem:[#allocation2 + $0x18] sm:$0xff] }
 0x235   : > { %v2543_v54 = vld [vmem:[#allocation2 + $0x142] sm:$0xff]  ;;  %v5240_v47 = vld [vmem:[%s7653_s3 + $0x110] sm:$0xff]  }
 0x236   : > { %v2642_v3 = vld [vmem:[#allocation2 + $0x181] sm:$0xff] }
 0x237   : > { %2746 = vrot.lane.b32.xlu0 %v6729_v12, %s5312_s24 }
 0x238   : > { %2876 = vrot.lane.b32.xlu1 %v6622_v49, %s5312_s24  ;;  %v2446_v49 = vld [vmem:[#allocation2 + $0x138] sm:$0xff] }
 0x239   : > { %v6749_v6 = vpack.c.bf16 %v2447_v7, %v2446_v49  ;;  %v2451_v25 = vld [vmem:[#allocation2 + $0x170] sm:$0xff] }
 0x23a   : > { %v2453_v13 = vld [vmem:[#allocation2 + $0x188] sm:$0xff]  ;;  %v2357_v33 = vld [vmem:[#allocation2 + $0x171] sm:$0xff] }
 0x23b   : > { %2796 = vrot.lane.b32.xlu0 %v6735_v48, %s5312_s24  ;;  %v6790_v2 = vpack.c.bf16 %v2357_v33, %v2356_v30  ;;  %v2375_v7 = vld [vmem:[#allocation2 + $0xa] sm:$0xff]  ;;  %v2547_v20 = vld [vmem:[#allocation2 + $0x172] sm:$0xff] }
 0x23c   : > { %2828 = vrot.lane.b32.xlu1 %v6737_v36, %s5312_s24  ;;  %v2546_v56 = vld [vmem:[#allocation2 + $0x16a] sm:$0xff] }
 0x23d   : > { %v2643_v51 = vld [vmem:[#allocation2 + $0x189] sm:$0xff] }
 0x23e   : > { %v6840_v10 = vpack.c.bf16 %v2643_v51, %v2642_v3  ;;  %v5241_v33 = vld [vmem:[%s7653_s3 + $0x108] sm:$0xff]   ;;  %v2286_v3 = vld [vmem:[#allocation2 + $0x60] sm:$0xff] }
 0x23f   : > { %2748 = vrot.lane.b32.xlu0 %v6743_v45, %s5312_s24  ;;  %v2471_v51 = vld [vmem:[#allocation2 + $0x21] sm:$0xff] }
 0x240   : > { %2878 = vrot.lane.b32.xlu1 %v6647_v17, %s5312_s24  ;;  %v2448_v17 = vld [vmem:[#allocation2 + $0x150] sm:$0xff] }
 0x241   : > { %v6760_v38 = vpack.c.bf16 %v2449_v29, %v2448_v17  ;;  %v6828_v17 = vpack.c.bf16 %v2547_v20, %v2546_v56 }
 0x243   : > { %2798 = vrot.lane.b32.xlu0 %v6749_v6, %s5312_s24 }
 0x244   : > { %2830 = vrot.lane.b32.xlu1 %v6751_v19, %s5312_s24 }
 0x247   : > { %2750 = vrot.lane.b32.xlu0 %v2370_v11, %s5312_s24 }
 0x248   : > { %2880 = vrot.lane.b32.xlu1 %v6660_v55, %s5312_s24  ;;  %v2450_v55 = vld [vmem:[#allocation2 + $0x168] sm:$0xff] }
 0x249   : > { %v6771_v34 = vpack.c.bf16 %v2451_v25, %v2450_v55  ;;  %v2549_v25 = vld [vmem:[#allocation2 + $0x18a] sm:$0xff]  ;;  %v2645_v55 = vld [vmem:[#allocation2 + $0x1a1] sm:$0xff] }
 0x24a   : > { %v2661_v15 = vpack.c.bf16 %v2645_v55, %v2644_v59 }
 0x24b   : > { %2800 = vrot.lane.b32.xlu0 %v6760_v38, %s5312_s24 }
 0x24c   : > { %2832 = vrot.lane.b32.xlu1 %v6762_v26, %s5312_s24 }
 0x24f   : > { %2752 = vrot.lane.b32.xlu0 %v2371_v63, %s5312_s24 }
 0x250   : > { %2882 = vrot.lane.b32.xlu1 %v6694_v42, %s5312_s24  ;;  %v2452_v42 = vld [vmem:[#allocation2 + $0x180] sm:$0xff] }
 0x251   : > { %v2469_v57 = vpack.c.bf16 %v2453_v13, %v2452_v42 }
 0x253   : > { %2802 = vrot.lane.b32.xlu0 %v6771_v34, %s5312_s24 }
 0x254   : > { %2834 = vrot.lane.b32.xlu1 %v6773_v21, %s5312_s24 }
 0x257   : > { %2754 = vrot.lane.b32.xlu0 %v6779_v5, %s5312_s24 }
 0x258   : > { %2884 = vrot.lane.b32.xlu1 %v6715_v28, %s5312_s24  ;;  %v6798_v28 = vpack.c.bf16 %v2537_v27, %v2536_v46  ;;  %v5242_v27 = vld [vmem:[%s7653_s3 + $0x100] sm:$0xff]  }
 0x25b   : > { %2804 = vrot.lane.b32.xlu0 %v2469_v57, %s5312_s24  ;;  %v2281_v57 = vld [vmem:[#allocation2 + $0x20] sm:$0xff] }
 0x25c   : > { %2836 = vrot.lane.b32.xlu1 %v6785_v23, %s5312_s24 }
 0x25f   : > { %2756 = vrot.lane.b32.xlu0 %v6790_v2, %s5312_s24 }
 0x260   : > { %2838 = vrot.lane.b32.xlu1 %v6792_v53, %s5312_s24 }
 0x263   : > { %2886 = vrot.lane.b32.xlu0 %v6729_v12, %s5312_s24  ;;  %v6815_v12 = vpack.c.bf16 %v2543_v54, %v2542_v9  ;;  %v2283_v9 = vld [vmem:[#allocation2 + $0x38] sm:$0xff]  ;;  %v2282_v54 = vld [vmem:[#allocation2 + $0x30] sm:$0xff] }
 0x264   : > { %2840 = vrot.lane.b32.xlu1 %v6798_v28, %s5312_s24  ;;  %v2312_v4 = vpack.c.bf16 %v2283_v9, %v2282_v54 }
 0x267   : > { %2888 = vrot.lane.b32.xlu0 %v6743_v45, %s5312_s24  ;;  %v2374_v45 = vld [vmem:[#allocation2 + $0x2] sm:$0xff] }
 0x268   : > { %2842 = vrot.lane.b32.xlu1 %v6804_v16, %s5312_s24  ;;  %v2406_v49 = vpack.c.bf16 %v2375_v7, %v2374_v45  ;;  %v2285_v7 = vld [vmem:[#allocation2 + $0x50] sm:$0xff] }
 0x26b   : > { %2890 = vrot.lane.b32.xlu0 %v2370_v11, %s5312_s24  ;;  %v2904_v11 = vsel %vm332_vm0, %v2310_v35, %v2727_v44  ;;  %v2284_v35 = vld [vmem:[#allocation2 + $0x48] sm:$0xff] }
 0x26c   : > { %2844 = vrot.lane.b32.xlu1 %v6810_v52, %s5312_s24  ;;  %v2313_v20 = vpack.c.bf16 %v2285_v7, %v2284_v35  ;;  %v2290_v7 = vld [vmem:[#allocation2 + $0x90] sm:$0xff] }
 0x26f   : > { %2892 = vrot.lane.b32.xlu0 %v2371_v63, %s5312_s24  ;;  %v2548_v63 = vld [vmem:[#allocation2 + $0x182] sm:$0xff] }
 0x270   : > { %2846 = vrot.lane.b32.xlu1 %v6815_v12, %s5312_s24  ;;  %v6844_v42 = vpack.c.bf16 %v2549_v25, %v2548_v63  ;;  %v2470_v63 = vld [vmem:[#allocation2 + $0x19] sm:$0xff] }
 0x271   : > { %v2502_v25 = vpack.c.bf16 %v2471_v51, %v2470_v63  ;;  %v2477_v51 = vld [vmem:[#allocation2 + $0x69] sm:$0xff]  ;;  %v2476_v63 = vld [vmem:[#allocation2 + $0x61] sm:$0xff] }
 0x273   : > { %2894 = vrot.lane.b32.xlu0 %v6779_v5, %s5312_s24 }
 0x274   : > { %2848 = vrot.lane.b32.xlu1 %v6820_v50, %s5312_s24 }
 0x275   : > { %v2775_v29 = vpop.permute.xlu0 %2774 }
 0x276   : > { %v2729_v18 = vpop.permute.xlu1 %2728  ;;  %v2968_v1 = vsel %vm332_vm0, %v2406_v49, %v2775_v29 }
 0x277   : > { %3533 = vmatprep.mubr.bf16.mxu1 %v2968_v1  ;;  %2896 = vrot.lane.b32.xlu0 %v6790_v2, %s5312_s24 }
 0x278   : > { %2850 = vrot.lane.b32.xlu1 %v6828_v17, %s5312_s24  ;;  %3534 = vmatmul.mubr.bf16.vlgmr.msra.gmra.mxu1 %v2904_v11 }
 0x279   : > { %5064 = vmatpush3.bf16.msra.mxu1 %v5248_v61  ;;  %v2777_v37 = vpop.permute.xlu0 %2776 }
 0x27a   : > { %v2731_v13 = vpop.permute.xlu1 %2730  ;;  %v2972_v0 = vsel %vm332_vm0, %v6682_v32, %v2777_v37  ;;  %5065 = vmatprep.subr.bf16.mxu1 %v5240_v47  ;;  %v2311_v32 = vpack.c.bf16 %v2281_v57, %v2280_v24  ;;  %v2289_v24 = vld [vmem:[#allocation2 + $0x80] sm:$0xff] }
 0x27b   : > { %2898 = vrot.lane.b32.xlu0 %v6840_v10, %s5312_s24  ;;  %3541 = vmatprep.mubr.bf16.mxu1 %v2972_v0  ;;  %v2912_v8 = vsel %vm332_vm0, %v2312_v4, %v2731_v13 }
 0x27c   : > { %2852 = vrot.lane.b32.xlu1 %v6844_v42, %s5312_s24  ;;  %v2908_v62 = vsel %vm332_vm0, %v2311_v32, %v2729_v18  ;;  %v2288_v32 = vld [vmem:[#allocation2 + $0x78] sm:$0xff] }
 0x27d   : > { %v2779_v30 = vpop.permute.xlu0 %2778  ;;  %5066 = vmatpush3.bf16.msra.mxu1 %v5240_v47  ;;  %v2287_v47 = vld [vmem:[#allocation2 + $0x68] sm:$0xff] }
 0x27e   : > { %v2733_v46 = vpop.permute.xlu1 %2732  ;;  %5067 = vmatprep.subr.bf16.mxu1 %v5241_v33  ;;  %v2976_v14 = vsel %vm332_vm0, %v6708_v22, %v2779_v30  ;;  %v2314_v61 = vpack.c.bf16 %v2287_v47, %v2286_v3  ;;  %v2472_v30 = vld [vmem:[#allocation2 + $0x31] sm:$0xff]  ;;  %v2292_v3 = vld [vmem:[#allocation2 + $0xa8] sm:$0xff] }
 0x27f   : > { %2900 = vrot.lane.b32.xlu0 %v2661_v15, %s5312_s24  ;;  %v2916_v11 = vsel %vm332_vm0, %v2313_v20, %v2733_v46  ;;  %v2293_v47 = vld [vmem:[#allocation2 + $0xb0] sm:$0xff]  ;;  %s323_s24 = sand.u32 1, %s5301_s10  }
 0x280   : > { %3542 = vmatmul.mubr.bf16.gmra.mxu1 %v2908_v62  ;;  %s4404_s21 = sshll.u32 %s323_s24, 8  ;;  %s7610_s28 = scalar_lea.sflag [#allocation4], %s323_s24 }
 0x281   : > { %v2781_v39 = vpop.permute.xlu0 %2780  ;;  %3549 = vmatprep.mubr.bf16.mxu1 %v2976_v14  ;;  %5068 = vmatpush3.bf16.msra.mxu1 %v5241_v33  ;;  %v2473_v33 = vld [vmem:[#allocation2 + $0x39] sm:$0xff]  ;;  %v2315_v14 = vpack.c.bf16 %v2289_v24, %v2288_v32  ;;  %s7513_s22 = scalar_lea.vmem [#allocation3], %s4404_s21 }
 0x282   : > { %v2735_v41 = vpop.permute.xlu1 %2734  ;;  %5069 = vmatprep.subr.bf16.mxu1 %v5242_v27  ;;  %v2980_v44 = vsel %vm332_vm0, %v6723_v58, %v2781_v39  ;;  %v2503_v46 = vpack.c.bf16 %v2473_v33, %v2472_v30  ;;  %v2478_v24 = vld [vmem:[#allocation2 + $0x79] sm:$0xff]  ;;  %s4338_s25 = sshll.u32 %s7513_s22, 4  ;;  %s7578_s25 = int_to_ptr.vmem [resolvable:$true] %s4338_s25 }
 0x283   : > { %v2920_v13 = vsel %vm332_vm0, %v2314_v61, %v2735_v41  ;;  %s5249_s29 = scalar_lea.vmem %s7578_s25, 4096  ;;  %p5256_p0 = scmp.lt.s32.totalorder %s7578_s25, %s5254_s16 }
 0x284   : > { %p5250_p11 = scmp.ne.s32.totalorder %s7578_s25, %s5249_s29  ;;  %p5257_p1 = scmp.lt.s32.totalorder %s5255_s17, %s5249_s29 }
 0x285   : > { %v2783_v40 = vpop.permute.xlu0 %2782  ;;  %5070 = vmatpush3.bf16.msra.mxu1 %v5242_v27 }
 0x286   : > { %v2737_v60 = vpop.permute.xlu1 %2736  ;;  %5122 = vmatprep.subr.mxu1 %v7756_v43  ;;  %v2984_v29 = vsel %vm332_vm0, %v6737_v36, %v2783_v40  ;;  %v2475_v40 = vld [vmem:[#allocation2 + $0x51] sm:$0xff]  ;;  %p5251_p12 = pnand %p5250_p11, %p5405_p5  ;;  %p5258_p2 = por %p5257_p1, %p5256_p0 }
 0x288   : > { %3550 = vmatmul.mubr.bf16.gmra.mxu1 %v2912_v8  ;;  %v2291_v8 = vld [vmem:[#allocation2 + $0x98] sm:$0xff]  ;;  %p5252_p13 = pneg %p5251_p12 }
 0x289   : > { %v2785_v22 = vpop.permute.xlu0 %2784  ;;  %3557 = vmatprep.mubr.bf16.mxu1 %v2980_v44  ;;  %v2474_v44 = vld [vmem:[#allocation2 + $0x49] sm:$0xff] }
 0x28a   : > { %v2739_v45 = vpop.permute.xlu1 %2738  ;;  %v2988_v36 = vsel %vm332_vm0, %v6751_v19, %v2785_v22  ;;  %v2924_v19 = vsel %vm332_vm0, %v2315_v14, %v2737_v60  ;;  %v2504_v22 = vpack.c.bf16 %v2475_v40, %v2474_v44  ;;  %v2297_v40 = vld [vmem:[#allocation2 + $0xe0] sm:$0xff]  ;;  %v2296_v44 = vld [vmem:[#allocation2 + $0xd8] sm:$0xff]  ;;  %p5259_p3 = pnand %p5258_p2, %p5252_p13 }
 0x28d   : > { %v2787_v49 = vpop.permute.xlu0 %2786 }
 0x28e   : > { %v6864_v56 = vpop.permute.xlu1 %2740  ;;  %v2992_v41 = vsel %vm332_vm0, %v6762_v26, %v2787_v49 }
 0x290   : > { %3558 = vmatmul.mubr.bf16.gmra.mxu1 %v2916_v11  ;;  %v2316_v11 = vpack.c.bf16 %v2291_v8, %v2290_v7 }
 0x291   : > { %v2789_v18 = vpop.permute.xlu0 %2788  ;;  %3565 = vmatprep.mubr.bf16.mxu1 %v2984_v29 }
 0x292   : > { %v2871_v1 = vpop.permute.xlu1 %2870  ;;  %v2928_v26 = vsel %vm332_vm0, %v2316_v11, %v2739_v45  ;;  %v2996_v49 = vsel %vm332_vm0, %v6773_v21, %v2789_v18 }
 0x293   : > { %v3096_v58 = vsel %vm332_vm0, %v2312_v4, %v2871_v1 }
 0x294   : > { %3694 = vmatprep.mubr.bf16.mxu0 %v3096_v58 }
 0x295   : > { %v2791_v59 = vpop.permute.xlu0 %2790 }
 0x296   : > { %v2823_v55 = vpop.permute.xlu1 %2822  ;;  %v3000_v18 = vsel %vm332_vm0, %v6785_v23, %v2791_v59 }
 0x297   : > { %v3032_v37 = vsel %vm332_vm0, %v2502_v25, %v2823_v55  ;;  %v2505_v25 = vpack.c.bf16 %v2477_v51, %v2476_v63 }
 0x298   : > { %3695 = vmatmul.mubr.bf16.vlgmr.msra.gmra.mxu0 %v3032_v37  ;;  %3566 = vmatmul.mubr.bf16.gmra.mxu1 %v2920_v13  ;;  %v2317_v37 = vpack.c.bf16 %v2293_v47, %v2292_v3  ;;  %v2485_v3 = vld [vmem:[#allocation2 + $0xc9] sm:$0xff] }
 0x299   : > { %v6874_v0 = vpop.permute.xlu0 %2742  ;;  %3573 = vmatprep.mubr.bf16.mxu1 %v2988_v36 }
 0x29a   : > { %v2873_v57 = vpop.permute.xlu1 %2872  ;;  %v2932_v21 = vsel %vm332_vm0, %v2317_v37, %v6864_v56 }
 0x29b   : > { %v3100_v15 = vsel %vm332_vm0, %v2313_v20, %v2873_v57  ;;  %v2479_v57 = vld [vmem:[#allocation2 + $0x81] sm:$0xff] }
 0x29c   : > { %3702 = vmatprep.mubr.bf16.mxu0 %v3100_v15  ;;  %v2295_v15 = vld [vmem:[#allocation2 + $0xc8] sm:$0xff]  ;;  %v2506_v30 = vpack.c.bf16 %v2479_v57, %v2478_v24 }
 0x29d   : > { %v2793_v27 = vpop.permute.xlu0 %2792  ;;  %v2487_v24 = vld [vmem:[#allocation2 + $0xe1] sm:$0xff] }
 0x29e   : > { %v2825_v62 = vpop.permute.xlu1 %2824  ;;  %v3004_v59 = vsel %vm332_vm0, %v6792_v53, %v2793_v27 }
 0x29f   : > { %v3036_v39 = vsel %vm332_vm0, %v2503_v46, %v2825_v62  ;;  %v2294_v46 = vld [vmem:[#allocation2 + $0xc0] sm:$0xff] }
 0x2a0   : > { %3703 = vmatmul.mubr.bf16.gmra.mxu0 %v3036_v39  ;;  %3574 = vmatmul.mubr.bf16.gmra.mxu1 %v2924_v19 }
 0x2a1   : > { %v6881_v9 = vpop.permute.xlu0 %2744  ;;  %3581 = vmatprep.mubr.bf16.mxu1 %v2992_v41  ;;  %v2481_v41 = vld [vmem:[#allocation2 + $0x99] sm:$0xff] }
 0x2a2   : > { %v2875_v54 = vpop.permute.xlu1 %2874 }
 0x2a3   : > { %v3104_v4 = vsel %vm332_vm0, %v2314_v61, %v2875_v54 }
 0x2a4   : > { %3710 = vmatprep.mubr.bf16.mxu0 %v3104_v4  ;;  %v2480_v4 = vld [vmem:[#allocation2 + $0x91] sm:$0xff] }
 0x2a5   : > { %v2795_v35 = vpop.permute.xlu0 %2794  ;;  %v2507_v8 = vpack.c.bf16 %v2481_v41, %v2480_v4  ;;  %v2489_v41 = vld [vmem:[#allocation2 + $0xf9] sm:$0xff]  ;;  %v2488_v4 = vld [vmem:[#allocation2 + $0xf1] sm:$0xff] }
 0x2a6   : > { %v2827_v20 = vpop.permute.xlu1 %2826  ;;  %v3008_v27 = vsel %vm332_vm0, %v6798_v28, %v2795_v35 }
 0x2a7   : > { %v3040_v60 = vsel %vm332_vm0, %v2504_v22, %v2827_v20  ;;  %v2319_v20 = vpack.c.bf16 %v2297_v40, %v2296_v44  ;;  %v2587_v40 = vld [vmem:[#allocation2 + $0x128] sm:$0xff]  ;;  %v2511_v44 = vpack.c.bf16 %v2489_v41, %v2488_v4  ;;  %v2670_v41 = vld [vmem:[#allocation2 + $0x92] sm:$0xff]  ;;  %v2594_v4 = vld [vmem:[#allocation2 + $0x180] sm:$0xff] }
 0x2a8   : > { %3711 = vmatmul.mubr.bf16.gmra.mxu0 %v3040_v60  ;;  %3582 = vmatmul.mubr.bf16.gmra.mxu1 %v2928_v26  ;;  %v2483_v26 = vld [vmem:[#allocation2 + $0xb1] sm:$0xff] }
 0x2a9   : > { %v6888_v29 = vpop.permute.xlu0 %2746  ;;  %3589 = vmatprep.mubr.bf16.mxu1 %v2996_v49  ;;  %v2940_v53 = vsel %vm332_vm0, %v2319_v20, %v6881_v9 }
 0x2aa   : > { %v2877_v1 = vpop.permute.xlu1 %2876  ;;  %v2944_v9 = vsel %vm332_vm0, %v6706_v31, %v6888_v29 }
 0x2ab   : > { %v3108_v58 = vsel %vm332_vm0, %v2315_v14, %v2877_v1  ;;  %v2318_v14 = vpack.c.bf16 %v2295_v15, %v2294_v46  ;;  %v2482_v1 = vld [vmem:[#allocation2 + $0xa9] sm:$0xff]  ;;  %v2583_v15 = vld [vmem:[#allocation2 + $0xf8] sm:$0xff] }
 0x2ac   : > { %3718 = vmatprep.mubr.bf16.mxu0 %v3108_v58  ;;  %v2508_v51 = vpack.c.bf16 %v2483_v26, %v2482_v1  ;;  %v2486_v46 = vld [vmem:[#allocation2 + $0xd9] sm:$0xff] }
 0x2ad   : > { %v2797_v55 = vpop.permute.xlu0 %2796  ;;  %v2936_v23 = vsel %vm332_vm0, %v2318_v14, %v6874_v0 }
 0x2ae   : > { %v2829_v61 = vpop.permute.xlu1 %2828  ;;  %v3012_v28 = vsel %vm332_vm0, %v6804_v16, %v2797_v55 }
 0x2af   : > { %v3044_v45 = vsel %vm332_vm0, %v2505_v25, %v2829_v61 }
 0x2b0   : > { %3719 = vmatmul.mubr.bf16.gmra.mxu0 %v3044_v45  ;;  %3590 = vmatmul.mubr.bf16.gmra.mxu1 %v2932_v21  ;;  %v2484_v45 = vld [vmem:[#allocation2 + $0xc1] sm:$0xff] }
 0x2b1   : > { %v6896_v13 = vpop.permute.xlu0 %2748  ;;  %3597 = vmatprep.mubr.bf16.mxu1 %v3000_v18  ;;  %v2509_v21 = vpack.c.bf16 %v2485_v3, %v2484_v45  ;;  %v2300_v18 = vld [vmem:[#allocation2 + $0x108] sm:$0xff]  ;;  %v2662_v3 = vld [vmem:[#allocation2 + $0x32] sm:$0xff] }
 0x2b2   : > { %v2879_v36 = vpop.permute.xlu1 %2878 }
 0x2b3   : > { %v3112_v33 = vsel %vm332_vm0, %v2316_v11, %v2879_v36 }
 0x2b4   : > { %3726 = vmatprep.mubr.bf16.mxu0 %v3112_v33 }
 0x2b5   : > { %v2799_v32 = vpop.permute.xlu0 %2798 }
 0x2b6   : > { %v2831_v62 = vpop.permute.xlu1 %2830  ;;  %v3016_v29 = vsel %vm332_vm0, %v6810_v52, %v2799_v32 }
 0x2b7   : > { %v3048_v56 = vsel %vm332_vm0, %v2506_v30, %v2831_v62  ;;  %v2582_v30 = vld [vmem:[#allocation2 + $0xf0] sm:$0xff] }
 0x2b8   : > { %3727 = vmatmul.mubr.bf16.gmra.mxu0 %v3048_v56  ;;  %3598 = vmatmul.mubr.bf16.gmra.mxu1 %v2936_v23  ;;  %v2510_v56 = vpack.c.bf16 %v2487_v24, %v2486_v46  ;;  %v2666_v24 = vld [vmem:[#allocation2 + $0x62] sm:$0xff] }
 0x2b9   : > { %v6904_v39 = vpop.permute.xlu0 %2750  ;;  %3605 = vmatprep.mubr.bf16.mxu1 %v3004_v59 }
 0x2ba   : > { %v2881_v19 = vpop.permute.xlu1 %2880 }
 0x2bb   : > { %v3116_v54 = vsel %vm332_vm0, %v2317_v37, %v2881_v19  ;;  %v2301_v37 = vld [vmem:[#allocation2 + $0x110] sm:$0xff] }
 0x2bc   : > { %3734 = vmatprep.mubr.bf16.mxu0 %v3116_v54  ;;  %v2321_v33 = vpack.c.bf16 %v2301_v37, %v2300_v18 }
 0x2bd   : > { %v2801_v22 = vpop.permute.xlu0 %2800 }
 0x2be   : > { %v2833_v7 = vpop.permute.xlu1 %2832  ;;  %v2948_v16 = vsel %vm332_vm0, %v2321_v33, %v6896_v13  ;;  %v2952_v13 = vsel %vm332_vm0, %v6735_v48, %v6904_v39  ;;  %v3020_v52 = vsel %vm332_vm0, %v6815_v12, %v2801_v22  ;;  %v2586_v48 = vld [vmem:[#allocation2 + $0x120] sm:$0xff] }
 0x2bf   : > { %v3052_v0 = vsel %vm332_vm0, %v2507_v8, %v2833_v7  ;;  %v2608_v39 = vpack.c.bf16 %v2587_v40, %v2586_v48 }
 0x2c0   : > { %3735 = vmatmul.mubr.bf16.gmra.mxu0 %v3052_v0  ;;  %3606 = vmatmul.mubr.bf16.gmra.mxu1 %v2940_v53  ;;  %v2491_v53 = vld [vmem:[#allocation2 + $0x111] sm:$0xff] }
 0x2c1   : > { %v6912_v11 = vpop.permute.xlu0 %2752  ;;  %3613 = vmatprep.mubr.bf16.mxu1 %v3008_v27  ;;  %v2589_v27 = vld [vmem:[#allocation2 + $0x140] sm:$0xff] }
 0x2c2   : > { %v2883_v60 = vpop.permute.xlu1 %2882 }
 0x2c3   : > { %v3120_v49 = vsel %vm332_vm0, %v2318_v14, %v2883_v60  ;;  %v2606_v14 = vpack.c.bf16 %v2583_v15, %v2582_v30  ;;  %v2490_v60 = vld [vmem:[#allocation2 + $0x109] sm:$0xff] }
 0x2c4   : > { %3742 = vmatprep.mubr.bf16.mxu0 %v3120_v49  ;;  %v2512_v49 = vpack.c.bf16 %v2491_v53, %v2490_v60  ;;  %v2667_v30 = vld [vmem:[#allocation2 + $0x6a] sm:$0xff]  ;;  %v2673_v53 = vld [vmem:[#allocation2 + $0xb2] sm:$0xff] }
 0x2c5   : > { %v2803_v58 = vpop.permute.xlu0 %2802 }
 0x2c6   : > { %v2835_v47 = vpop.permute.xlu1 %2834  ;;  %v3024_v22 = vsel %vm332_vm0, %v6820_v50, %v2803_v58 }
 0x2c7   : > { %v3056_v63 = vsel %vm332_vm0, %v2508_v51, %v2835_v47  ;;  %v2588_v51 = vld [vmem:[#allocation2 + $0x138] sm:$0xff] }
 0x2c8   : > { %3743 = vmatmul.mubr.bf16.gmra.mxu0 %v3056_v63  ;;  %3614 = vmatmul.mubr.bf16.gmra.mxu1 %v2944_v9  ;;  %v2609_v47 = vpack.c.bf16 %v2589_v27, %v2588_v51  ;;  %v2493_v63 = vld [vmem:[#allocation2 + $0x129] sm:$0xff]  ;;  %v2591_v9 = vld [vmem:[#allocation2 + $0x158] sm:$0xff] }
 0x2c9   : > { %v6921_v35 = vpop.permute.xlu0 %2754  ;;  %3621 = vmatprep.mubr.bf16.mxu1 %v3012_v28  ;;  %v2492_v28 = vld [vmem:[#allocation2 + $0x121] sm:$0xff] }
 0x2ca   : > { %v2885_v25 = vpop.permute.xlu1 %2884  ;;  %v2513_v37 = vpack.c.bf16 %v2493_v63, %v2492_v28  ;;  %v2679_v63 = vld [vmem:[#allocation2 + $0xfa] sm:$0xff] }
 0x2cb   : > { %v3124_v61 = vsel %vm332_vm0, %v2319_v20, %v2885_v25  ;;  %v2956_v20 = vsel %vm332_vm0, %v6749_v6, %v6912_v11  ;;  %v2960_v6 = vsel %vm332_vm0, %v6760_v38, %v6921_v35  ;;  %v2590_v38 = vld [vmem:[#allocation2 + $0x150] sm:$0xff] }
 0x2cc   : > { %3750 = vmatprep.mubr.bf16.mxu0 %v3124_v61  ;;  %v2663_v61 = vld [vmem:[#allocation2 + $0x3a] sm:$0xff]  ;;  %v2610_v35 = vpack.c.bf16 %v2591_v9, %v2590_v38 }
 0x2cd   : > { %v2805_v36 = vpop.permute.xlu0 %2804 }
 0x2ce   : > { %v2837_v57 = vpop.permute.xlu1 %2836  ;;  %v3028_v58 = vsel %vm332_vm0, %v6828_v17, %v2805_v36  ;;  %v2495_v36 = vld [vmem:[#allocation2 + $0x141] sm:$0xff] }
 0x2cf   : > { %v3060_v31 = vsel %vm332_vm0, %v2509_v21, %v2837_v57  ;;  %v2694_v57 = vpack.c.bf16 %v2663_v61, %v2662_v3  ;;  %v2680_v3 = vld [vmem:[#allocation2 + $0x10a] sm:$0xff]  ;;  %v2681_v61 = vld [vmem:[#allocation2 + $0x112] sm:$0xff] }
 0x2d0   : > { %3751 = vmatmul.mubr.bf16.gmra.mxu0 %v3060_v31  ;;  %3622 = vmatmul.mubr.bf16.gmra.mxu1 %v2948_v16  ;;  %v2665_v31 = vld [vmem:[#allocation2 + $0x52] sm:$0xff]  ;;  %v2703_v38 = vpack.c.bf16 %v2681_v61, %v2680_v3 }
 0x2d1   : > { %v6929_v55 = vpop.permute.xlu0 %2756  ;;  %3629 = vmatprep.mubr.bf16.mxu1 %v3016_v29  ;;  %v2593_v16 = vld [vmem:[#allocation2 + $0x170] sm:$0xff]  ;;  %v2494_v29 = vld [vmem:[#allocation2 + $0x139] sm:$0xff] }
 0x2d2   : > { %v2839_v62 = vpop.permute.xlu1 %2838  ;;  %v2964_v21 = vsel %vm332_vm0, %v6771_v34, %v6929_v55  ;;  %v2514_v46 = vpack.c.bf16 %v2495_v36, %v2494_v29  ;;  %v2592_v55 = vld [vmem:[#allocation2 + $0x168] sm:$0xff] }
 0x2d3   : > { %v3064_v19 = vsel %vm332_vm0, %v2510_v56, %v2839_v62 }
 0x2d5   : > { %v2887_v23 = vpop.permute.xlu0 %2886 }
 0x2d6   : > { %v3128_v59 = vsel %vm332_vm0, %v2606_v14, %v2887_v23  ;;  %v2841_v8 = vpop.permute.xlu1 %2840  ;;  %v2611_v14 = vpack.c.bf16 %v2593_v16, %v2592_v55  ;;  %v2696_v23 = vpack.c.bf16 %v2667_v30, %v2666_v24  ;;  %v2689_v16 = vld [vmem:[#allocation2 + $0x172] sm:$0xff]  ;;  %v2693_v24 = vld [vmem:[#allocation2 + $0x1a2] sm:$0xff] }
 0x2d7   : > { %3758 = vmatprep.mubr.bf16.mxu0 %v3128_v59  ;;  %v3068_v0 = vsel %vm332_vm0, %v2511_v44, %v2841_v8 }
 0x2d8   : > { %3630 = vmatmul.mubr.bf16.gmra.mxu1 %v2952_v13  ;;  %3759 = vmatmul.mubr.bf16.gmra.mxu0 %v3064_v19  ;;  %v2668_v13 = vld [vmem:[#allocation2 + $0x7a] sm:$0xff]  ;;  %v2669_v19 = vld [vmem:[#allocation2 + $0x82] sm:$0xff] }
 0x2d9   : > { %v2889_v32 = vpop.permute.xlu0 %2888  ;;  %3637 = vmatprep.mubr.bf16.mxu1 %v3020_v52  ;;  %v2595_v52 = vld [vmem:[#allocation2 + $0x188] sm:$0xff]  ;;  %v2697_v8 = vpack.c.bf16 %v2669_v19, %v2668_v13 }
 0x2da   : > { %v3132_v54 = vsel %vm332_vm0, %v2321_v33, %v2889_v32  ;;  %v2843_v26 = vpop.permute.xlu1 %2842  ;;  %v2664_v33 = vld [vmem:[#allocation2 + $0x4a] sm:$0xff]  ;;  %v2612_v44 = vpack.c.bf16 %v2595_v52, %v2594_v4  ;;  %v4059_v52 = vld [vmem:[%s7655_s5 + $0x20] sm:$0xff] }
 0x2db   : > { %3766 = vmatprep.mubr.bf16.mxu0 %v3132_v54  ;;  %v3072_v11 = vsel %vm332_vm0, %v2512_v49, %v2843_v26  ;;  %v2695_v62 = vpack.c.bf16 %v2665_v31, %v2664_v33  ;;  %v2671_v54 = vld [vmem:[#allocation2 + $0x9a] sm:$0xff]  ;;  %v2674_v26 = vld [vmem:[#allocation2 + $0xc2] sm:$0xff]  ;;  %v2675_v49 = vld [vmem:[#allocation2 + $0xca] sm:$0xff] }
 0x2dc   : > { %v2698_v48 = vpack.c.bf16 %v2671_v54, %v2670_v41  ;;  %v4061_v33 = vld [vmem:[%s7655_s5 + $0x30] sm:$0xff] }
 0x2dd   : > { %v2891_v7 = vpop.permute.xlu0 %2890  ;;  %v2688_v31 = vld [vmem:[#allocation2 + $0x16a] sm:$0xff] }
 0x2de   : > { %v3136_v12 = vsel %vm332_vm0, %v2608_v39, %v2891_v7  ;;  %v2845_v25 = vpop.permute.xlu1 %2844  ;;  %v2596_v39 = vld [vmem:[#allocation2 + $0x198] sm:$0xff]  ;;  %v2707_v29 = vpack.c.bf16 %v2689_v16, %v2688_v31 }
 0x2df   : > { %v3076_v18 = vsel %vm332_vm0, %v2513_v37, %v2845_v25  ;;  %v2682_v37 = vld [vmem:[#allocation2 + $0x122] sm:$0xff] }
 0x2e0   : > { %3638 = vmatmul.mubr.bf16.gmra.mxu1 %v2956_v20  ;;  %3767 = vmatmul.mubr.bf16.gmra.mxu0 %v3068_v0  ;;  %v2597_v20 = vld [vmem:[#allocation2 + $0x1a0] sm:$0xff] }
 0x2e1   : > { %3774 = vmatprep.mubr.bf16.mxu0 %v3136_v12  ;;  %3645 = vmatprep.mubr.bf16.mxu1 %v3024_v22  ;;  %v2893_v1 = vpop.permute.xlu0 %2892  ;;  %v2613_v12 = vpack.c.bf16 %v2597_v20, %v2596_v39  ;;  %v2672_v22 = vld [vmem:[#allocation2 + $0xaa] sm:$0xff] }
 0x2e2   : > { %v3140_v50 = vsel %vm332_vm0, %v2609_v47, %v2893_v1  ;;  %v2847_v15 = vpop.permute.xlu1 %2846  ;;  %v2699_v1 = vpack.c.bf16 %v2673_v53, %v2672_v22  ;;  %v2700_v47 = vpack.c.bf16 %v2675_v49, %v2674_v26  ;;  %v7020_v53 = vld [vmem:[%s7654_s4] ss:$0 sm:$0xff] }
 0x2e3   : > { %v3080_v56 = vsel %vm332_vm0, %v2514_v46, %v2847_v15  ;;  %v2692_v15 = vld [vmem:[#allocation2 + $0x19a] sm:$0xff]  ;;  %v4060_v46 = vld [vmem:[%s7655_s5 + $0x28] sm:$0xff] }
 0x2e4   : > { %v2709_v30 = vpack.c.bf16 %v2693_v24, %v2692_v15 }
 0x2e5   : > { %v2895_v45 = vpop.permute.xlu0 %2894 }
 0x2e6   : > { %v3144_v17 = vsel %vm332_vm0, %v2610_v35, %v2895_v45  ;;  %v2849_v32 = vpop.permute.xlu1 %2848  ;;  %v2683_v45 = vld [vmem:[#allocation2 + $0x12a] sm:$0xff] }
 0x2e7   : > { %v3084_v7 = vsel %vm332_vm0, %v6779_v5, %v2849_v32  ;;  %v2704_v35 = vpack.c.bf16 %v2683_v45, %v2682_v37 }
 0x2e8   : > { %3646 = vmatmul.mubr.bf16.gmra.mxu1 %v2960_v6  ;;  %3775 = vmatmul.mubr.bf16.gmra.mxu0 %v3072_v11  ;;  %v2676_v6 = vld [vmem:[#allocation2 + $0xda] sm:$0xff]  ;;  %v2677_v11 = vld [vmem:[#allocation2 + $0xe2] sm:$0xff] }
 0x2e9   : > { %3782 = vmatprep.mubr.bf16.mxu0 %v3140_v50  ;;  %3653 = vmatprep.mubr.bf16.mxu1 %v3028_v58  ;;  %v2897_v34 = vpop.permute.xlu0 %2896  ;;  %v2678_v58 = vld [vmem:[#allocation2 + $0xf2] sm:$0xff]  ;;  %v2701_v9 = vpack.c.bf16 %v2677_v11, %v2676_v6 }
 0x2ea   : > { %v3148_v59 = vsel %vm332_vm0, %v2611_v14, %v2897_v34  ;;  %v2851_v60 = vpop.permute.xlu1 %2850  ;;  %v2702_v25 = vpack.c.bf16 %v2679_v63, %v2678_v58 }
 0x2eb   : > { %v3088_v51 = vsel %vm332_vm0, %v6790_v2, %v2851_v60  ;;  %v4062_v2 = vld [vmem:[%s7655_s5 + $0x38] sm:$0xff] }
 0x2ec   : > { %5104 = vmatpush3.msra.mxu0 %v4062_v2 }
 0x2ed   : > { %v2899_v40 = vpop.permute.xlu0 %2898  ;;  %5105 = vmatprep.subr.mxu0 %v7756_v43 }
 0x2ee   : > { %v3152_v0 = vsel %vm332_vm0, %v2612_v44, %v2899_v40  ;;  %v2853_v50 = vpop.permute.xlu1 %2852  ;;  %5106 = vmatpush3.msra.mxu0 %v4061_v33 }
 0x2ef   : > { %v3092_v28 = vsel %vm332_vm0, %v6840_v10, %v2853_v50  ;;  %v2684_v10 = vld [vmem:[#allocation2 + $0x13a] sm:$0xff]  ;;  %5107 = vmatprep.subr.mxu0 %v7756_v43 }
 0x2f0   : > { %3654 = vmatmul.mubr.bf16.gmra.mxu1 %v2964_v21  ;;  %3783 = vmatmul.mubr.bf16.gmra.mxu0 %v3076_v18  ;;  %v2685_v21 = vld [vmem:[#allocation2 + $0x142] sm:$0xff]  ;;  %v2686_v18 = vld [vmem:[#allocation2 + $0x152] sm:$0xff] }
 0x2f1   : > { %3790 = vmatprep.mubr.bf16.mxu0 %v3144_v17  ;;  %5071 = vmatprep.mubr.msk.bf16.mxu1 %vm332_vm0, %v2694_v57  ;;  %v2901_v27 = vpop.permute.xlu0 %2900  ;;  %v2687_v57 = vld [vmem:[#allocation2 + $0x15a] sm:$0xff]  ;;  %v2705_v17 = vpack.c.bf16 %v2685_v21, %v2684_v10 }
 0x2f2   : > { %v3156_v5 = vsel %vm332_vm0, %v2613_v12, %v2901_v27  ;;  %v2706_v36 = vpack.c.bf16 %v2687_v57, %v2686_v18  ;;  %5108 = vmatpush3.msra.mxu0 %v4060_v46  ;;  %v4058_v12 = vld [vmem:[%s7655_s5 + $0x18] sm:$0xff] }
 0x2f3   : > { %5109 = vmatprep.subr.mxu0 %v7756_v43 }
 0x2f4   : > { %5110 = vmatpush3.msra.mxu0 %v4059_v52 }
 0x2f5   : > { %5111 = vmatprep.subr.mxu0 %v7756_v43 }
 0x2f6   : > { %5112 = vmatpush3.msra.mxu0 %v4058_v12 }
 0x2f7   : > { %5113 = vmatprep.subr.mxu0 %v7756_v43 }
 0x2f8   : > { %3791 = vmatmul.mubr.bf16.gmra.mxu0 %v3080_v56  ;;  %5072 = vmatmul.mubr.msk.bf16.vlgmr.msra.gmra.mxu1 %vm332_vm0, %v2695_v62 }
 0x2f9   : > { %3798 = vmatprep.mubr.bf16.mxu0 %v3148_v59  ;;  %5075 = vmatprep.mubr.msk.bf16.mxu1 %vm332_vm0, %v2696_v23 }
 0x300   : > { %3799 = vmatmul.mubr.bf16.gmra.mxu0 %v3084_v7  ;;  %5076 = vmatmul.mubr.msk.bf16.gmra.mxu1 %vm332_vm0, %v2697_v8 }
 0x301   : > { %3806 = vmatprep.mubr.bf16.mxu0 %v3152_v0  ;;  %5079 = vmatprep.mubr.msk.bf16.mxu1 %vm332_vm0, %v2698_v48 }
 0x308   : > { %3807 = vmatmul.mubr.bf16.gmra.mxu0 %v3088_v51  ;;  %5080 = vmatmul.mubr.msk.bf16.gmra.mxu1 %vm332_vm0, %v2699_v1 }
 0x309   : > { %5083 = vmatprep.mubr.msk.bf16.mxu1 %vm332_vm0, %v2700_v47  ;;  %3814 = vmatprep.mubr.bf16.mxu0 %v3156_v5 }
 0x310   : > { %3815 = vmatmul.mubr.bf16.gmra.mxu0 %v3092_v28  ;;  %5084 = vmatmul.mubr.msk.bf16.gmra.mxu1 %vm332_vm0, %v2701_v9 }
 0x311   : > { %5087 = vmatprep.mubr.msk.bf16.mxu1 %vm332_vm0, %v2702_v25  ;;  %5119 = vmatprep.mubr.msk.f32.mxu0 %vm5313_vm5, %v7756_v43 }
 0x318   : > { %5088 = vmatmul.mubr.msk.bf16.gmra.mxu1 %vm332_vm0, %v2703_v38  ;;  %v4057_v38 = vld [vmem:[%s7655_s5 + $0x10] sm:$0xff] }
 0x319   : > { %5091 = vmatprep.mubr.msk.bf16.mxu1 %vm332_vm0, %v2704_v35  ;;  %5114 = vmatpush3.msra.mxu0 %v4057_v38 }
 0x31a   : > { %5115 = vmatprep.subr.mxu0 %v7756_v43 }
 0x320   : > { %5092 = vmatmul.mubr.msk.bf16.gmra.mxu1 %vm332_vm0, %v2705_v17 }
 0x321   : > { %5095 = vmatprep.mubr.msk.bf16.mxu1 %vm332_vm0, %v2706_v36 }
 0x328   : > { %5096 = vmatmul.mubr.msk.bf16.gmra.mxu1 %vm332_vm0, %v2707_v29 }
 0x329   : > { %5099 = vmatprep.mubr.msk.bf16.mxu1 %vm332_vm0, %v6844_v42 }
 0x330   : > { %5100 = vmatmul.mubr.msk.bf16.gmra.mxu1 %vm332_vm0, %v2709_v30 }
 0x331   : > { %5124 = vmatprep.mubr.msk.f32.mxu1 %vm5313_vm5, %v7756_v43 }
 0x338   : > { %v4784_v34 = vpop.f32.mrf.mxu1 }
 0x33a   : > { %v4785_v55 = vpop.f32.mrf.mxu1 }
 0x33b   : > { %v4786_v62 = vadd.f32 %v4785_v55, %v4784_v34 }
 0x33c   : > { %v4787_v14 = vpop.f32.mrf.mxu1 }
 0x33d   : > { %v3536_v1 = vadd.f32 %v4786_v62, %v7020_v53 }
 0x33e   : > { %v4788_v56 = vpop.f32.mrf.mxu1 }
 0x33f   : > { %v6997_v23 = vadd.f32 %v4788_v56, %v4787_v14 }
 0x340   : > { %v4790_v42 = vpop.f32.mrf.mxu1 }
 0x342   : > { %v4791_v59 = vpop.f32.mrf.mxu1 }
 0x343   : > { %v6999_v13 = vadd.f32 %v4791_v59, %v4790_v42  ;;  %v4056_v42 = vld [vmem:[%s7655_s5 + $0x8] sm:$0xff] }
 0x344   : > { %v4793_v19 = vpop.f32.mrf.mxu1  ;;  %5116 = vmatpush3.msra.mxu0 %v4056_v42  ;;  %v4138_v42 = vld [vmem:[%s7657_s7] sm:$0xf] }
 0x345   : > { %5117 = vmatprep.subr.mxu0 %v7756_v43  ;;  %5123 = vmatpush3.msk.msra.mxu1 %vm4144_vm6, %v4138_v42 }
 0x346   : > { %v4794_v32 = vpop.f32.mrf.mxu1 }
 0x347   : > { %v7005_v41 = vadd.f32 %v4794_v32, %v4793_v19 }
 0x348   : > { %v4796_v54 = vpop.f32.mrf.mxu1 }
 0x34a   : > { %v4797_v40 = vpop.f32.mrf.mxu1 }
 0x34b   : > { %v7007_v4 = vadd.f32 %v4797_v40, %v4796_v54 }
 0x34c   : > { %v4799_v8 = vpop.f32.mrf.mxu1 }
 0x34e   : > { %v4800_v44 = vpop.f32.mrf.mxu1 }
 0x34f   : > { %v7009_v7 = vadd.f32 %v4800_v44, %v4799_v8 }
 0x350   : > { %v4802_v48 = vpop.f32.mrf.mxu1 }
 0x352   : > { %v4803_v39 = vpop.f32.mrf.mxu1 }
 0x353   : > { %v7011_v20 = vadd.f32 %v4803_v39, %v4802_v48 }
 0x354   : > { %v4805_v0 = vpop.f32.mrf.mxu1 }
 0x356   : > { %v4806_v22 = vpop.f32.mrf.mxu1 }
 0x357   : > { %v7022_v27 = vadd.f32 %v4806_v22, %v4805_v0 }
 0x358   : > { %v4896_v60 = vpop.f32.mrf.mxu0  ;;  %v4808_v26 = vpop.f32.mrf.mxu1 }
 0x35a   : > { %v4897_v49 = vpop.f32.mrf.mxu0  ;;  %v4809_v51 = vpop.f32.mrf.mxu1 }
 0x35b   : > { %v4898_v5 = vadd.f32 %v4897_v49, %v4896_v60  ;;  %v7025_v47 = vadd.f32 %v4809_v51, %v4808_v26 }
 0x35c   : > { %v7027_v6 = vpop.f32.mrf.mxu0  ;;  %v4811_v11 = vpop.f32.mrf.mxu1 }
 0x35d   : > { %v7029_v50 = vadd.f32 %v4898_v5, %v3536_v1 }
 0x35e   : > { %v7031_v58 = vpop.f32.mrf.mxu0  ;;  %v4812_v63 = vpop.f32.mrf.mxu1 }
 0x35f   : > { %v7033_v9 = vadd.f32 %v4812_v63, %v4811_v11 }
 0x360   : > { %v7035_v28 = vpop.f32.mrf.mxu0  ;;  %v4814_v25 = vpop.f32.mrf.mxu1 }
 0x362   : > { %v7037_v2 = vpop.f32.mrf.mxu0  ;;  %v4815_v3 = vpop.f32.mrf.mxu1 }
 0x363   : > { %v7039_v61 = vadd.f32 %v4815_v3, %v4814_v25 }
 0x364   : > { %v7041_v37 = vpop.f32.mrf.mxu0  ;;  %v4817_v45 = vpop.f32.mrf.mxu1 }
 0x366   : > { %v7046_v35 = vpop.f32.mrf.mxu0  ;;  %v4818_v10 = vpop.f32.mrf.mxu1 }
 0x367   : > { %v7049_v21 = vadd.f32 %v4818_v10, %v4817_v45 }
 0x368   : > { %v7051_v18 = vpop.f32.mrf.mxu0  ;;  %v4820_v57 = vpop.f32.mrf.mxu1 }
 0x36a   : > { %v7053_v17 = vpop.f32.mrf.mxu0  ;;  %v4821_v36 = vpop.f32.mrf.mxu1 }
 0x36b   : > { %v7055_v33 = vadd.f32 %v4821_v36, %v4820_v57 }
 0x36c   : > { %v7057_v31 = vpop.f32.mrf.mxu0  ;;  %v4823_v16 = vpop.f32.mrf.mxu1 }
 0x36e   : > { %v7059_v29 = vpop.f32.mrf.mxu0  ;;  %v4824_v15 = vpop.f32.mrf.mxu1 }
 0x36f   : > { %v7061_v24 = vadd.f32 %v4824_v15, %v4823_v16 }
 0x370   : > { %v7063_v30 = vpop.f32.mrf.mxu0  ;;  %v4826_v46 = vpop.f32.mrf.mxu1 }
 0x372   : > { %v7065_v34 = vpop.f32.mrf.mxu0  ;;  %v4827_v55 = vpop.f32.mrf.mxu1 }
 0x373   : > { %v7067_v62 = vadd.f32 %v4827_v55, %v4826_v46  ;;  %v4055_v46 = vld [vmem:[%s7655_s5] sm:$0xff] }
 0x374   : > { %v7069_v14 = vpop.f32.mrf.mxu0  ;;  %v4829_v56 = vpop.f32.mrf.mxu1  ;;  %5118 = vmatpush3.msra.mxu0 %v4055_v46 }
 0x376   : > { %v7074_v59 = vpop.f32.mrf.mxu0  ;;  %v4830_v19 = vpop.f32.mrf.mxu1 }
 0x377   : > { %v7077_v52 = vadd.f32 %v4830_v19, %v4829_v56 }
 0x378   : > { %v7079_v32 = vpop.f32.mrf.mxu0  ;;  %v4832_v54 = vpop.f32.mrf.mxu1 }
 0x37a   : > { %v7081_v40 = vpop.f32.mrf.mxu0  ;;  %v4833_v8 = vpop.f32.mrf.mxu1 }
 0x37b   : > { %v7083_v44 = vadd.f32 %v4833_v8, %v4832_v54 }
 0x37c   : > { %v7085_v48 = vpop.f32.mrf.mxu0  ;;  %v4835_v39 = vpop.f32.mrf.mxu1 }
 0x37d   : > { %7763 = vst [vmem:[#allocation38_spill] sm:$0xff] %v7083_v44 }
 0x37e   : > { %v7087_v0 = vpop.f32.mrf.mxu0  ;;  %v4836_v12 = vpop.f32.mrf.mxu1 }
 0x37f   : > { %v7089_v22 = vadd.f32 %v4836_v12, %v4835_v39 }
 0x380   : > { %v7091_v60 = vpop.f32.mrf.mxu0  ;;  %v4838_v26 = vpop.f32.mrf.mxu1 }
 0x381   : > { %7764 = vst [vmem:[#allocation39_spill] sm:$0xff] %v7089_v22 }
 0x382   : > { %v7093_v49 = vpop.f32.mrf.mxu0  ;;  %v4839_v1 = vpop.f32.mrf.mxu1 }
 0x383   : > { %v7095_v5 = vadd.f32 %v4839_v1, %v4838_v26 }
 0x384   : > { %v7097_v51 = vpop.f32.mrf.mxu0  ;;  %v4841_v11 = vpop.f32.mrf.mxu1 }
 0x385   : > { %7765 = vst [vmem:[#allocation40_spill] sm:$0xff] %v7095_v5 }
 0x386   : > { %v7099_v63 = vpop.f32.mrf.mxu0  ;;  %v4842_v25 = vpop.f32.mrf.mxu1 }
 0x387   : > { %v7101_v3 = vadd.f32 %v4842_v25, %v4841_v11 }
 0x388   : > { %v7103_v45 = vpop.f32.mrf.mxu0  ;;  %v4844_v38 = vpop.f32.mrf.mxu1 }
 0x389   : > { %7766 = vst [vmem:[#allocation49_spill] sm:$0xff] %v7101_v3 }
 0x38a   : > { %v7105_v10 = vpop.f32.mrf.mxu0  ;;  %v4845_v57 = vpop.f32.mrf.mxu1 }
 0x38b   : > { %v7107_v36 = vadd.f32 %v4845_v57, %v4844_v38 }
 0x38c   : > { %v7109_v16 = vpop.f32.mrf.mxu0  ;;  %v4847_v15 = vpop.f32.mrf.mxu1 }
 0x38d   : > { %7767 = vst [vmem:[#allocation51_spill] sm:$0xff] %v7107_v36 }
 0x38e   : > { %v7114_v55 = vpop.f32.mrf.mxu0  ;;  %v4848_v56 = vpop.f32.mrf.mxu1 }
 0x38f   : > { %v7121_v19 = vadd.f32 %v4848_v56, %v4847_v15 }
 0x390   : > { %v7123_v54 = vpop.f32.mrf.mxu0  ;;  %v4850_v8 = vpop.f32.mrf.mxu1 }
 0x391   : > { %7768 = vst [vmem:[#allocation41_spill] sm:$0xff] %v7121_v19 }
 0x392   : > { %v7125_v39 = vpop.f32.mrf.mxu0  ;;  %v4851_v12 = vpop.f32.mrf.mxu1 }
 0x393   : > { %v7127_v26 = vadd.f32 %v4851_v12, %v4850_v8 }
 0x394   : > { %v7129_v1 = vpop.f32.mrf.mxu0  ;;  %v4853_v11 = vpop.f32.mrf.mxu1 }
 0x395   : > { %7769 = vst [vmem:[#allocation42_spill] sm:$0xff] %v7127_v26 }
 0x396   : > { %v7131_v25 = vpop.f32.mrf.mxu0  ;;  %v4854_v38 = vpop.f32.mrf.mxu1 }
 0x397   : > { %v7133_v57 = vadd.f32 %v4854_v38, %v4853_v11 }
 0x398   : > { %v4856_v43 = vpop.f32.mrf.mxu1  ;;  %v7135_v15 = vpop.f32.mrf.mxu0 }
 0x399   : > { %7770 = vst [vmem:[#allocation43_spill] sm:$0xff] %v7133_v57 }
 0x39a   : > { %v4857_v46 = vpop.f32.mrf.mxu1  ;;  %v7137_v56 = vpop.f32.mrf.mxu0 }
 0x39b   : > { %v7139_v42 = vadd.f32 %v4857_v46, %v4856_v43 }
 0x39c   : > { %v4859_v19 = vpop.f32.mrf.mxu1  ;;  %v7141_v36 = vpop.f32.mrf.mxu0 }
 0x39d   : > { %7771 = vst [vmem:[#allocation44_spill] sm:$0xff] %v7139_v42  ;;  %7772 = vst [vmem:[#allocation45_spill] sm:$0xff] %v7141_v36 }
 0x39e   : > { %v4860_v8 = vpop.f32.mrf.mxu1  ;;  %v7143_v12 = vpop.f32.mrf.mxu0 }
 0x39f   : > { %7773 = vst [vmem:[#allocation47_spill] sm:$0xff] %v7143_v12  ;;  %v7145_v26 = vadd.f32 %v4860_v8, %v4859_v19 }
 0x3a0   : > { %v4862_v3 = vpop.f32.mrf.mxu1  ;;  %v7147_v5 = vpop.f32.mrf.mxu0 }
 0x3a1   : > { %7774 = vst [vmem:[#allocation48_spill] sm:$0xff] %v7145_v26  ;;  %7775 = vst [vmem:[#allocation46_spill] sm:$0xff] %v7147_v5 }
 0x3a2   : > { %v4863_v11 = vpop.f32.mrf.mxu1  ;;  %v7149_v38 = vpop.f32.mrf.mxu0 }
 0x3a3   : > { %7776 = vst [vmem:[#allocation53_spill] sm:$0xff] %v7149_v38  ;;  %v7151_v57 = vadd.f32 %v4863_v11, %v4862_v3 }
 0x3a4   : > { %v4865_v22 = vpop.f32.mrf.mxu1  ;;  %v7153_v44 = vpop.f32.mrf.mxu0 }
 0x3a5   : > { %7777 = vst [vmem:[#allocation54_spill] sm:$0xff] %v7151_v57  ;;  %7778 = vst [vmem:[#allocation50_spill] sm:$0xff] %v7153_v44 }
 0x3a6   : > { %v4866_v43 = vpop.f32.mrf.mxu1  ;;  %v7155_v46 = vpop.f32.mrf.mxu0 }
 0x3a7   : > { %7779 = vst [vmem:[#allocation52_spill] sm:$0xff] %v7155_v46  ;;  %v7157_v42 = vadd.f32 %v4866_v43, %v4865_v22 }
 0x3a8   : > { %v4868_v36 = vpop.f32.mrf.mxu1  ;;  %v7159_v12 = vpop.f32.mrf.mxu0 }
 0x3a9   : > { %7780 = vst [vmem:[#allocation55_spill] sm:$0xff] %v7157_v42  ;;  %7781 = vst [vmem:[#allocation56_spill] sm:$0xff] %v7159_v12 }
 0x3aa   : > { %v4869_v19 = vpop.f32.mrf.mxu1  ;;  %v7161_v8 = vpop.f32.mrf.mxu0 }
 0x3ab   : > { %v7163_v26 = vadd.f32 %v4869_v19, %v4868_v36 }
 0x3ac   : > { %v4871_v5 = vpop.f32.mrf.mxu1  ;;  %v7165_v38 = vpop.f32.mrf.mxu0 }
 0x3ad   : > { %7782 = vst [vmem:[#allocation57_spill] sm:$0xff] %v7163_v26  ;;  %7783 = vst [vmem:[#allocation58_spill] sm:$0xff] %v7165_v38 }
 0x3ae   : > { %v4872_v3 = vpop.f32.mrf.mxu1  ;;  %v7167_v11 = vpop.f32.mrf.mxu0 }
 0x3af   : > { %v7169_v57 = vadd.f32 %v4872_v3, %v4871_v5  ;;  %v4901_v3 = vadd.f32 %v7031_v58, %v7027_v6  ;;  %v3547_v58 = vadd.f32 %v7005_v41, %v7020_v53 }
 0x3b0   : > { %v4874_v44 = vpop.f32.mrf.mxu1  ;;  %v7171_v46 = vpop.f32.mrf.mxu0 }
 0x3b1   : > { %7784 = vst [vmem:[#allocation59_spill] sm:$0xff] %v7169_v57  ;;  %v4904_v57 = vadd.f32 %v7037_v2, %v7035_v28 }
 0x3b2   : > { %v4875_v22 = vpop.f32.mrf.mxu1  ;;  %v7173_v43 = vpop.f32.mrf.mxu0 }
 0x3b3   : > { %7785 = vst [vmem:[#allocation60_spill] sm:$0xff] %v7173_v43  ;;  %v7175_v42 = vadd.f32 %v4875_v22, %v4874_v44  ;;  %v3539_v22 = vadd.f32 %v6997_v23, %v7020_v53 }
 0x3b4   : > { %v7177_v12 = vpop.f32.mrf.mxu1  ;;  %v7179_v36 = vpop.f32.mrf.mxu0 }
 0x3b5   : > { %7786 = vst [vmem:[#allocation61_spill] sm:$0xff] %v7175_v42  ;;  %7787 = vst [vmem:[#allocation62_spill] sm:$0xff] %v7177_v12  ;;  %v3544_v42 = vadd.f32 %v6999_v13, %v7020_v53  ;;  %v4910_v12 = vadd.f32 %v7053_v17, %v7051_v18  ;;  %v3700_v23 = vadd.f32 %v4901_v3, %v3539_v22 }
 0x3b6   : > { %v7181_v19 = vpop.f32.mrf.mxu1  ;;  %v7183_v26 = vpop.f32.mrf.mxu0  ;;  %v3552_v13 = vadd.f32 %v7007_v4, %v7020_v53  ;;  %v4913_v18 = vadd.f32 %v7059_v29, %v7057_v31  ;;  %v3560_v29 = vadd.f32 %v7011_v20, %v7020_v53  ;;  %v4922_v3 = vadd.f32 %v7081_v40, %v7079_v32 }
 0x3b7   : > { %7788 = vst [vmem:[#allocation63_spill] sm:$0xff] %v7181_v19  ;;  %7789 = vst [vmem:[#allocation64_spill] sm:$0xff] %v7183_v26  ;;  %v4907_v19 = vadd.f32 %v7046_v35, %v7041_v37  ;;  %v3705_v28 = vadd.f32 %v4904_v57, %v3544_v42 }
 0x3b8   : > { %v7185_v38 = vpop.f32.mrf.mxu0  ;;  %v5073_v5 = vpop.f32.mrf.mxu1  ;;  %v3713_v57 = vadd.f32 %v4910_v12, %v3552_v13  ;;  %v4919_v12 = vadd.f32 %v7074_v59, %v7069_v14  ;;  %v3568_v59 = vadd.f32 %v7025_v47, %v7020_v53  ;;  %v4928_v47 = vadd.f32 %v7093_v49, %v7091_v60 }
 0x3b9   : > { %7790 = vst [vmem:[#allocation65_spill] sm:$0xff] %v7185_v38  ;;  %v7210_v26 = vadd.f32 %v5073_v5, %v3705_v28  ;;  %v3708_v37 = vadd.f32 %v4907_v19, %v3547_v58  ;;  %v4934_v60 = vadd.f32 %v7105_v10, %v7103_v45 }
 0x3ba   : > { %v7191_v43 = vpop.f32.mrf.mxu0  ;;  %v3857_v44 = vpop.f32.mrf.mxu1 }
 0x3bb   : > { %7791 = vst [vmem:[#allocation66_spill] sm:$0xff] %v7191_v43  ;;  %v7206_v2 = vadd.f32 %v3857_v44, %v7029_v50  ;;  %v4916_v50 = vadd.f32 %v7065_v34, %v7063_v30  ;;  %v3987_v30 = vsel %vm332_vm0, %v7210_v26, 0.0 }
 0x3bc   : > { %v7201_v38 = vpop.f32.mrf.mxu0  ;;  %v5074_v6 = vpop.f32.mrf.mxu1 }
 0x3bd   : > { %v3984_v42 = vsel %vm332_vm0, %v7206_v2, 0.0  ;;  %v7222_v4 = vadd.f32 %v5074_v6, %v3708_v37  ;;  %v3563_v6 = vadd.f32 %v7022_v27, %v7020_v53  ;;  %v3721_v58 = vadd.f32 %v4916_v50, %v3560_v29 }
 0x3be   : > { %v3860_v43 = vpop.f32.mrf.mxu1  ;;  %v7216_v17 = vpop.f32.mrf.mxu0  ;;  %v3576_v29 = vadd.f32 %v7039_v61, %v7020_v53 }
 0x3bf   : > { %v7212_v35 = vadd.f32 %v3860_v43, %v3700_v23  ;;  %v3555_v43 = vadd.f32 %v7009_v7, %v7020_v53  ;;  %v3989_v20 = vsel %vm332_vm0, %v7222_v4, 0.0  ;;  %v3724_v40 = vadd.f32 %v4919_v12, %v3563_v6 }
 0x3c0   : > { %v5077_v41 = vpop.f32.mrf.mxu1  ;;  %v7238_v22 = vpop.f32.mrf.mxu0  ;;  %v4931_v12 = vadd.f32 %v7099_v63, %v7097_v51  ;;  %v3584_v63 = vadd.f32 %v7055_v33, %v7020_v53  ;;  %v4940_v33 = vadd.f32 %v7125_v39, %v7123_v54  ;;  %v4946_v54 = vadd.f32 %v7137_v56, %v7135_v15 }
 0x3c1   : > { %v3985_v19 = vsel %vm332_vm0, %v7212_v35, 0.0  ;;  %v3716_v14 = vadd.f32 %v4913_v18, %v3555_v43  ;;  %v7246_v13 = vadd.f32 %v5077_v41, %v3721_v58  ;;  %v4925_v18 = vadd.f32 %v7087_v0, %v7085_v48 }
 0x3c2   : > { %v3986_v5 = vadd.f32 %v3985_v19, %v3984_v42  ;;  %v3873_v31 = vpop.f32.mrf.mxu1  ;;  %v3729_v19 = vadd.f32 %v4922_v3, %v3568_v59  ;;  %v3571_v43 = vadd.f32 %v7033_v9, %v7020_v53  ;;  %v3579_v3 = vadd.f32 %v7049_v21, %v7020_v53 }
 0x3c3   : > { %v7234_v34 = vadd.f32 %v3873_v31, %v3713_v57  ;;  %v7252_v57 = vpop.f32.mrf.mxu0  ;;  %v3995_v48 = vsel %vm332_vm0, %v7246_v13, 0.0 }
 0x3c4   : > { %v3988_v44 = vadd.f32 %v3987_v30, %v3986_v5  ;;  %v5078_v7 = vpop.f32.mrf.mxu1  ;;  %v3732_v51 = vadd.f32 %v4925_v18, %v3571_v43  ;;  %v3740_v10 = vadd.f32 %v4931_v12, %v3579_v3  ;;  %v3592_v18 = vadd.f32 %v7067_v62, %v7020_v53 }
 0x3c5   : > { %v3991_v32 = vsel %vm332_vm0, %v7234_v34, 0.0  ;;  %v7258_v50 = vadd.f32 %v5078_v7, %v3724_v40  ;;  %v7274_v49 = vpop.f32.mrf.mxu0  ;;  %v3595_v43 = vadd.f32 %v7077_v52, %v7020_v53 }
 0x3c6   : > { %v3990_v28 = vadd.f32 %v3989_v20, %v3988_v44  ;;  %v3876_v23 = vpop.f32.mrf.mxu1  ;;  %v3737_v44 = vadd.f32 %v4928_v47, %v3576_v29  ;;  %v4943_v47 = vadd.f32 %v7131_v25, %v7129_v1  ;;  %v7792_v25 = vld [vmem:[#allocation38_spill] sm:$0xff] }
 0x3c7   : > { %v7250_v37 = vadd.f32 %v3876_v23, %v3716_v14  ;;  %v3997_v61 = vsel %vm332_vm0, %v7258_v50, 0.0  ;;  %v7288_v14 = vpop.f32.mrf.mxu0  ;;  %v4937_v23 = vadd.f32 %v7114_v55, %v7109_v16 }
 0x3c8   : > { %v3992_v27 = vadd.f32 %v3991_v32, %v3990_v28  ;;  %v5081_v42 = vpop.f32.mrf.mxu1  ;;  %v3745_v28 = vadd.f32 %v4934_v60, %v3584_v63  ;;  %v3756_v56 = vadd.f32 %v4943_v47, %v3595_v43  ;;  %v7795_v63 = vld [vmem:[#allocation46_spill] sm:$0xff] }
 0x3c9   : > { %v3993_v41 = vsel %vm332_vm0, %v7250_v37, 0.0  ;;  %v7282_v20 = vadd.f32 %v5081_v42, %v3737_v44  ;;  %v7310_v39 = vpop.f32.mrf.mxu0  ;;  %v7794_v44 = vld [vmem:[#allocation47_spill] sm:$0xff] }
 0x3ca   : > { %v3994_v5 = vadd.f32 %v3993_v41, %v3992_v27  ;;  %v3889_v31 = vpop.f32.mrf.mxu1  ;;  %v3587_v27 = vadd.f32 %v7061_v24, %v7020_v53 }
 0x3cb   : > { %v7270_v0 = vadd.f32 %v3889_v31, %v3729_v19  ;;  %v4003_v16 = vsel %vm332_vm0, %v7282_v20, 0.0  ;;  %v3600_v31 = vadd.f32 %v7792_v25, %v7020_v53 }
 0x3cc   : > { %v3996_v30 = vadd.f32 %v3995_v48, %v3994_v5  ;;  %v5082_v9 = vpop.f32.mrf.mxu1  ;;  %v3753_v5 = vadd.f32 %v4940_v33, %v3592_v18  ;;  %v3748_v1 = vadd.f32 %v4937_v23, %v3587_v27  ;;  %v7798_v33 = vld [vmem:[#allocation40_spill] sm:$0xff]  ;;  %v7799_v27 = vld [vmem:[#allocation50_spill] sm:$0xff] }
 0x3cd   : > { %v3999_v45 = vsel %vm332_vm0, %v7270_v0, 0.0  ;;  %v7294_v32 = vadd.f32 %v5082_v9, %v3740_v10  ;;  %v3761_v3 = vadd.f32 %v4946_v54, %v3600_v31 }
 0x3ce   : > { %v3998_v7 = vadd.f32 %v3997_v61, %v3996_v30  ;;  %v3892_v6 = vpop.f32.mrf.mxu1  ;;  %v7324_v30 = vpop.f32.mrf.mxu0  ;;  %v7793_v61 = vld [vmem:[#allocation45_spill] sm:$0xff] }
 0x3cf   : > { %v7286_v58 = vadd.f32 %v3892_v6, %v3732_v51  ;;  %v4005_v62 = vsel %vm332_vm0, %v7294_v32, 0.0  ;;  %v4949_v51 = vadd.f32 %v7794_v44, %v7793_v61 }
 0x3d0   : > { %v4000_v21 = vadd.f32 %v3999_v45, %v3998_v7  ;;  %v5085_v59 = vpop.f32.mrf.mxu1  ;;  %v7796_v7 = vld [vmem:[#allocation53_spill] sm:$0xff] }
 0x3d1   : > { %v4001_v40 = vsel %vm332_vm0, %v7286_v58, 0.0  ;;  %v7318_v48 = vadd.f32 %v5085_v59, %v3753_v5  ;;  %v4952_v6 = vadd.f32 %v7796_v7, %v7795_v63 }
 0x3d2   : > { %v4002_v42 = vadd.f32 %v4001_v40, %v4000_v21  ;;  %v3905_v19 = vpop.f32.mrf.mxu1  ;;  %v7797_v21 = vld [vmem:[#allocation39_spill] sm:$0xff]  ;;  %v3608_v40 = vadd.f32 %v7798_v33, %v7020_v53 }
 0x3d3   : > { %v7306_v55 = vadd.f32 %v3905_v19, %v3745_v28  ;;  %v3603_v59 = vadd.f32 %v7797_v21, %v7020_v53  ;;  %v4011_v18 = vsel %vm332_vm0, %v7318_v48, 0.0  ;;  %v7805_v21 = vld [vmem:[#allocation60_spill] sm:$0xff] }
 0x3d4   : > { %v4004_v41 = vadd.f32 %v4003_v16, %v4002_v42  ;;  %v5086_v24 = vpop.f32.mrf.mxu1  ;;  %v7800_v42 = vld [vmem:[#allocation52_spill] sm:$0xff]  ;;  %v3769_v25 = vadd.f32 %v4952_v6, %v3608_v40  ;;  %v7804_v6 = vld [vmem:[#allocation58_spill] sm:$0xff] }
 0x3d5   : > { %v4007_v15 = vsel %vm332_vm0, %v7306_v55, 0.0  ;;  %v7330_v45 = vadd.f32 %v5086_v24, %v3756_v56  ;;  %v4955_v19 = vadd.f32 %v7800_v42, %v7799_v27  ;;  %v7801_v16 = vld [vmem:[#allocation56_spill] sm:$0xff]  ;;  %v3764_v31 = vadd.f32 %v4949_v51, %v3603_v59  ;;  %v7807_v42 = vld [vmem:[#allocation42_spill] sm:$0xff] }
 0x3d6   : > { %v4006_v29 = vadd.f32 %v4005_v62, %v4004_v41  ;;  %v3908_v12 = vpop.f32.mrf.mxu1  ;;  %v4958_v54 = vadd.f32 %v7161_v8, %v7801_v16  ;;  %v7346_v41 = vpop.f32.mrf.mxu0  ;;  %v7802_v62 = vld [vmem:[#allocation49_spill] sm:$0xff]  ;;  %v4961_v51 = vadd.f32 %v7167_v11, %v7804_v6  ;;  %v4964_v59 = vadd.f32 %v7805_v21, %v7171_v46 }
 0x3d7   : > { %v7322_v60 = vadd.f32 %v3908_v12, %v3748_v1  ;;  %v3611_v5 = vadd.f32 %v7802_v62, %v7020_v53  ;;  %v4013_v1 = vsel %vm332_vm0, %v7330_v45, 0.0 }
 0x3d8   : > { %v4008_v52 = vadd.f32 %v4007_v15, %v4006_v29  ;;  %v5089_v9 = vpop.f32.mrf.mxu1  ;;  %v7803_v29 = vld [vmem:[#allocation51_spill] sm:$0xff]  ;;  %v7360_v44 = vpop.f32.mrf.mxu0 }
 0x3d9   : > { %v4009_v10 = vsel %vm332_vm0, %v7322_v60, 0.0  ;;  %v3616_v12 = vadd.f32 %v7803_v29, %v7020_v53 }
 0x3da   : > { %v4010_v28 = vadd.f32 %v4009_v10, %v4008_v52  ;;  %v3921_v23 = vpop.f32.mrf.mxu1  ;;  %v7354_v52 = vadd.f32 %v5089_v9, %v3769_v25  ;;  %v4986_v62 = vpop.f32.mrf.mxu0  ;;  %v7811_v25 = vld [vmem:[#allocation43_spill] sm:$0xff] }
 0x3db   : > { %v7342_v47 = vadd.f32 %v3921_v23, %v3761_v3  ;;  %v3772_v3 = vadd.f32 %v4955_v19, %v3611_v5  ;;  %v3777_v10 = vadd.f32 %v4958_v54, %v3616_v12  ;;  %v7806_v23 = vld [vmem:[#allocation41_spill] sm:$0xff]  ;;  %v3624_v19 = vadd.f32 %v7807_v42, %v7020_v53  ;;  %v7813_v42 = vld [vmem:[#allocation48_spill] sm:$0xff] }
 0x3dc   : > { %v4012_v24 = vadd.f32 %v4011_v18, %v4010_v28  ;;  %v5090_v43 = vpop.f32.mrf.mxu1  ;;  %v3619_v33 = vadd.f32 %v7806_v23, %v7020_v53  ;;  %v7808_v18 = vld [vmem:[#allocation64_spill] sm:$0xff]  ;;  %v4019_v11 = vsel %vm332_vm0, %v7354_v52, 0.0  ;;  %v7809_v54 = vld [vmem:[#allocation65_spill] sm:$0xff] }
 0x3dd   : > { %v4015_v8 = vsel %vm332_vm0, %v7342_v47, 0.0  ;;  %v7366_v28 = vadd.f32 %v5090_v43, %v3772_v3  ;;  %v4967_v16 = vadd.f32 %v7808_v18, %v7179_v36  ;;  %v3785_v12 = vadd.f32 %v4964_v59, %v3624_v19  ;;  %v7812_v36 = vld [vmem:[#allocation44_spill] sm:$0xff] }
 0x3de   : > { %v4014_v15 = vadd.f32 %v4013_v1, %v4012_v24  ;;  %v3924_v56 = vpop.f32.mrf.mxu1  ;;  %v7810_v24 = vld [vmem:[#allocation66_spill] sm:$0xff]  ;;  %v4976_v59 = vadd.f32 %v7252_v57, %v7238_v22  ;;  %v3635_v19 = vadd.f32 %v7813_v42, %v7020_v53  ;;  %v4982_v22 = vadd.f32 %v7324_v30, %v7310_v39 }
 0x3df   : > { %v7358_v61 = vadd.f32 %v3924_v56, %v3764_v31  ;;  %v4970_v43 = vadd.f32 %v7810_v24, %v7809_v54  ;;  %v3627_v31 = vadd.f32 %v7811_v25, %v7020_v53  ;;  %v4021_v29 = vsel %vm332_vm0, %v7366_v28, 0.0 }
 0x3e0   : > { %v4016_v63 = vadd.f32 %v4015_v8, %v4014_v15  ;;  %v5093_v7 = vpop.f32.mrf.mxu1  ;;  %v3780_v15 = vadd.f32 %v4961_v51, %v3619_v33  ;;  %v3632_v56 = vadd.f32 %v7812_v36, %v7020_v53  ;;  %v4973_v51 = vadd.f32 %v7216_v17, %v7201_v38 }
 0x3e1   : > { %v4017_v9 = vsel %vm332_vm0, %v7358_v61, 0.0  ;;  %v3788_v6 = vadd.f32 %v4967_v16, %v3627_v31  ;;  %v4979_v24 = vadd.f32 %v7288_v14, %v7274_v49  ;;  %v7816_v49 = vld [vmem:[#allocation57_spill] sm:$0xff] }
 0x3e2   : > { %v4018_v40 = vadd.f32 %v4017_v9, %v4016_v63  ;;  %v3937_v27 = vpop.f32.mrf.mxu1  ;;  %v7388_v63 = vadd.f32 %v5093_v7, %v3785_v12  ;;  %v4987_v9 = vpop.f32.mrf.mxu0  ;;  %v3796_v12 = vadd.f32 %v4973_v51, %v3635_v19  ;;  %v3648_v14 = vadd.f32 %v7816_v49, %v7020_v53 }
 0x3e3   : > { %v7378_v46 = vadd.f32 %v3937_v27, %v3777_v10  ;;  %v3793_v27 = vadd.f32 %v4970_v43, %v3632_v56  ;;  %v4988_v42 = vadd.f32 %v4987_v9, %v4986_v62 }
 0x3e4   : > { %v4020_v5 = vadd.f32 %v4019_v11, %v4018_v40  ;;  %v5094_v1 = vpop.f32.mrf.mxu1  ;;  %v7814_v11 = vld [vmem:[#allocation54_spill] sm:$0xff]  ;;  %v4027_v38 = vsel %vm332_vm0, %v7388_v63, 0.0  ;;  %v4989_v57 = vpop.f32.mrf.mxu0  ;;  %v3809_v51 = vadd.f32 %v4982_v22, %v3648_v14 }
 0x3e5   : > { %v4023_v10 = vsel %vm332_vm0, %v7378_v46, 0.0  ;;  %v7398_v33 = vadd.f32 %v5094_v1, %v3788_v6  ;;  %v3640_v54 = vadd.f32 %v7814_v11, %v7020_v53  ;;  %v7815_v1 = vld [vmem:[#allocation55_spill] sm:$0xff] }
 0x3e6   : > { %v4022_v8 = vadd.f32 %v4021_v29, %v4020_v5  ;;  %v3940_v3 = vpop.f32.mrf.mxu1  ;;  %v3643_v25 = vadd.f32 %v7815_v1, %v7020_v53 }
 0x3e7   : > { %v7392_v21 = vadd.f32 %v3940_v3, %v3780_v15  ;;  %v4029_v31 = vsel %vm332_vm0, %v7398_v33, 0.0  ;;  %v3801_v29 = vadd.f32 %v4976_v59, %v3640_v54  ;;  %v7817_v3 = vld [vmem:[#allocation62_spill] sm:$0xff] }
 0x3e8   : > { %v4024_v23 = vadd.f32 %v4023_v10, %v4022_v8  ;;  %v5097_v40 = vpop.f32.mrf.mxu1  ;;  %v3804_v30 = vadd.f32 %v4979_v24, %v3643_v25  ;;  %v7818_v10 = vld [vmem:[#allocation63_spill] sm:$0xff]  ;;  %v7820_v24 = vld [vmem:[#allocation61_spill] sm:$0xff] }
 0x3e9   : > { %v4025_v7 = vsel %vm332_vm0, %v7392_v21, 0.0  ;;  %v7420_v56 = vadd.f32 %v5097_v40, %v3801_v29  ;;  %v4879_v6 = vadd.f32 %v7818_v10, %v7817_v3 }
 0x3ea   : > { %v4026_v18 = vadd.f32 %v4025_v7, %v4024_v23  ;;  %v3953_v16 = vpop.f32.mrf.mxu1  ;;  %v4990_v23 = vpop.f32.mrf.mxu0  ;;  %v4985_v7 = vadd.f32 %v7360_v44, %v7346_v41 }
 0x3eb   : > { %v7410_v17 = vadd.f32 %v3953_v16, %v3793_v27  ;;  %v4035_v22 = vsel %vm332_vm0, %v7420_v56, 0.0  ;;  %v3659_v62 = vadd.f32 %v4879_v6, %v7020_v53 }
 0x3ec   : > { %v4028_v43 = vadd.f32 %v4027_v38, %v4026_v18  ;;  %v5098_v5 = vpop.f32.mrf.mxu1  ;;  %v7819_v18 = vld [vmem:[#allocation59_spill] sm:$0xff]  ;;  %v3656_v38 = vadd.f32 %v7820_v24, %v7020_v53 }
 0x3ed   : > { %v4031_v39 = vsel %vm332_vm0, %v7410_v17, 0.0  ;;  %v7430_v19 = vadd.f32 %v5098_v5, %v3804_v30  ;;  %v3651_v16 = vadd.f32 %v7819_v18, %v7020_v53  ;;  %v4063_v18 = vld [vmem:[%s7656_s6] sm:$0x1] }
 0x3ee   : > { %v4030_v15 = vadd.f32 %v4029_v31, %v4028_v43  ;;  %v3956_v36 = vpop.f32.mrf.mxu1  ;;  %v4991_v43 = vadd.f32 %v4990_v23, %v4989_v57  ;;  %v3817_v5 = vadd.f32 %v4988_v42, %v3656_v38  ;;  %v4139_v38 = vld [vmem:[%s7658_s8] sm:$0x1] }
 0x3ef   : > { %v7424_v8 = vadd.f32 %v3956_v36, %v3796_v12  ;;  %v4037_v9 = vsel %vm332_vm0, %v7430_v19, 0.0  ;;  %v3812_v25 = vadd.f32 %v4985_v7, %v3651_v16 }
 0x3f0   : > { %v4032_v27 = vadd.f32 %v4031_v39, %v4030_v15  ;;  %v5101_v59 = vpop.f32.mrf.mxu1  ;;  %v3820_v49 = vadd.f32 %v4991_v43, %v3659_v62 }
 0x3f1   : > { %v4033_v40 = vsel %vm332_vm0, %v7424_v8, 0.0  ;;  %v7445_v12 = vadd.f32 %v5101_v59, %v3817_v5  ;;  %v4224_v5 = vlaneseq }
 0x3f2   : > { %v4034_v11 = vadd.f32 %v4033_v40, %v4032_v27  ;;  %v3969_v54 = vpop.f32.mrf.mxu1 }
 0x3f3   : > { %v7440_v1 = vadd.f32 %v3969_v54, %v3809_v51  ;;  %v4043_v30 = vsel %vm332_vm0, %v7445_v12, 0.0 }
 0x3f4   : > { %v4036_v41 = vadd.f32 %v4035_v22, %v4034_v11  ;;  %v5102_v44 = vpop.f32.mrf.mxu1 }
 0x3f5   : > { %v4039_v57 = vsel %vm332_vm0, %v7440_v1, 0.0  ;;  %v7451_v36 = vadd.f32 %v5102_v44, %v3820_v49 }
 0x3f6   : > { %v4038_v31 = vadd.f32 %v4037_v9, %v4036_v41  ;;  %v3972_v29 = vpop.f32.mrf.mxu1 }
 0x3f7   : > { %v7449_v14 = vadd.f32 %v3972_v29, %v3812_v25  ;;  %v4045_v10 = vsel %vm332_vm0, %v7451_v36, 0.0  ;;  %v4225_v25 = vshrl.u32 %v4224_v5, 7 }
 0x3f8   : > { %v4040_v15 = vadd.f32 %v4039_v57, %v4038_v31 }
 0x3f9   : > { %v4041_v53 = vsel %vm332_vm0, %v7449_v14, 0.0  ;;  %v4226_v31 = vsub.s32 0, %v4225_v25  ;;  %v7835_v25 = vld [vmem:[#allocation20_spill] sm:$0xff] }
 0x3fa   : > { %v4042_v39 = vadd.f32 %v4041_v53, %v4040_v15 }
 0x3fc   : > { %v4044_v3 = vadd.f32 %v4043_v30, %v4042_v39 }
 0x3fe   : > { %v4046_v6 = vadd.f32 %v4045_v10, %v4044_v3 }
 0x400   : > { %v4047_v23 = vrot.slane %v4046_v6, 4 }
 0x402   : > { %v4048_v27 = vadd.f32 %v4047_v23, %v4046_v6 }
 0x404   : > { %v4049_v59 = vrot.slane %v4048_v27, 2 }
 0x406   : > { %v4050_v51 = vadd.f32 %v4049_v59, %v4048_v27  ;;  %v7821_v59 = vld [vmem:[#allocation6_spill] sm:$0xff] }
 0x408   : > { %v4051_v7 = vrot.slane %v4050_v51, 1 }
 0x40a   : > { %v4052_v42 = vadd.f32 %v4051_v7, %v4050_v51  ;;  %v7822_v51 = vld [vmem:[#allocation7_spill] sm:$0xff]  ;;  %v7823_v7 = vld [vmem:[#allocation8_spill] sm:$0xff] }
 0x40c   : > { %v4054_v40 = vmul.f32 0.00390625, %v4052_v42  ;;  %v7824_v42 = vld [vmem:[#allocation9_spill] sm:$0xff] }
 0x40e   : > { %5120 = vmatmul.mubr.msk.f32.vlgmr.msra.gmra.mxu0 %vm332_vm0, %v4054_v40  ;;  %v7825_v40 = vld [vmem:[#allocation10_spill] sm:$0xff] }
 0x4ce   : > { %v4133_v16 = vpop.f32.mrf.mxu0 }
 0x4cf   : > { %v4134_v11 = vadd.f32 %v4133_v16, %v4063_v18  ;;  %v7826_v18 = vld [vmem:[#allocation11_spill] sm:$0xff]  ;;  %v7827_v16 = vld [vmem:[#allocation12_spill] sm:$0xff] }
 0x4d0   : > { %v5121_v54 = vpop.f32.mrf.mxu0 }
 0x4d1   : > { %v4137_v24 = vmax.f32 %v4134_v11, 0.0  ;;  %v7828_v11 = vld [vmem:[#allocation13_spill] sm:$0xff]  ;;  %v7829_v54 = vld [vmem:[#allocation14_spill] sm:$0xff] }
 0x4d3   : > { %5125 = vmatmul.mubr.msk.f32.vlgmr.msra.gmra.mxu1 %vm4140_vm7, %v4137_v24  ;;  %v7830_v24 = vld [vmem:[#allocation15_spill] sm:$0xff] }
 0x593   : > { %v4214_v43 = vpop.f32.mrf.mxu1 }
 0x594   : > { %v4215_v22 = vadd.f32 %v4214_v43, %v4139_v38  ;;  %v7831_v38 = vld [vmem:[#allocation16_spill] sm:$0xff] }
 0x595   : > { %v5126_v41 = vpop.f32.mrf.mxu1 }
 0x596   : > { %v4516_v44 = vmul.f32 -1.442695, %v4215_v22  ;;  %v7832_v22 = vld [vmem:[#allocation17_spill] sm:$0xff] }
 0x598   : > { %5243 = vpow2.f32 %v4516_v44  ;;  %v7833_v44 = vld [vmem:[#allocation18_spill] sm:$0xff] }
 0x5a5   : > { %v5244_v62 = vpop.eup %5243 }
 0x5a6   : > { %v4221_v9 = vadd.f32 1.0, %v5244_v62 }
 0x5a8   : > { %5245 = vrcp.f32 %v4221_v9  ;;  %v7834_v9 = vld [vmem:[#allocation19_spill] sm:$0xff] }
 0x5b5   : > { %v5246_v29 = vpop.eup %5245 }
 0x5b6   : > { %v4227_v57 = vrot.slane %v5246_v29, %v4226_v31  ;;  %v7836_v29 = vld [vmem:[#allocation21_spill] sm:$0xff] }
 0x5b8   : > { %v4228_v49 = vmul.f32 %v4227_v57, %v7206_v2  ;;  %v4229_v15 = vmul.f32 %v4227_v57, %v7212_v35  ;;  %v4230_v53 = vmul.f32 %v4227_v57, %v7210_v26  ;;  %v4231_v39 = vmul.f32 %v4227_v57, %v7222_v4 }
 0x5b9   : > { %v4232_v30 = vmul.f32 %v4227_v57, %v7234_v34  ;;  %v4233_v3 = vmul.f32 %v4227_v57, %v7250_v37  ;;  %v4234_v10 = vmul.f32 %v4227_v57, %v7246_v13  ;;  %v4235_v6 = vmul.f32 %v4227_v57, %v7258_v50 }
 0x5ba   : > { %v4236_v23 = vmul.f32 %v4227_v57, %v7270_v0  ;;  %v4237_v2 = vmul.f32 %v4227_v57, %v7286_v58  ;;  %v4238_v35 = vmul.f32 %v4227_v57, %v7282_v20  ;;  %v4239_v27 = vmul.f32 %v4227_v57, %v7294_v32 }
 0x5bb   : > { %v4240_v26 = vmul.f32 %v4227_v57, %v7306_v55  ;;  %v4241_v4 = vmul.f32 %v4227_v57, %v7322_v60  ;;  %v4242_v34 = vmul.f32 %v4227_v57, %v7318_v48  ;;  %v4243_v37 = vmul.f32 %v4227_v57, %v7330_v45 }
 0x5bc   : > { %v4244_v13 = vmul.f32 %v4227_v57, %v7342_v47  ;;  %v4245_v50 = vmul.f32 %v4227_v57, %v7358_v61  ;;  %v4246_v0 = vmul.f32 %v4227_v57, %v7354_v52  ;;  %v4247_v20 = vmul.f32 %v4227_v57, %v7366_v28 }
 0x5bd   : > { %v4248_v58 = vmul.f32 %v4227_v57, %v7378_v46  ;;  %v4249_v32 = vmul.f32 %v4227_v57, %v7392_v21  ;;  %v4250_v55 = vmul.f32 %v4227_v57, %v7388_v63  ;;  %v4251_v48 = vmul.f32 %v4227_v57, %v7398_v33 }
 0x5be   : > { %v4252_v60 = vmul.f32 %v4227_v57, %v7410_v17  ;;  %v4253_v45 = vmul.f32 %v4227_v57, %v7424_v8  ;;  %v4254_v47 = vmul.f32 %v4227_v57, %v7420_v56  ;;  %v4255_v61 = vmul.f32 %v4227_v57, %v7430_v19 }
 0x5bf   : > { %v4256_v52 = vmul.f32 %v4227_v57, %v7440_v1  ;;  %v4257_v28 = vmul.f32 %v4227_v57, %v7449_v14  ;;  %v4258_v46 = vmul.f32 %v4227_v57, %v7445_v12  ;;  %v4259_v21 = vmul.f32 %v4227_v57, %v7451_v36 }
 0x5c0   : > { %v4260_v63 = vadd.f32 %v4228_v49, %v7821_v59  ;;  %v4261_v33 = vadd.f32 %v4229_v15, %v7822_v51  ;;  %v4262_v17 = vadd.f32 %v4230_v53, %v7823_v7  ;;  %v4263_v8 = vadd.f32 %v4231_v39, %v7824_v42  ;;  %v7837_v49 = vld [vmem:[#allocation22_spill] sm:$0xff]  ;;  %v7838_v53 = vld [vmem:[#allocation23_spill] sm:$0xff]  ;;  %v7851_v59 = vld [vmem:[#allocation36_spill] sm:$0xff] }
 0x5c1   : > { %v4264_v56 = vadd.f32 %v4232_v30, %v7825_v40  ;;  %v4265_v19 = vadd.f32 %v4233_v3, %v7826_v18  ;;  %v4266_v1 = vadd.f32 %v4234_v10, %v7827_v16  ;;  %v4267_v14 = vadd.f32 %v4235_v6, %v7828_v11  ;;  %v7839_v30 = vld [vmem:[#allocation24_spill] sm:$0xff]  ;;  %v7840_v10 = vld [vmem:[#allocation25_spill] sm:$0xff] }
 0x5c2   : > { %v4268_v12 = vadd.f32 %v4236_v23, %v7829_v54  ;;  %v4269_v36 = vadd.f32 %v4237_v2, %v7830_v24  ;;  %v4270_v43 = vadd.f32 %v4238_v35, %v7831_v38  ;;  %v4271_v41 = vadd.f32 %v4239_v27, %v7832_v22  ;;  %4292 = vst.msk [vmem:[%s7513_s22] sm:$0xff] %vm332_vm0, %v4260_v63  ;;  %v7841_v23 = vld [vmem:[#allocation26_spill] sm:$0xff]  ;;  %v7842_v35 = vld [vmem:[#allocation27_spill] sm:$0xff]  ;;  %v7852_v51 = vld [vmem:[#allocation37_spill] sm:$0xff] }
 0x5c3   : > { %4293 = vst.msk [vmem:[%s7513_s22 + $0x8] sm:$0xff] %vm332_vm0, %v4261_v33  ;;  %4294 = vst.msk [vmem:[%s7513_s22 + $0x10] sm:$0xff] %vm332_vm0, %v4262_v17  ;;  %v4272_v62 = vadd.f32 %v4240_v26, %v7833_v44  ;;  %v4273_v5 = vadd.f32 %v4241_v4, %v7834_v9  ;;  %v4274_v31 = vadd.f32 %v4242_v34, %v7835_v25  ;;  %v7843_v26 = vld [vmem:[#allocation28_spill] sm:$0xff]  ;;  %v7844_v34 = vld [vmem:[#allocation29_spill] sm:$0xff] }
 0x5c4   : > { %4295 = vst.msk [vmem:[%s7513_s22 + $0x18] sm:$0xff] %vm332_vm0, %v4263_v8  ;;  %v4275_v57 = vadd.f32 %v4243_v37, %v7836_v29  ;;  %4296 = vst.msk [vmem:[%s7513_s22 + $0x20] sm:$0xff] %vm332_vm0, %v4264_v56  ;;  %v4276_v15 = vadd.f32 %v4244_v13, %v7837_v49  ;;  %v4277_v39 = vadd.f32 %v4245_v50, %v7838_v53  ;;  %v7845_v13 = vld [vmem:[#allocation30_spill] sm:$0xff] }
 0x5c5   : > { %4297 = vst.msk [vmem:[%s7513_s22 + $0x28] sm:$0xff] %vm332_vm0, %v4265_v19  ;;  %4298 = vst.msk [vmem:[%s7513_s22 + $0x30] sm:$0xff] %vm332_vm0, %v4266_v1  ;;  %v4278_v3 = vadd.f32 %v4246_v0, %v7839_v30  ;;  %v4279_v6 = vadd.f32 %v4247_v20, %v7840_v10  ;;  %v4280_v2 = vadd.f32 %v4248_v58, %v7841_v23  ;;  %v7846_v0 = vld [vmem:[#allocation31_spill] sm:$0xff]  ;;  %v7847_v58 = vld [vmem:[#allocation32_spill] sm:$0xff] }
 0x5c6   : > { %4299 = vst.msk [vmem:[%s7513_s22 + $0x38] sm:$0xff] %vm332_vm0, %v4267_v14  ;;  %4300 = vst.msk [vmem:[%s7513_s22 + $0x40] sm:$0xff] %vm332_vm0, %v4268_v12  ;;  %v4281_v27 = vadd.f32 %v4249_v32, %v7842_v35  ;;  %v4282_v4 = vadd.f32 %v4250_v55, %v7843_v26  ;;  %v4283_v37 = vadd.f32 %v4251_v48, %v7844_v34  ;;  %v7848_v55 = vld [vmem:[#allocation33_spill] sm:$0xff] }
 0x5c7   : > { %4301 = vst.msk [vmem:[%s7513_s22 + $0x48] sm:$0xff] %vm332_vm0, %v4269_v36  ;;  %4302 = vst.msk [vmem:[%s7513_s22 + $0x50] sm:$0xff] %vm332_vm0, %v4270_v43  ;;  %v4284_v50 = vadd.f32 %v4252_v60, %v7845_v13  ;;  %v4285_v20 = vadd.f32 %v4253_v45, %v7846_v0  ;;  %v4286_v32 = vadd.f32 %v4254_v47, %v7847_v58  ;;  %v7849_v60 = vld [vmem:[#allocation34_spill] sm:$0xff]  ;;  %v7850_v47 = vld [vmem:[#allocation35_spill] sm:$0xff] }
 0x5c8   : > { %4303 = vst.msk [vmem:[%s7513_s22 + $0x58] sm:$0xff] %vm332_vm0, %v4271_v41  ;;  %4304 = vst.msk [vmem:[%s7513_s22 + $0x60] sm:$0xff] %vm332_vm0, %v4272_v62  ;;  %v4287_v48 = vadd.f32 %v4255_v61, %v7848_v55  ;;  %v4288_v45 = vadd.f32 %v4256_v52, %v7849_v60  ;;  %v4289_v61 = vadd.f32 %v4257_v28, %v7850_v47 }
 0x5c9   : > { %4305 = vst.msk [vmem:[%s7513_s22 + $0x68] sm:$0xff] %vm332_vm0, %v4273_v5  ;;  %4306 = vst.msk [vmem:[%s7513_s22 + $0x70] sm:$0xff] %vm332_vm0, %v4274_v31  ;;  %v4290_v63 = vadd.f32 %v4258_v46, %v7851_v59  ;;  %v4291_v33 = vadd.f32 %v4259_v21, %v7852_v51 }
 0x5ca   : > { %4307 = vst.msk [vmem:[%s7513_s22 + $0x78] sm:$0xff] %vm332_vm0, %v4275_v57  ;;  %4308 = vst.msk [vmem:[%s7513_s22 + $0x80] sm:$0xff] %vm332_vm0, %v4276_v15 }
 0x5cb   : > { %4309 = vst.msk [vmem:[%s7513_s22 + $0x88] sm:$0xff] %vm332_vm0, %v4277_v39  ;;  %4310 = vst.msk [vmem:[%s7513_s22 + $0x90] sm:$0xff] %vm332_vm0, %v4278_v3 }
 0x5cc   : > { %4311 = vst.msk [vmem:[%s7513_s22 + $0x98] sm:$0xff] %vm332_vm0, %v4279_v6  ;;  %4312 = vst.msk [vmem:[%s7513_s22 + $0xa0] sm:$0xff] %vm332_vm0, %v4280_v2 }
 0x5cd   : > { %4313 = vst.msk [vmem:[%s7513_s22 + $0xa8] sm:$0xff] %vm332_vm0, %v4281_v27  ;;  %4314 = vst.msk [vmem:[%s7513_s22 + $0xb0] sm:$0xff] %vm332_vm0, %v4282_v4 }
 0x5ce   : > { %4315 = vst.msk [vmem:[%s7513_s22 + $0xb8] sm:$0xff] %vm332_vm0, %v4283_v37  ;;  %4316 = vst.msk [vmem:[%s7513_s22 + $0xc0] sm:$0xff] %vm332_vm0, %v4284_v50 }
 0x5cf   : > { %4317 = vst.msk [vmem:[%s7513_s22 + $0xc8] sm:$0xff] %vm332_vm0, %v4285_v20  ;;  %4318 = vst.msk [vmem:[%s7513_s22 + $0xd0] sm:$0xff] %vm332_vm0, %v4286_v32 }
 0x5d0   : > { %4319 = vst.msk [vmem:[%s7513_s22 + $0xd8] sm:$0xff] %vm332_vm0, %v4287_v48  ;;  %4320 = vst.msk [vmem:[%s7513_s22 + $0xe0] sm:$0xff] %vm332_vm0, %v4288_v45 }
 0x5d1   : > { %4321 = vst.msk [vmem:[%s7513_s22 + $0xe8] sm:$0xff] %vm332_vm0, %v4289_v61  ;;  %4322 = vst.msk [vmem:[%s7513_s22 + $0xf0] sm:$0xff] %vm332_vm0, %v4290_v63 }
 0x5d2   : > { %4323 = vst.msk [vmem:[%s7513_s22 + $0xf8] sm:$0xff] %vm332_vm0, %v4291_v33 }
 0x5d3   : > { %5262 = shalt.err (!%p5259_p3)
}
 0x5d4   : > { %s5263_s24 = scalar_lea.hbm %s7576_s27, 4096  ;;  %s5267_s23 = scalar_lea.hbm %s7659_s9, 8192 }
 0x5d5   : > { %p5264_p4 = scmp.ne.s32.totalorder %s7576_s27, %s5263_s24  ;;  %p5268_p9 = scmp.lt.s32.totalorder %s7576_s27, %s7659_s9 }
 0x5d6   : > { %p5269_p10 = scmp.lt.s32.totalorder %s5267_s23, %s5263_s24 }
 0x5d7   : > { %p5265_p7 = pnand %p5264_p4, %p5405_p5 }
 0x5d8   : > { %p5270_p11 = por %p5269_p10, %p5268_p9 }
 0x5d9   : > { %p5266_p8 = pneg %p5265_p7 }
 0x5db   : > { %p5271_p12 = pnand %p5270_p11, %p5266_p8 }
 0x5dd   : > { %5274 = shalt.err (!%p5271_p12)
}
 0x5de   : > { %s5315_s29 = smov 128   ;;  %s5316_s14 = smov 8  }
 0x5df   : > { %5127 = dma.vmem_to_hbm [thread:$0]  (%p5405_p5), %s7578_s25, 4096, %s7576_s27, %s7610_s28, %s5315_s29, %s5315_s29, %s5316_s14  }
 0x5e0 PF: > { %p5133_p13 = scmp.ge.s32.totalorder %s5309_s12, 2  ;;  %s4353_s16 = sand.u32 1, %s5297_s30  }
 0x5e1   : > { %s4354_s17 = scalar_lea.sflag [#allocation4], %s4353_s16 }
 0x5e2   : > { %p5130_p0 = pnand %p5133_p13, %p5409_p6 }
 0x5e4   : > { %p5131_p1 = pneg %p5130_p0 }
 0x5e6   : > { %5292 = dma.done.wait (%p5131_p1), %s4354_s17, 4096  }
 0x5e7   : > { %5294 = vsyncadd (%p5131_p1), %s4354_s17, 4294963200  ;;  %p19_p2 = scmp.ge.s32.totalorder %s5392_s15, 4   ;;  %s7853_s30 = smov %s5301_s10 }
 0x5e8   : > { %s7854_s10 = smov %s5305_s11  ;;  %s7855_s11 = smov %s5403_s18 }
 0x5e9   : > { %s7856_s12 = smov %s5392_s15  ;;  %21 = sbr.rel (!%p19_p2) target bundleno = 3 (0x3), region = 94 }
 0x5ee   :  { %4359 = vsyncpa [#allocation4], 1 }
 0x5ef   :  { %4361 = vsyncpa [#allocation4 + $0x1], 1 }

</bundles_post_ra>
